<compile_context>
chip_gen: v5e
topology: v5e:2x2
jax: 0.10.0
libtpu: 0.0.40
codegen_flags: <defaults>
</compile_context>

<pallas_src>
import functools

import jax
import jax.numpy as jnp
from jax.experimental import pallas as pl
from jax.experimental.pallas import tpu as pltpu

EPS = 1e-5    # torch.nn.LayerNorm default
LANE = 128    # TPU lane width
ROW_GRAN = 16 # row-tile granularity (bf16 sublane packing = 16)


def _round_up(x, m):
    return (x + m - 1) // m * m


# ---------------------------------------------------------------------------
# In-kernel helpers
# ---------------------------------------------------------------------------
def _dot(a, b):
    # bf16 operands, f32 accumulation on the MXU.
    return jnp.dot(a, b, preferred_element_type=jnp.float32)


def _ln(x, g, b, inv_d):
    """PyTorch LayerNorm (biased variance, eps=1e-5), single reduction pass.

    Variance clamped at 0: single-pass E[x^2] - E[x]^2 can dip slightly
    negative in f32 for large activations.
    """
    s = jnp.sum(x, axis=-1, keepdims=True)
    ss = jnp.sum(x * x, axis=-1, keepdims=True)
    mu = s * inv_d
    var = jnp.maximum(ss * inv_d - mu * mu, 0.0)
    return (x - mu) * jax.lax.rsqrt(var + EPS) * g + b


# ---------------------------------------------------------------------------
# Pallas kernels
# ---------------------------------------------------------------------------
def message_kernel(h_i_ref, h_j_ref, pd_ref, W_ref, V_ref, msg_ref, pm_ref):
    """EGNNLayer.message.

    W (4d, d) bf16: stacked [w1_hi ; w1_hj ; w2 ; pos_w1].
    V (12, d) f32 : rows = [w1_dist, b1, g1, be1, b2, g2, be2,
                            p_b1, p_g1, p_be1, p_w2_row, p_b2].
    Outputs: msg (te, d) bf16 and pos_msg = pos_diff * mlp_pos(msg) (te, 3) f32.
    """
    d = h_i_ref.shape[-1]
    inv_d = 1.0 / d
    pd = pd_ref[...]
    # Forward matches torch.norm; only its gradient at 0 would be NaN.
    dists = jnp.sqrt(jnp.sum(pd * pd, axis=-1, keepdims=True))          # (te, 1)

    # Linear(2d+1, d): one K=2d bf16 matmul (full MXU depth on v6e/v7x); the
    # dist column and bias are VPU rank-1 ops.
    hh = jnp.concatenate([h_i_ref[...], h_j_ref[...]], axis=-1)         # (te, 2d) bf16
    x = _dot(hh, W_ref[0:2 * d, :]) + dists * V_ref[0:1, :] + V_ref[1:2, :]
    x = jnp.maximum(_ln(x, V_ref[2:3, :], V_ref[3:4, :], inv_d), 0.0)
    x = _dot(x.astype(jnp.bfloat16), W_ref[2 * d:3 * d, :]) + V_ref[4:5, :]
    msg = jnp.maximum(_ln(x, V_ref[5:6, :], V_ref[6:7, :], inv_d), 0.0)
    msg_bf = msg.astype(jnp.bfloat16)
    msg_ref[...] = msg_bf

    # mlp_pos: Linear(d,d) -> LN -> ReLU -> Linear(d,1)
    y = _dot(msg_bf, W_ref[3 * d:4 * d, :]) + V_ref[7:8, :]
    y = jnp.maximum(_ln(y, V_ref[8:9, :], V_ref[9:10, :], inv_d), 0.0)
    # Linear(d, 1) as VPU multiply + lane reduction (MXU would run ~1 lane wide).
    scale = jnp.sum(y * V_ref[10:11, :], axis=-1, keepdims=True) + V_ref[11:12, 0:1]
    pm_ref[...] = pd * scale                                            # (te, 3)


def update_kernel(h_ref, ma_ref, W_ref, V_ref, out_ref, *, residual):
    """EGNNLayer.update: mlp_upd([h, msg_aggr]) with the model residual fused.

    W (3d, d) bf16: stacked [u_w1_h ; u_w1_m ; u_w2].
    V (6, d) f32  : rows = [b1, g1, be1, b2, g2, be2].
    h is bf16; msg_aggr arrives f32 (straight from segment_sum) and is cast
    to bf16 only as a matmul input.
    """
    d = h_ref.shape[-1]
    inv_d = 1.0 / d
    h = h_ref[...]
    hm = jnp.concatenate([h, ma_ref[...].astype(jnp.bfloat16)], axis=-1)  # (tn, 2d)
    x = _dot(hm, W_ref[0:2 * d, :]) + V_ref[0:1, :]
    x = jnp.maximum(_ln(x, V_ref[1:2, :], V_ref[2:3, :], inv_d), 0.0)
    x = _dot(x.astype(jnp.bfloat16), W_ref[2 * d:3 * d, :]) + V_ref[3:4, :]
    upd = jnp.maximum(_ln(x, V_ref[4:5, :], V_ref[5:6, :], inv_d), 0.0)
    if residual:
        upd = upd + h.astype(jnp.float32)
    out_ref[...] = upd.astype(out_ref.dtype)


# ---------------------------------------------------------------------------
# pallas_call wrappers (inputs are already tile-aligned; no pads/slices here)
# ---------------------------------------------------------------------------
def message_call(h_i, h_j, pdiff, lp, te):
    E_pad, d = h_i.shape
    assert E_pad % te == 0
    row = lambda i: (i, 0)
    whole = lambda i: (0, 0)
    # VMEM per step at te=1024, d=128: ~4 MiB incl. double buffers — well under
    # the scoped default on v5e/v6e/v7x.
    msg, pos_msg = pl.pallas_call(
        message_kernel,
        grid=(E_pad // te,),
        in_specs=[pl.BlockSpec((te, d), row),
                  pl.BlockSpec((te, d), row),
                  pl.BlockSpec((te, 3), row),
                  pl.BlockSpec(lp['m_W'].shape, whole),   # resident weight slab
                  pl.BlockSpec(lp['m_V'].shape, whole)],  # resident vec-param slab
        out_specs=(pl.BlockSpec((te, d), row),
                   pl.BlockSpec((te, 3), row)),
        out_shape=(jax.ShapeDtypeStruct((E_pad, d), jnp.bfloat16),
                   jax.ShapeDtypeStruct((E_pad, 3), jnp.float32)),
        compiler_params=pltpu.CompilerParams(dimension_semantics=("parallel",)),
    )(h_i, h_j, pdiff, lp['m_W'], lp['m_V'])
    return msg, pos_msg


def update_call(h, msg_aggr, lp, residual, tn):
    N_pad, d = h.shape
    assert N_pad % tn == 0
    row = lambda i: (i, 0)
    whole = lambda i: (0, 0)
    out = pl.pallas_call(
        functools.partial(update_kernel, residual=residual),
        grid=(N_pad // tn,),
        in_specs=[pl.BlockSpec((tn, d), row),
                  pl.BlockSpec((tn, d), row),
                  pl.BlockSpec(lp['u_W'].shape, whole),
                  pl.BlockSpec(lp['u_V'].shape, whole)],
        out_specs=pl.BlockSpec((tn, d), row),
        out_shape=jax.ShapeDtypeStruct((N_pad, d), jnp.bfloat16),
        compiler_params=pltpu.CompilerParams(dimension_semantics=("parallel",)),
    )(h, msg_aggr, lp['u_W'], lp['u_V'])
    return out


# ---------------------------------------------------------------------------
# Full model forward (glue: gathers, scatters, pooling, tiny pred MLP)
# ---------------------------------------------------------------------------
def _tile_and_pad(n, t_default):
    """Largest row tile <= t_default (16-aligned); pad count to a tile multiple."""
    t = min(t_default, _round_up(n, ROW_GRAN))
    return _round_up(n, t), t


def egnn_forward(params, atoms, pos, edge_index, batch_idx, num_graphs,
                 residual=True, tile=1024):
    N = atoms.shape[0]
    E = edge_index.shape[1]

    # One-time padding: dummy node at index N absorbs padded edges' gathers and
    # scatters, so all per-layer tensors stay tile-aligned (no per-layer
    # jnp.pad / [:E] / [:N] HBM round-trips).
    N_pad, tn = _tile_and_pad(N + 1, tile)
    E_pad, te = _tile_and_pad(E, tile)

    atoms_p = jnp.pad(atoms, (0, N_pad - N))                     # dummies -> atom 0
    pos = jnp.pad(pos, ((0, N_pad - N), (0, 0)))
    src = jnp.pad(edge_index[0], (0, E_pad - E), constant_values=N)  # j (source)
    dst = jnp.pad(edge_index[1], (0, E_pad - E), constant_values=N)  # i (target)

    h = params['emb'][atoms_p]                                   # (N_pad, d) bf16
    ones_e = jnp.ones((E_pad, 1), jnp.float32)
    for lp in params['layers']:
        h_i = h[dst]
        h_j = h[src]
        pdiff = pos[dst] - pos[src]

        msg, pos_msg = message_call(h_i, h_j, pdiff, lp, te)     # (E_pad,d), (E_pad,3)

        # aggregate: sum for messages, mean for pos diffs (per target node).
        # Padded edges only touch the dummy segment N.
        msg_aggr = jax.ops.segment_sum(msg.astype(jnp.float32), dst,
                                       num_segments=N_pad)
        cnt = jax.ops.segment_sum(ones_e, dst, num_segments=N_pad)
        pos_sum = jax.ops.segment_sum(pos_msg, dst, num_segments=N_pad)
        pos_aggr = jnp.where(cnt > 0, pos_sum / jnp.maximum(cnt, 1.0), 0.0)

        h = update_call(h, msg_aggr, lp, residual, tn)           # residual fused
        pos = pos + pos_aggr

    # global_add_pool (equivariant_pred=False branch) + pred MLP in plain JAX:
    # (num_graphs, d) is far too small to justify a pallas_call.
    pooled = jax.ops.segment_sum(h[:N].astype(jnp.float32), batch_idx,
                                 num_segments=num_graphs)
    pp = params['pred']
    x = jnp.maximum(pooled @ pp['w1'] + pp['b1'], 0.0)
    return x @ pp['w2'] + pp['b2']


# ---------------------------------------------------------------------------
# Deterministic parameter init (packed slabs; big slabs bf16, vec slabs f32)
# ---------------------------------------------------------------------------
def init_params(key, num_layers, emb_dim, in_dim, out_dim):
    d = emb_dim
    keys = iter(jax.random.split(key, 64))

    def lin(kin, kout):
        return (jax.random.normal(next(keys), (kin, kout), jnp.float32)
                / jnp.sqrt(jnp.float32(kin)))

    ones_row = jnp.ones((1, d), jnp.float32)
    zeros_row = jnp.zeros((1, d), jnp.float32)

    params = {'emb': jax.random.normal(next(keys), (in_dim, d),
                                       jnp.float32).astype(jnp.bfloat16)}
    layers = []
    for _ in range(num_layers):
        W1 = lin(2 * d + 1, d)                        # mlp_msg Linear(2d+1, d)
        m_w2 = lin(d, d)
        p_w1 = lin(d, d)
        p_w2 = lin(d, 1)
        m_W = jnp.concatenate([W1[:d], W1[d:2 * d], m_w2, p_w1],
                              axis=0).astype(jnp.bfloat16)        # (4d, d) bf16
        m_V = jnp.concatenate([
            W1[2 * d:],                               # dist column of Linear 1
            zeros_row, ones_row, zeros_row,           # b1, ln1 gamma, ln1 beta
            zeros_row, ones_row, zeros_row,           # b2, ln2 gamma, ln2 beta
            zeros_row, ones_row, zeros_row,           # pos b1, ln gamma, ln beta
            p_w2.T,                                   # pos Linear(d,1) as a row
            zeros_row,                                # pos Linear(d,1) bias
        ], axis=0)                                    # (12, d) f32

        U1 = lin(2 * d, d)                            # mlp_upd Linear(2d, d)
        u_w2 = lin(d, d)
        u_W = jnp.concatenate([U1[:d], U1[d:], u_w2],
                              axis=0).astype(jnp.bfloat16)        # (3d, d) bf16
        u_V = jnp.concatenate([zeros_row, ones_row, zeros_row,
                               zeros_row, ones_row, zeros_row], axis=0)  # (6, d)
        layers.append({'m_W': m_W, 'm_V': m_V, 'u_W': u_W, 'u_V': u_V})
    params['layers'] = layers
    params['pred'] = {'w1': lin(d, d), 'b1': jnp.zeros((1, d), jnp.float32),
                      'w2': lin(d, out_dim),
                      'b2': jnp.zeros((1, out_dim), jnp.float32)}
    return params


# ---------------------------------------------------------------------------
# Demo
# ---------------------------------------------------------------------------
if __name__ == "__main__":
    key = jax.random.PRNGKey(0)
    k_param, k_atoms, k_pos = jax.random.split(key, 3)

    NUM_LAYERS = 3
    EMB_DIM = 128        # PyTorch default; one full lane-width (lane-dense)
    IN_DIM = 4           # atom vocab size
    OUT_DIM = 1
    N_PER_GRAPH = 8
    NUM_GRAPHS = 2
    N = N_PER_GRAPH * NUM_GRAPHS                      # 16 nodes

    params = init_params(k_param, NUM_LAYERS, EMB_DIM, IN_DIM, OUT_DIM)

    atoms = jax.random.randint(k_atoms, (N,), 0, IN_DIM, dtype=jnp.int32)
    pos = jax.random.normal(k_pos, (N, 3), jnp.float32)
    batch_idx = jnp.repeat(jnp.arange(NUM_GRAPHS, dtype=jnp.int32), N_PER_GRAPH)

    # edges: within each graph, ring (+1) and skip (+2) connections -> 32 edges
    src_list, dst_list = [], []
    for g in range(NUM_GRAPHS):
        base = g * N_PER_GRAPH
        for i in range(N_PER_GRAPH):
            for off in (1, 2):
                src_list.append(base + i)
                dst_list.append(base + (i + off) % N_PER_GRAPH)
    edge_index = jnp.array([src_list, dst_list], dtype=jnp.int32)  # (2, 32)

    fwd = jax.jit(egnn_forward,
                  static_argnames=("num_graphs", "residual", "tile"))
    out = fwd(params, atoms, pos, edge_index, batch_idx, NUM_GRAPHS)
    out = jax.block_until_ready(out)
    assert out.shape == (NUM_GRAPHS, OUT_DIM)
    assert bool(jnp.all(jnp.isfinite(out)))
    print("KERNEL_OK")
</pallas_src>

<mosaic_0001>
module attributes {stable_mosaic.version = 11 : i64} {
  func.func @message_kernel(%arg0: i32, %arg1: memref<32x128xbf16, #tpu.memory_space<vmem>>, %arg2: memref<32x128xbf16, #tpu.memory_space<vmem>>, %arg3: memref<32x3xf32, #tpu.memory_space<vmem>>, %arg4: memref<512x128xbf16, #tpu.memory_space<vmem>>, %arg5: memref<12x128xf32, #tpu.memory_space<vmem>>, %arg6: memref<32x128xbf16, #tpu.memory_space<vmem>>, %arg7: memref<32x3xf32, #tpu.memory_space<vmem>>) attributes {dimension_semantics = [#tpu.dimension_semantics<parallel>], iteration_bounds = array<i64: 1>, scalar_prefetch = 0 : i64, scratch_operands = 0 : i64, tpu.core_type = #tpu.core_type<tc>, window_params = [{transform_indices = @transform_0, window_bounds = array<i64: 32, 128>}, {transform_indices = @transform_1, window_bounds = array<i64: 32, 128>}, {transform_indices = @transform_2, window_bounds = array<i64: 32, 3>}, {pipeline_mode = #tpu.pipeline_mode<synchronous>, transform_indices = @transform_3, window_bounds = array<i64: 512, 128>}, {pipeline_mode = #tpu.pipeline_mode<synchronous>, transform_indices = @transform_4, window_bounds = array<i64: 12, 128>}, {transform_indices = @transform_5, window_bounds = array<i64: 32, 128>}, {transform_indices = @transform_6, window_bounds = array<i64: 32, 3>}]} {
    %c0 = arith.constant 0 : index
    %c0_0 = arith.constant 0 : index
    %0 = vector.load %arg3[%c0, %c0_0] : memref<32x3xf32, #tpu.memory_space<vmem>>, vector<32x3xf32>
    %1 = arith.mulf %0, %0 : vector<32x3xf32>
    %cst = arith.constant dense<0.000000e+00> : vector<32xf32>
    %2 = vector.multi_reduction <add>, %1, %cst [1] : vector<32x3xf32> to vector<32xf32>
    %3 = vector.shape_cast %2 : vector<32xf32> to vector<32x1xf32>
    %4 = math.sqrt %3 : vector<32x1xf32>
    %c0_1 = arith.constant 0 : index
    %c0_2 = arith.constant 0 : index
    %5 = vector.load %arg1[%c0_1, %c0_2] : memref<32x128xbf16, #tpu.memory_space<vmem>>, vector<32x128xbf16>
    %c0_3 = arith.constant 0 : index
    %c0_4 = arith.constant 0 : index
    %6 = vector.load %arg2[%c0_3, %c0_4] : memref<32x128xbf16, #tpu.memory_space<vmem>>, vector<32x128xbf16>
    %7 = tpu.concatenate %5, %6 in 1 : vector<32x128xbf16>, vector<32x128xbf16> -> vector<32x256xbf16>
    %c0_5 = arith.constant 0 : index
    %c0_6 = arith.constant 0 : index
    %8 = vector.load %arg4[%c0_5, %c0_6] : memref<512x128xbf16, #tpu.memory_space<vmem>>, vector<256x128xbf16>
    %cst_7 = arith.constant dense<0.000000e+00> : vector<32x128xf32>
    %9 = tpu.matmul %7, %8, %cst_7 {dimension_numbers = #tpu.dot_dimension_numbers<[1], [0], [0], [1], [0, 0, 1, 1], [], []>} : vector<32x256xbf16>, vector<256x128xbf16>, vector<32x128xf32> -> vector<32x128xf32>
    %c0_8 = arith.constant 0 : index
    %c0_9 = arith.constant 0 : index
    %10 = vector.load %arg5[%c0_8, %c0_9] : memref<12x128xf32, #tpu.memory_space<vmem>>, vector<1x128xf32>
    %11 = vector.broadcast %4 : vector<32x1xf32> to vector<32x128xf32>
    %12 = vector.broadcast %10 : vector<1x128xf32> to vector<32x128xf32>
    %13 = arith.mulf %11, %12 : vector<32x128xf32>
    %14 = arith.addf %9, %13 : vector<32x128xf32>
    %c1 = arith.constant 1 : index
    %c0_10 = arith.constant 0 : index
    %15 = vector.load %arg5[%c1, %c0_10] : memref<12x128xf32, #tpu.memory_space<vmem>>, vector<1x128xf32>
    %16 = vector.broadcast %15 : vector<1x128xf32> to vector<32x128xf32>
    %17 = arith.addf %14, %16 : vector<32x128xf32>
    %c2 = arith.constant 2 : index
    %c0_11 = arith.constant 0 : index
    %18 = vector.load %arg5[%c2, %c0_11] : memref<12x128xf32, #tpu.memory_space<vmem>>, vector<1x128xf32>
    %c3 = arith.constant 3 : index
    %c0_12 = arith.constant 0 : index
    %19 = vector.load %arg5[%c3, %c0_12] : memref<12x128xf32, #tpu.memory_space<vmem>>, vector<1x128xf32>
    %cst_13 = arith.constant dense<0.000000e+00> : vector<32xf32>
    %20 = vector.multi_reduction <add>, %17, %cst_13 [1] : vector<32x128xf32> to vector<32xf32>
    %21 = vector.shape_cast %20 : vector<32xf32> to vector<32x1xf32>
    %22 = arith.mulf %17, %17 : vector<32x128xf32>
    %cst_14 = arith.constant dense<0.000000e+00> : vector<32xf32>
    %23 = vector.multi_reduction <add>, %22, %cst_14 [1] : vector<32x128xf32> to vector<32xf32>
    %24 = vector.shape_cast %23 : vector<32xf32> to vector<32x1xf32>
    %cst_15 = arith.constant 7.812500e-03 : f32
    %25 = vector.broadcast %cst_15 : f32 to vector<32x1xf32>
    %26 = arith.mulf %21, %25 : vector<32x1xf32>
    %cst_16 = arith.constant 7.812500e-03 : f32
    %27 = vector.broadcast %cst_16 : f32 to vector<32x1xf32>
    %28 = arith.mulf %24, %27 : vector<32x1xf32>
    %29 = arith.mulf %26, %26 : vector<32x1xf32>
    %30 = arith.subf %28, %29 : vector<32x1xf32>
    %cst_17 = arith.constant 0.000000e+00 : f32
    %31 = vector.broadcast %cst_17 : f32 to vector<32x1xf32>
    %32 = arith.maximumf %30, %31 : vector<32x1xf32>
    %33 = vector.broadcast %26 : vector<32x1xf32> to vector<32x128xf32>
    %34 = arith.subf %17, %33 : vector<32x128xf32>
    %cst_18 = arith.constant 9.99999974E-6 : f32
    %35 = vector.broadcast %cst_18 : f32 to vector<32x1xf32>
    %36 = arith.addf %32, %35 : vector<32x1xf32>
    %37 = math.rsqrt %36 : vector<32x1xf32>
    %38 = vector.broadcast %37 : vector<32x1xf32> to vector<32x128xf32>
    %39 = arith.mulf %34, %38 : vector<32x128xf32>
    %40 = vector.broadcast %18 : vector<1x128xf32> to vector<32x128xf32>
    %41 = arith.mulf %39, %40 : vector<32x128xf32>
    %42 = vector.broadcast %19 : vector<1x128xf32> to vector<32x128xf32>
    %43 = arith.addf %41, %42 : vector<32x128xf32>
    %cst_19 = arith.constant 0.000000e+00 : f32
    %44 = vector.broadcast %cst_19 : f32 to vector<32x128xf32>
    %45 = arith.maximumf %43, %44 : vector<32x128xf32>
    %46 = arith.truncf %45 : vector<32x128xf32> to vector<32x128xbf16>
    %c256 = arith.constant 256 : index
    %c0_20 = arith.constant 0 : index
    %47 = vector.load %arg4[%c256, %c0_20] : memref<512x128xbf16, #tpu.memory_space<vmem>>, vector<128x128xbf16>
    %cst_21 = arith.constant dense<0.000000e+00> : vector<32x128xf32>
    %48 = tpu.matmul %46, %47, %cst_21 {dimension_numbers = #tpu.dot_dimension_numbers<[1], [0], [0], [1], [0, 0, 1, 1], [], []>} : vector<32x128xbf16>, vector<128x128xbf16>, vector<32x128xf32> -> vector<32x128xf32>
    %c4 = arith.constant 4 : index
    %c0_22 = arith.constant 0 : index
    %49 = vector.load %arg5[%c4, %c0_22] : memref<12x128xf32, #tpu.memory_space<vmem>>, vector<1x128xf32>
    %50 = vector.broadcast %49 : vector<1x128xf32> to vector<32x128xf32>
    %51 = arith.addf %48, %50 : vector<32x128xf32>
    %c5 = arith.constant 5 : index
    %c0_23 = arith.constant 0 : index
    %52 = vector.load %arg5[%c5, %c0_23] : memref<12x128xf32, #tpu.memory_space<vmem>>, vector<1x128xf32>
    %c6 = arith.constant 6 : index
    %c0_24 = arith.constant 0 : index
    %53 = vector.load %arg5[%c6, %c0_24] : memref<12x128xf32, #tpu.memory_space<vmem>>, vector<1x128xf32>
    %cst_25 = arith.constant dense<0.000000e+00> : vector<32xf32>
    %54 = vector.multi_reduction <add>, %51, %cst_25 [1] : vector<32x128xf32> to vector<32xf32>
    %55 = vector.shape_cast %54 : vector<32xf32> to vector<32x1xf32>
    %56 = arith.mulf %51, %51 : vector<32x128xf32>
    %cst_26 = arith.constant dense<0.000000e+00> : vector<32xf32>
    %57 = vector.multi_reduction <add>, %56, %cst_26 [1] : vector<32x128xf32> to vector<32xf32>
    %58 = vector.shape_cast %57 : vector<32xf32> to vector<32x1xf32>
    %cst_27 = arith.constant 7.812500e-03 : f32
    %59 = vector.broadcast %cst_27 : f32 to vector<32x1xf32>
    %60 = arith.mulf %55, %59 : vector<32x1xf32>
    %cst_28 = arith.constant 7.812500e-03 : f32
    %61 = vector.broadcast %cst_28 : f32 to vector<32x1xf32>
    %62 = arith.mulf %58, %61 : vector<32x1xf32>
    %63 = arith.mulf %60, %60 : vector<32x1xf32>
    %64 = arith.subf %62, %63 : vector<32x1xf32>
    %cst_29 = arith.constant 0.000000e+00 : f32
    %65 = vector.broadcast %cst_29 : f32 to vector<32x1xf32>
    %66 = arith.maximumf %64, %65 : vector<32x1xf32>
    %67 = vector.broadcast %60 : vector<32x1xf32> to vector<32x128xf32>
    %68 = arith.subf %51, %67 : vector<32x128xf32>
    %cst_30 = arith.constant 9.99999974E-6 : f32
    %69 = vector.broadcast %cst_30 : f32 to vector<32x1xf32>
    %70 = arith.addf %66, %69 : vector<32x1xf32>
    %71 = math.rsqrt %70 : vector<32x1xf32>
    %72 = vector.broadcast %71 : vector<32x1xf32> to vector<32x128xf32>
    %73 = arith.mulf %68, %72 : vector<32x128xf32>
    %74 = vector.broadcast %52 : vector<1x128xf32> to vector<32x128xf32>
    %75 = arith.mulf %73, %74 : vector<32x128xf32>
    %76 = vector.broadcast %53 : vector<1x128xf32> to vector<32x128xf32>
    %77 = arith.addf %75, %76 : vector<32x128xf32>
    %cst_31 = arith.constant 0.000000e+00 : f32
    %78 = vector.broadcast %cst_31 : f32 to vector<32x128xf32>
    %79 = arith.maximumf %77, %78 : vector<32x128xf32>
    %80 = arith.truncf %79 : vector<32x128xf32> to vector<32x128xbf16>
    %c0_32 = arith.constant 0 : index
    %c0_33 = arith.constant 0 : index
    %81 = vector.load %arg6[%c0_32, %c0_33] : memref<32x128xbf16, #tpu.memory_space<vmem>>, vector<32x128xbf16>
    tpu.vector_store %arg6[%c0_32, %c0_33], %80 {strides = array<i32>} : memref<32x128xbf16, #tpu.memory_space<vmem>>, vector<32x128xbf16>,
    %c384 = arith.constant 384 : index
    %c0_34 = arith.constant 0 : index
    %82 = vector.load %arg4[%c384, %c0_34] : memref<512x128xbf16, #tpu.memory_space<vmem>>, vector<128x128xbf16>
    %cst_35 = arith.constant dense<0.000000e+00> : vector<32x128xf32>
    %83 = tpu.matmul %80, %82, %cst_35 {dimension_numbers = #tpu.dot_dimension_numbers<[1], [0], [0], [1], [0, 0, 1, 1], [], []>} : vector<32x128xbf16>, vector<128x128xbf16>, vector<32x128xf32> -> vector<32x128xf32>
    %c7 = arith.constant 7 : index
    %c0_36 = arith.constant 0 : index
    %84 = vector.load %arg5[%c7, %c0_36] : memref<12x128xf32, #tpu.memory_space<vmem>>, vector<1x128xf32>
    %85 = vector.broadcast %84 : vector<1x128xf32> to vector<32x128xf32>
    %86 = arith.addf %83, %85 : vector<32x128xf32>
    %c8 = arith.constant 8 : index
    %c0_37 = arith.constant 0 : index
    %87 = vector.load %arg5[%c8, %c0_37] : memref<12x128xf32, #tpu.memory_space<vmem>>, vector<1x128xf32>
    %c9 = arith.constant 9 : index
    %c0_38 = arith.constant 0 : index
    %88 = vector.load %arg5[%c9, %c0_38] : memref<12x128xf32, #tpu.memory_space<vmem>>, vector<1x128xf32>
    %cst_39 = arith.constant dense<0.000000e+00> : vector<32xf32>
    %89 = vector.multi_reduction <add>, %86, %cst_39 [1] : vector<32x128xf32> to vector<32xf32>
    %90 = vector.shape_cast %89 : vector<32xf32> to vector<32x1xf32>
    %91 = arith.mulf %86, %86 : vector<32x128xf32>
    %cst_40 = arith.constant dense<0.000000e+00> : vector<32xf32>
    %92 = vector.multi_reduction <add>, %91, %cst_40 [1] : vector<32x128xf32> to vector<32xf32>
    %93 = vector.shape_cast %92 : vector<32xf32> to vector<32x1xf32>
    %cst_41 = arith.constant 7.812500e-03 : f32
    %94 = vector.broadcast %cst_41 : f32 to vector<32x1xf32>
    %95 = arith.mulf %90, %94 : vector<32x1xf32>
    %cst_42 = arith.constant 7.812500e-03 : f32
    %96 = vector.broadcast %cst_42 : f32 to vector<32x1xf32>
    %97 = arith.mulf %93, %96 : vector<32x1xf32>
    %98 = arith.mulf %95, %95 : vector<32x1xf32>
    %99 = arith.subf %97, %98 : vector<32x1xf32>
    %cst_43 = arith.constant 0.000000e+00 : f32
    %100 = vector.broadcast %cst_43 : f32 to vector<32x1xf32>
    %101 = arith.maximumf %99, %100 : vector<32x1xf32>
    %102 = vector.broadcast %95 : vector<32x1xf32> to vector<32x128xf32>
    %103 = arith.subf %86, %102 : vector<32x128xf32>
    %cst_44 = arith.constant 9.99999974E-6 : f32
    %104 = vector.broadcast %cst_44 : f32 to vector<32x1xf32>
    %105 = arith.addf %101, %104 : vector<32x1xf32>
    %106 = math.rsqrt %105 : vector<32x1xf32>
    %107 = vector.broadcast %106 : vector<32x1xf32> to vector<32x128xf32>
    %108 = arith.mulf %103, %107 : vector<32x128xf32>
    %109 = vector.broadcast %87 : vector<1x128xf32> to vector<32x128xf32>
    %110 = arith.mulf %108, %109 : vector<32x128xf32>
    %111 = vector.broadcast %88 : vector<1x128xf32> to vector<32x128xf32>
    %112 = arith.addf %110, %111 : vector<32x128xf32>
    %cst_45 = arith.constant 0.000000e+00 : f32
    %113 = vector.broadcast %cst_45 : f32 to vector<32x128xf32>
    %114 = arith.maximumf %112, %113 : vector<32x128xf32>
    %c10 = arith.constant 10 : index
    %c0_46 = arith.constant 0 : index
    %115 = vector.load %arg5[%c10, %c0_46] : memref<12x128xf32, #tpu.memory_space<vmem>>, vector<1x128xf32>
    %116 = vector.broadcast %115 : vector<1x128xf32> to vector<32x128xf32>
    %117 = arith.mulf %114, %116 : vector<32x128xf32>
    %cst_47 = arith.constant dense<0.000000e+00> : vector<32xf32>
    %118 = vector.multi_reduction <add>, %117, %cst_47 [1] : vector<32x128xf32> to vector<32xf32>
    %119 = vector.shape_cast %118 : vector<32xf32> to vector<32x1xf32>
    %c11 = arith.constant 11 : index
    %c0_48 = arith.constant 0 : index
    %120 = vector.load %arg5[%c11, %c0_48] : memref<12x128xf32, #tpu.memory_space<vmem>>, vector<1x1xf32>
    %121 = vector.broadcast %120 : vector<1x1xf32> to vector<32x1xf32>
    %122 = arith.addf %119, %121 : vector<32x1xf32>
    %123 = vector.broadcast %122 : vector<32x1xf32> to vector<32x3xf32>
    %124 = arith.mulf %0, %123 : vector<32x3xf32>
    %c0_49 = arith.constant 0 : index
    %c0_50 = arith.constant 0 : index
    %125 = vector.load %arg7[%c0_49, %c0_50] : memref<32x3xf32, #tpu.memory_space<vmem>>, vector<32x3xf32>
    tpu.vector_store %arg7[%c0_49, %c0_50], %124 {strides = array<i32>} : memref<32x3xf32, #tpu.memory_space<vmem>>, vector<32x3xf32>,
    return
  }
  func.func @transform_0(%arg0: i32) -> (i32, i32) {
    %c0_i32 = arith.constant 0 : i32
    %c0_i32_0 = arith.constant 0 : i32
    return %arg0, %c0_i32 : i32, i32
  }
  func.func @transform_1(%arg0: i32) -> (i32, i32) {
    %c0_i32 = arith.constant 0 : i32
    %c0_i32_0 = arith.constant 0 : i32
    return %arg0, %c0_i32 : i32, i32
  }
  func.func @transform_2(%arg0: i32) -> (i32, i32) {
    %c0_i32 = arith.constant 0 : i32
    %c0_i32_0 = arith.constant 0 : i32
    return %arg0, %c0_i32 : i32, i32
  }
  func.func @transform_3(%arg0: i32) -> (i32, i32) {
    %c0_i32 = arith.constant 0 : i32
    %c0_i32_0 = arith.constant 0 : i32
    %c0_i32_1 = arith.constant 0 : i32
    return %c0_i32, %c0_i32_0 : i32, i32
  }
  func.func @transform_4(%arg0: i32) -> (i32, i32) {
    %c0_i32 = arith.constant 0 : i32
    %c0_i32_0 = arith.constant 0 : i32
    %c0_i32_1 = arith.constant 0 : i32
    return %c0_i32, %c0_i32_0 : i32, i32
  }
  func.func @transform_5(%arg0: i32) -> (i32, i32) {
    %c0_i32 = arith.constant 0 : i32
    %c0_i32_0 = arith.constant 0 : i32
    return %arg0, %c0_i32 : i32, i32
  }
  func.func @transform_6(%arg0: i32) -> (i32, i32) {
    %c0_i32 = arith.constant 0 : i32
    %c0_i32_0 = arith.constant 0 : i32
    return %arg0, %c0_i32 : i32, i32
  }
}

module attributes {stable_mosaic.version = 11 : i64} {
  func.func @update_kernel(%arg0: i32, %arg1: memref<32x128xbf16, #tpu.memory_space<vmem>>, %arg2: memref<32x128xf32, #tpu.memory_space<vmem>>, %arg3: memref<384x128xbf16, #tpu.memory_space<vmem>>, %arg4: memref<6x128xf32, #tpu.memory_space<vmem>>, %arg5: memref<32x128xbf16, #tpu.memory_space<vmem>>) attributes {dimension_semantics = [#tpu.dimension_semantics<parallel>], iteration_bounds = array<i64: 1>, scalar_prefetch = 0 : i64, scratch_operands = 0 : i64, tpu.core_type = #tpu.core_type<tc>, window_params = [{transform_indices = @transform_0, window_bounds = array<i64: 32, 128>}, {transform_indices = @transform_1, window_bounds = array<i64: 32, 128>}, {pipeline_mode = #tpu.pipeline_mode<synchronous>, transform_indices = @transform_2, window_bounds = array<i64: 384, 128>}, {pipeline_mode = #tpu.pipeline_mode<synchronous>, transform_indices = @transform_3, window_bounds = array<i64: 6, 128>}, {transform_indices = @transform_4, window_bounds = array<i64: 32, 128>}]} {
    %c0 = arith.constant 0 : index
    %c0_0 = arith.constant 0 : index
    %0 = vector.load %arg1[%c0, %c0_0] : memref<32x128xbf16, #tpu.memory_space<vmem>>, vector<32x128xbf16>
    %c0_1 = arith.constant 0 : index
    %c0_2 = arith.constant 0 : index
    %1 = vector.load %arg2[%c0_1, %c0_2] : memref<32x128xf32, #tpu.memory_space<vmem>>, vector<32x128xf32>
    %2 = arith.truncf %1 : vector<32x128xf32> to vector<32x128xbf16>
    %3 = tpu.concatenate %0, %2 in 1 : vector<32x128xbf16>, vector<32x128xbf16> -> vector<32x256xbf16>
    %c0_3 = arith.constant 0 : index
    %c0_4 = arith.constant 0 : index
    %4 = vector.load %arg3[%c0_3, %c0_4] : memref<384x128xbf16, #tpu.memory_space<vmem>>, vector<256x128xbf16>
    %cst = arith.constant dense<0.000000e+00> : vector<32x128xf32>
    %5 = tpu.matmul %3, %4, %cst {dimension_numbers = #tpu.dot_dimension_numbers<[1], [0], [0], [1], [0, 0, 1, 1], [], []>} : vector<32x256xbf16>, vector<256x128xbf16>, vector<32x128xf32> -> vector<32x128xf32>
    %c0_5 = arith.constant 0 : index
    %c0_6 = arith.constant 0 : index
    %6 = vector.load %arg4[%c0_5, %c0_6] : memref<6x128xf32, #tpu.memory_space<vmem>>, vector<1x128xf32>
    %7 = vector.broadcast %6 : vector<1x128xf32> to vector<32x128xf32>
    %8 = arith.addf %5, %7 : vector<32x128xf32>
    %c1 = arith.constant 1 : index
    %c0_7 = arith.constant 0 : index
    %9 = vector.load %arg4[%c1, %c0_7] : memref<6x128xf32, #tpu.memory_space<vmem>>, vector<1x128xf32>
    %c2 = arith.constant 2 : index
    %c0_8 = arith.constant 0 : index
    %10 = vector.load %arg4[%c2, %c0_8] : memref<6x128xf32, #tpu.memory_space<vmem>>, vector<1x128xf32>
    %cst_9 = arith.constant dense<0.000000e+00> : vector<32xf32>
    %11 = vector.multi_reduction <add>, %8, %cst_9 [1] : vector<32x128xf32> to vector<32xf32>
    %12 = vector.shape_cast %11 : vector<32xf32> to vector<32x1xf32>
    %13 = arith.mulf %8, %8 : vector<32x128xf32>
    %cst_10 = arith.constant dense<0.000000e+00> : vector<32xf32>
    %14 = vector.multi_reduction <add>, %13, %cst_10 [1] : vector<32x128xf32> to vector<32xf32>
    %15 = vector.shape_cast %14 : vector<32xf32> to vector<32x1xf32>
    %cst_11 = arith.constant 7.812500e-03 : f32
    %16 = vector.broadcast %cst_11 : f32 to vector<32x1xf32>
    %17 = arith.mulf %12, %16 : vector<32x1xf32>
    %cst_12 = arith.constant 7.812500e-03 : f32
    %18 = vector.broadcast %cst_12 : f32 to vector<32x1xf32>
    %19 = arith.mulf %15, %18 : vector<32x1xf32>
    %20 = arith.mulf %17, %17 : vector<32x1xf32>
    %21 = arith.subf %19, %20 : vector<32x1xf32>
    %cst_13 = arith.constant 0.000000e+00 : f32
    %22 = vector.broadcast %cst_13 : f32 to vector<32x1xf32>
    %23 = arith.maximumf %21, %22 : vector<32x1xf32>
    %24 = vector.broadcast %17 : vector<32x1xf32> to vector<32x128xf32>
    %25 = arith.subf %8, %24 : vector<32x128xf32>
    %cst_14 = arith.constant 9.99999974E-6 : f32
    %26 = vector.broadcast %cst_14 : f32 to vector<32x1xf32>
    %27 = arith.addf %23, %26 : vector<32x1xf32>
    %28 = math.rsqrt %27 : vector<32x1xf32>
    %29 = vector.broadcast %28 : vector<32x1xf32> to vector<32x128xf32>
    %30 = arith.mulf %25, %29 : vector<32x128xf32>
    %31 = vector.broadcast %9 : vector<1x128xf32> to vector<32x128xf32>
    %32 = arith.mulf %30, %31 : vector<32x128xf32>
    %33 = vector.broadcast %10 : vector<1x128xf32> to vector<32x128xf32>
    %34 = arith.addf %32, %33 : vector<32x128xf32>
    %cst_15 = arith.constant 0.000000e+00 : f32
    %35 = vector.broadcast %cst_15 : f32 to vector<32x128xf32>
    %36 = arith.maximumf %34, %35 : vector<32x128xf32>
    %37 = arith.truncf %36 : vector<32x128xf32> to vector<32x128xbf16>
    %c256 = arith.constant 256 : index
    %c0_16 = arith.constant 0 : index
    %38 = vector.load %arg3[%c256, %c0_16] : memref<384x128xbf16, #tpu.memory_space<vmem>>, vector<128x128xbf16>
    %cst_17 = arith.constant dense<0.000000e+00> : vector<32x128xf32>
    %39 = tpu.matmul %37, %38, %cst_17 {dimension_numbers = #tpu.dot_dimension_numbers<[1], [0], [0], [1], [0, 0, 1, 1], [], []>} : vector<32x128xbf16>, vector<128x128xbf16>, vector<32x128xf32> -> vector<32x128xf32>
    %c3 = arith.constant 3 : index
    %c0_18 = arith.constant 0 : index
    %40 = vector.load %arg4[%c3, %c0_18] : memref<6x128xf32, #tpu.memory_space<vmem>>, vector<1x128xf32>
    %41 = vector.broadcast %40 : vector<1x128xf32> to vector<32x128xf32>
    %42 = arith.addf %39, %41 : vector<32x128xf32>
    %c4 = arith.constant 4 : index
    %c0_19 = arith.constant 0 : index
    %43 = vector.load %arg4[%c4, %c0_19] : memref<6x128xf32, #tpu.memory_space<vmem>>, vector<1x128xf32>
    %c5 = arith.constant 5 : index
    %c0_20 = arith.constant 0 : index
    %44 = vector.load %arg4[%c5, %c0_20] : memref<6x128xf32, #tpu.memory_space<vmem>>, vector<1x128xf32>
    %cst_21 = arith.constant dense<0.000000e+00> : vector<32xf32>
    %45 = vector.multi_reduction <add>, %42, %cst_21 [1] : vector<32x128xf32> to vector<32xf32>
    %46 = vector.shape_cast %45 : vector<32xf32> to vector<32x1xf32>
    %47 = arith.mulf %42, %42 : vector<32x128xf32>
    %cst_22 = arith.constant dense<0.000000e+00> : vector<32xf32>
    %48 = vector.multi_reduction <add>, %47, %cst_22 [1] : vector<32x128xf32> to vector<32xf32>
    %49 = vector.shape_cast %48 : vector<32xf32> to vector<32x1xf32>
    %cst_23 = arith.constant 7.812500e-03 : f32
    %50 = vector.broadcast %cst_23 : f32 to vector<32x1xf32>
    %51 = arith.mulf %46, %50 : vector<32x1xf32>
    %cst_24 = arith.constant 7.812500e-03 : f32
    %52 = vector.broadcast %cst_24 : f32 to vector<32x1xf32>
    %53 = arith.mulf %49, %52 : vector<32x1xf32>
    %54 = arith.mulf %51, %51 : vector<32x1xf32>
    %55 = arith.subf %53, %54 : vector<32x1xf32>
    %cst_25 = arith.constant 0.000000e+00 : f32
    %56 = vector.broadcast %cst_25 : f32 to vector<32x1xf32>
    %57 = arith.maximumf %55, %56 : vector<32x1xf32>
    %58 = vector.broadcast %51 : vector<32x1xf32> to vector<32x128xf32>
    %59 = arith.subf %42, %58 : vector<32x128xf32>
    %cst_26 = arith.constant 9.99999974E-6 : f32
    %60 = vector.broadcast %cst_26 : f32 to vector<32x1xf32>
    %61 = arith.addf %57, %60 : vector<32x1xf32>
    %62 = math.rsqrt %61 : vector<32x1xf32>
    %63 = vector.broadcast %62 : vector<32x1xf32> to vector<32x128xf32>
    %64 = arith.mulf %59, %63 : vector<32x128xf32>
    %65 = vector.broadcast %43 : vector<1x128xf32> to vector<32x128xf32>
    %66 = arith.mulf %64, %65 : vector<32x128xf32>
    %67 = vector.broadcast %44 : vector<1x128xf32> to vector<32x128xf32>
    %68 = arith.addf %66, %67 : vector<32x128xf32>
    %cst_27 = arith.constant 0.000000e+00 : f32
    %69 = vector.broadcast %cst_27 : f32 to vector<32x128xf32>
    %70 = arith.maximumf %68, %69 : vector<32x128xf32>
    %71 = arith.extf %0 : vector<32x128xbf16> to vector<32x128xf32>
    %72 = arith.addf %70, %71 : vector<32x128xf32>
    %73 = arith.truncf %72 : vector<32x128xf32> to vector<32x128xbf16>
    %c0_28 = arith.constant 0 : index
    %c0_29 = arith.constant 0 : index
    %74 = vector.load %arg5[%c0_28, %c0_29] : memref<32x128xbf16, #tpu.memory_space<vmem>>, vector<32x128xbf16>
    tpu.vector_store %arg5[%c0_28, %c0_29], %73 {strides = array<i32>} : memref<32x128xbf16, #tpu.memory_space<vmem>>, vector<32x128xbf16>,
    return
  }
  func.func @transform_0(%arg0: i32) -> (i32, i32) {
    %c0_i32 = arith.constant 0 : i32
    %c0_i32_0 = arith.constant 0 : i32
    return %arg0, %c0_i32 : i32, i32
  }
  func.func @transform_1(%arg0: i32) -> (i32, i32) {
    %c0_i32 = arith.constant 0 : i32
    %c0_i32_0 = arith.constant 0 : i32
    return %arg0, %c0_i32 : i32, i32
  }
  func.func @transform_2(%arg0: i32) -> (i32, i32) {
    %c0_i32 = arith.constant 0 : i32
    %c0_i32_0 = arith.constant 0 : i32
    %c0_i32_1 = arith.constant 0 : i32
    return %c0_i32, %c0_i32_0 : i32, i32
  }
  func.func @transform_3(%arg0: i32) -> (i32, i32) {
    %c0_i32 = arith.constant 0 : i32
    %c0_i32_0 = arith.constant 0 : i32
    %c0_i32_1 = arith.constant 0 : i32
    return %c0_i32, %c0_i32_0 : i32, i32
  }
  func.func @transform_4(%arg0: i32) -> (i32, i32) {
    %c0_i32 = arith.constant 0 : i32
    %c0_i32_0 = arith.constant 0 : i32
    return %arg0, %c0_i32 : i32, i32
  }
}

module attributes {stable_mosaic.version = 11 : i64} {
  func.func @message_kernel(%arg0: i32, %arg1: memref<32x128xbf16, #tpu.memory_space<vmem>>, %arg2: memref<32x128xbf16, #tpu.memory_space<vmem>>, %arg3: memref<32x3xf32, #tpu.memory_space<vmem>>, %arg4: memref<512x128xbf16, #tpu.memory_space<vmem>>, %arg5: memref<12x128xf32, #tpu.memory_space<vmem>>, %arg6: memref<32x128xbf16, #tpu.memory_space<vmem>>, %arg7: memref<32x3xf32, #tpu.memory_space<vmem>>) attributes {dimension_semantics = [#tpu.dimension_semantics<parallel>], iteration_bounds = array<i64: 1>, scalar_prefetch = 0 : i64, scratch_operands = 0 : i64, tpu.core_type = #tpu.core_type<tc>, window_params = [{transform_indices = @transform_0, window_bounds = array<i64: 32, 128>}, {transform_indices = @transform_1, window_bounds = array<i64: 32, 128>}, {transform_indices = @transform_2, window_bounds = array<i64: 32, 3>}, {pipeline_mode = #tpu.pipeline_mode<synchronous>, transform_indices = @transform_3, window_bounds = array<i64: 512, 128>}, {pipeline_mode = #tpu.pipeline_mode<synchronous>, transform_indices = @transform_4, window_bounds = array<i64: 12, 128>}, {transform_indices = @transform_5, window_bounds = array<i64: 32, 128>}, {transform_indices = @transform_6, window_bounds = array<i64: 32, 3>}]} {
    %c0 = arith.constant 0 : index
    %c0_0 = arith.constant 0 : index
    %0 = vector.load %arg3[%c0, %c0_0] : memref<32x3xf32, #tpu.memory_space<vmem>>, vector<32x3xf32>
    %1 = arith.mulf %0, %0 : vector<32x3xf32>
    %cst = arith.constant dense<0.000000e+00> : vector<32xf32>
    %2 = vector.multi_reduction <add>, %1, %cst [1] : vector<32x3xf32> to vector<32xf32>
    %3 = vector.shape_cast %2 : vector<32xf32> to vector<32x1xf32>
    %4 = math.sqrt %3 : vector<32x1xf32>
    %c0_1 = arith.constant 0 : index
    %c0_2 = arith.constant 0 : index
    %5 = vector.load %arg1[%c0_1, %c0_2] : memref<32x128xbf16, #tpu.memory_space<vmem>>, vector<32x128xbf16>
    %c0_3 = arith.constant 0 : index
    %c0_4 = arith.constant 0 : index
    %6 = vector.load %arg2[%c0_3, %c0_4] : memref<32x128xbf16, #tpu.memory_space<vmem>>, vector<32x128xbf16>
    %7 = tpu.concatenate %5, %6 in 1 : vector<32x128xbf16>, vector<32x128xbf16> -> vector<32x256xbf16>
    %c0_5 = arith.constant 0 : index
    %c0_6 = arith.constant 0 : index
    %8 = vector.load %arg4[%c0_5, %c0_6] : memref<512x128xbf16, #tpu.memory_space<vmem>>, vector<256x128xbf16>
    %cst_7 = arith.constant dense<0.000000e+00> : vector<32x128xf32>
    %9 = tpu.matmul %7, %8, %cst_7 {dimension_numbers = #tpu.dot_dimension_numbers<[1], [0], [0], [1], [0, 0, 1, 1], [], []>} : vector<32x256xbf16>, vector<256x128xbf16>, vector<32x128xf32> -> vector<32x128xf32>
    %c0_8 = arith.constant 0 : index
    %c0_9 = arith.constant 0 : index
    %10 = vector.load %arg5[%c0_8, %c0_9] : memref<12x128xf32, #tpu.memory_space<vmem>>, vector<1x128xf32>
    %11 = vector.broadcast %4 : vector<32x1xf32> to vector<32x128xf32>
    %12 = vector.broadcast %10 : vector<1x128xf32> to vector<32x128xf32>
    %13 = arith.mulf %11, %12 : vector<32x128xf32>
    %14 = arith.addf %9, %13 : vector<32x128xf32>
    %c1 = arith.constant 1 : index
    %c0_10 = arith.constant 0 : index
    %15 = vector.load %arg5[%c1, %c0_10] : memref<12x128xf32, #tpu.memory_space<vmem>>, vector<1x128xf32>
    %16 = vector.broadcast %15 : vector<1x128xf32> to vector<32x128xf32>
    %17 = arith.addf %14, %16 : vector<32x128xf32>
    %c2 = arith.constant 2 : index
    %c0_11 = arith.constant 0 : index
    %18 = vector.load %arg5[%c2, %c0_11] : memref<12x128xf32, #tpu.memory_space<vmem>>, vector<1x128xf32>
    %c3 = arith.constant 3 : index
    %c0_12 = arith.constant 0 : index
    %19 = vector.load %arg5[%c3, %c0_12] : memref<12x128xf32, #tpu.memory_space<vmem>>, vector<1x128xf32>
    %cst_13 = arith.constant dense<0.000000e+00> : vector<32xf32>
    %20 = vector.multi_reduction <add>, %17, %cst_13 [1] : vector<32x128xf32> to vector<32xf32>
    %21 = vector.shape_cast %20 : vector<32xf32> to vector<32x1xf32>
    %22 = arith.mulf %17, %17 : vector<32x128xf32>
    %cst_14 = arith.constant dense<0.000000e+00> : vector<32xf32>
    %23 = vector.multi_reduction <add>, %22, %cst_14 [1] : vector<32x128xf32> to vector<32xf32>
    %24 = vector.shape_cast %23 : vector<32xf32> to vector<32x1xf32>
    %cst_15 = arith.constant 7.812500e-03 : f32
    %25 = vector.broadcast %cst_15 : f32 to vector<32x1xf32>
    %26 = arith.mulf %21, %25 : vector<32x1xf32>
    %cst_16 = arith.constant 7.812500e-03 : f32
    %27 = vector.broadcast %cst_16 : f32 to vector<32x1xf32>
    %28 = arith.mulf %24, %27 : vector<32x1xf32>
    %29 = arith.mulf %26, %26 : vector<32x1xf32>
    %30 = arith.subf %28, %29 : vector<32x1xf32>
    %cst_17 = arith.constant 0.000000e+00 : f32
    %31 = vector.broadcast %cst_17 : f32 to vector<32x1xf32>
    %32 = arith.maximumf %30, %31 : vector<32x1xf32>
    %33 = vector.broadcast %26 : vector<32x1xf32> to vector<32x128xf32>
    %34 = arith.subf %17, %33 : vector<32x128xf32>
    %cst_18 = arith.constant 9.99999974E-6 : f32
    %35 = vector.broadcast %cst_18 : f32 to vector<32x1xf32>
    %36 = arith.addf %32, %35 : vector<32x1xf32>
    %37 = math.rsqrt %36 : vector<32x1xf32>
    %38 = vector.broadcast %37 : vector<32x1xf32> to vector<32x128xf32>
    %39 = arith.mulf %34, %38 : vector<32x128xf32>
    %40 = vector.broadcast %18 : vector<1x128xf32> to vector<32x128xf32>
    %41 = arith.mulf %39, %40 : vector<32x128xf32>
    %42 = vector.broadcast %19 : vector<1x128xf32> to vector<32x128xf32>
    %43 = arith.addf %41, %42 : vector<32x128xf32>
    %cst_19 = arith.constant 0.000000e+00 : f32
    %44 = vector.broadcast %cst_19 : f32 to vector<32x128xf32>
    %45 = arith.maximumf %43, %44 : vector<32x128xf32>
    %46 = arith.truncf %45 : vector<32x128xf32> to vector<32x128xbf16>
    %c256 = arith.constant 256 : index
    %c0_20 = arith.constant 0 : index
    %47 = vector.load %arg4[%c256, %c0_20] : memref<512x128xbf16, #tpu.memory_space<vmem>>, vector<128x128xbf16>
    %cst_21 = arith.constant dense<0.000000e+00> : vector<32x128xf32>
    %48 = tpu.matmul %46, %47, %cst_21 {dimension_numbers = #tpu.dot_dimension_numbers<[1], [0], [0], [1], [0, 0, 1, 1], [], []>} : vector<32x128xbf16>, vector<128x128xbf16>, vector<32x128xf32> -> vector<32x128xf32>
    %c4 = arith.constant 4 : index
    %c0_22 = arith.constant 0 : index
    %49 = vector.load %arg5[%c4, %c0_22] : memref<12x128xf32, #tpu.memory_space<vmem>>, vector<1x128xf32>
    %50 = vector.broadcast %49 : vector<1x128xf32> to vector<32x128xf32>
    %51 = arith.addf %48, %50 : vector<32x128xf32>
    %c5 = arith.constant 5 : index
    %c0_23 = arith.constant 0 : index
    %52 = vector.load %arg5[%c5, %c0_23] : memref<12x128xf32, #tpu.memory_space<vmem>>, vector<1x128xf32>
    %c6 = arith.constant 6 : index
    %c0_24 = arith.constant 0 : index
    %53 = vector.load %arg5[%c6, %c0_24] : memref<12x128xf32, #tpu.memory_space<vmem>>, vector<1x128xf32>
    %cst_25 = arith.constant dense<0.000000e+00> : vector<32xf32>
    %54 = vector.multi_reduction <add>, %51, %cst_25 [1] : vector<32x128xf32> to vector<32xf32>
    %55 = vector.shape_cast %54 : vector<32xf32> to vector<32x1xf32>
    %56 = arith.mulf %51, %51 : vector<32x128xf32>
    %cst_26 = arith.constant dense<0.000000e+00> : vector<32xf32>
    %57 = vector.multi_reduction <add>, %56, %cst_26 [1] : vector<32x128xf32> to vector<32xf32>
    %58 = vector.shape_cast %57 : vector<32xf32> to vector<32x1xf32>
    %cst_27 = arith.constant 7.812500e-03 : f32
    %59 = vector.broadcast %cst_27 : f32 to vector<32x1xf32>
    %60 = arith.mulf %55, %59 : vector<32x1xf32>
    %cst_28 = arith.constant 7.812500e-03 : f32
    %61 = vector.broadcast %cst_28 : f32 to vector<32x1xf32>
    %62 = arith.mulf %58, %61 : vector<32x1xf32>
    %63 = arith.mulf %60, %60 : vector<32x1xf32>
    %64 = arith.subf %62, %63 : vector<32x1xf32>
    %cst_29 = arith.constant 0.000000e+00 : f32
    %65 = vector.broadcast %cst_29 : f32 to vector<32x1xf32>
    %66 = arith.maximumf %64, %65 : vector<32x1xf32>
    %67 = vector.broadcast %60 : vector<32x1xf32> to vector<32x128xf32>
    %68 = arith.subf %51, %67 : vector<32x128xf32>
    %cst_30 = arith.constant 9.99999974E-6 : f32
    %69 = vector.broadcast %cst_30 : f32 to vector<32x1xf32>
    %70 = arith.addf %66, %69 : vector<32x1xf32>
    %71 = math.rsqrt %70 : vector<32x1xf32>
    %72 = vector.broadcast %71 : vector<32x1xf32> to vector<32x128xf32>
    %73 = arith.mulf %68, %72 : vector<32x128xf32>
    %74 = vector.broadcast %52 : vector<1x128xf32> to vector<32x128xf32>
    %75 = arith.mulf %73, %74 : vector<32x128xf32>
    %76 = vector.broadcast %53 : vector<1x128xf32> to vector<32x128xf32>
    %77 = arith.addf %75, %76 : vector<32x128xf32>
    %cst_31 = arith.constant 0.000000e+00 : f32
    %78 = vector.broadcast %cst_31 : f32 to vector<32x128xf32>
    %79 = arith.maximumf %77, %78 : vector<32x128xf32>
    %80 = arith.truncf %79 : vector<32x128xf32> to vector<32x128xbf16>
    %c0_32 = arith.constant 0 : index
    %c0_33 = arith.constant 0 : index
    %81 = vector.load %arg6[%c0_32, %c0_33] : memref<32x128xbf16, #tpu.memory_space<vmem>>, vector<32x128xbf16>
    tpu.vector_store %arg6[%c0_32, %c0_33], %80 {strides = array<i32>} : memref<32x128xbf16, #tpu.memory_space<vmem>>, vector<32x128xbf16>,
    %c384 = arith.constant 384 : index
    %c0_34 = arith.constant 0 : index
    %82 = vector.load %arg4[%c384, %c0_34] : memref<512x128xbf16, #tpu.memory_space<vmem>>, vector<128x128xbf16>
    %cst_35 = arith.constant dense<0.000000e+00> : vector<32x128xf32>
    %83 = tpu.matmul %80, %82, %cst_35 {dimension_numbers = #tpu.dot_dimension_numbers<[1], [0], [0], [1], [0, 0, 1, 1], [], []>} : vector<32x128xbf16>, vector<128x128xbf16>, vector<32x128xf32> -> vector<32x128xf32>
    %c7 = arith.constant 7 : index
    %c0_36 = arith.constant 0 : index
    %84 = vector.load %arg5[%c7, %c0_36] : memref<12x128xf32, #tpu.memory_space<vmem>>, vector<1x128xf32>
    %85 = vector.broadcast %84 : vector<1x128xf32> to vector<32x128xf32>
    %86 = arith.addf %83, %85 : vector<32x128xf32>
    %c8 = arith.constant 8 : index
    %c0_37 = arith.constant 0 : index
    %87 = vector.load %arg5[%c8, %c0_37] : memref<12x128xf32, #tpu.memory_space<vmem>>, vector<1x128xf32>
    %c9 = arith.constant 9 : index
    %c0_38 = arith.constant 0 : index
    %88 = vector.load %arg5[%c9, %c0_38] : memref<12x128xf32, #tpu.memory_space<vmem>>, vector<1x128xf32>
    %cst_39 = arith.constant dense<0.000000e+00> : vector<32xf32>
    %89 = vector.multi_reduction <add>, %86, %cst_39 [1] : vector<32x128xf32> to vector<32xf32>
    %90 = vector.shape_cast %89 : vector<32xf32> to vector<32x1xf32>
    %91 = arith.mulf %86, %86 : vector<32x128xf32>
    %cst_40 = arith.constant dense<0.000000e+00> : vector<32xf32>
    %92 = vector.multi_reduction <add>, %91, %cst_40 [1] : vector<32x128xf32> to vector<32xf32>
    %93 = vector.shape_cast %92 : vector<32xf32> to vector<32x1xf32>
    %cst_41 = arith.constant 7.812500e-03 : f32
    %94 = vector.broadcast %cst_41 : f32 to vector<32x1xf32>
    %95 = arith.mulf %90, %94 : vector<32x1xf32>
    %cst_42 = arith.constant 7.812500e-03 : f32
    %96 = vector.broadcast %cst_42 : f32 to vector<32x1xf32>
    %97 = arith.mulf %93, %96 : vector<32x1xf32>
    %98 = arith.mulf %95, %95 : vector<32x1xf32>
    %99 = arith.subf %97, %98 : vector<32x1xf32>
    %cst_43 = arith.constant 0.000000e+00 : f32
    %100 = vector.broadcast %cst_43 : f32 to vector<32x1xf32>
    %101 = arith.maximumf %99, %100 : vector<32x1xf32>
    %102 = vector.broadcast %95 : vector<32x1xf32> to vector<32x128xf32>
    %103 = arith.subf %86, %102 : vector<32x128xf32>
    %cst_44 = arith.constant 9.99999974E-6 : f32
    %104 = vector.broadcast %cst_44 : f32 to vector<32x1xf32>
    %105 = arith.addf %101, %104 : vector<32x1xf32>
    %106 = math.rsqrt %105 : vector<32x1xf32>
    %107 = vector.broadcast %106 : vector<32x1xf32> to vector<32x128xf32>
    %108 = arith.mulf %103, %107 : vector<32x128xf32>
    %109 = vector.broadcast %87 : vector<1x128xf32> to vector<32x128xf32>
    %110 = arith.mulf %108, %109 : vector<32x128xf32>
    %111 = vector.broadcast %88 : vector<1x128xf32> to vector<32x128xf32>
    %112 = arith.addf %110, %111 : vector<32x128xf32>
    %cst_45 = arith.constant 0.000000e+00 : f32
    %113 = vector.broadcast %cst_45 : f32 to vector<32x128xf32>
    %114 = arith.maximumf %112, %113 : vector<32x128xf32>
    %c10 = arith.constant 10 : index
    %c0_46 = arith.constant 0 : index
    %115 = vector.load %arg5[%c10, %c0_46] : memref<12x128xf32, #tpu.memory_space<vmem>>, vector<1x128xf32>
    %116 = vector.broadcast %115 : vector<1x128xf32> to vector<32x128xf32>
    %117 = arith.mulf %114, %116 : vector<32x128xf32>
    %cst_47 = arith.constant dense<0.000000e+00> : vector<32xf32>
    %118 = vector.multi_reduction <add>, %117, %cst_47 [1] : vector<32x128xf32> to vector<32xf32>
    %119 = vector.shape_cast %118 : vector<32xf32> to vector<32x1xf32>
    %c11 = arith.constant 11 : index
    %c0_48 = arith.constant 0 : index
    %120 = vector.load %arg5[%c11, %c0_48] : memref<12x128xf32, #tpu.memory_space<vmem>>, vector<1x1xf32>
    %121 = vector.broadcast %120 : vector<1x1xf32> to vector<32x1xf32>
    %122 = arith.addf %119, %121 : vector<32x1xf32>
    %123 = vector.broadcast %122 : vector<32x1xf32> to vector<32x3xf32>
    %124 = arith.mulf %0, %123 : vector<32x3xf32>
    %c0_49 = arith.constant 0 : index
    %c0_50 = arith.constant 0 : index
    %125 = vector.load %arg7[%c0_49, %c0_50] : memref<32x3xf32, #tpu.memory_space<vmem>>, vector<32x3xf32>
    tpu.vector_store %arg7[%c0_49, %c0_50], %124 {strides = array<i32>} : memref<32x3xf32, #tpu.memory_space<vmem>>, vector<32x3xf32>,
    return
  }
  func.func @transform_0(%arg0: i32) -> (i32, i32) {
    %c0_i32 = arith.constant 0 : i32
    %c0_i32_0 = arith.constant 0 : i32
    return %arg0, %c0_i32 : i32, i32
  }
  func.func @transform_1(%arg0: i32) -> (i32, i32) {
    %c0_i32 = arith.constant 0 : i32
    %c0_i32_0 = arith.constant 0 : i32
    return %arg0, %c0_i32 : i32, i32
  }
  func.func @transform_2(%arg0: i32) -> (i32, i32) {
    %c0_i32 = arith.constant 0 : i32
    %c0_i32_0 = arith.constant 0 : i32
    return %arg0, %c0_i32 : i32, i32
  }
  func.func @transform_3(%arg0: i32) -> (i32, i32) {
    %c0_i32 = arith.constant 0 : i32
    %c0_i32_0 = arith.constant 0 : i32
    %c0_i32_1 = arith.constant 0 : i32
    return %c0_i32, %c0_i32_0 : i32, i32
  }
  func.func @transform_4(%arg0: i32) -> (i32, i32) {
    %c0_i32 = arith.constant 0 : i32
    %c0_i32_0 = arith.constant 0 : i32
    %c0_i32_1 = arith.constant 0 : i32
    return %c0_i32, %c0_i32_0 : i32, i32
  }
  func.func @transform_5(%arg0: i32) -> (i32, i32) {
    %c0_i32 = arith.constant 0 : i32
    %c0_i32_0 = arith.constant 0 : i32
    return %arg0, %c0_i32 : i32, i32
  }
  func.func @transform_6(%arg0: i32) -> (i32, i32) {
    %c0_i32 = arith.constant 0 : i32
    %c0_i32_0 = arith.constant 0 : i32
    return %arg0, %c0_i32 : i32, i32
  }
}

</mosaic_0001>

<bundles_post_ra>
// kernel: sub.3
= control target key start
LH: loop header
LB: loop body
LE: loop exit
PB: predicated region body
PF: predicated region fallthrough
CT: control target
= control target key end

     0   :  { %s100_s0 = inlined_call_operand.vmem [shape: f32[32,3], index: 0, kind: input, shape index: {}]   ;;  %s101_s1 = inlined_call_operand.vmem [shape: f32[32,3], index: 1, kind: input, shape index: {}]   ;;  %s102_s2 = inlined_call_operand.vmem [shape: f32[32,3], index: 2, kind: output, shape index: {}]  }
   0x1   :  { %v3_v0 = vld [vmem:[%s100_s0] sm:$0xff]  ;;  %v40_v2 = vld [vmem:[%s100_s0 + $0x8] sm:$0xff]  ;;  %v43_v5 = vld [vmem:[%s100_s0 + $0x10] sm:$0xff] }
   0x2   :  { %v4_v1 = vld [vmem:[%s101_s1] sm:$0xff]  ;;  %v41_v4 = vld [vmem:[%s101_s1 + $0x8] sm:$0xff]  ;;  %v44_v6 = vld [vmem:[%s101_s1 + $0x10] sm:$0xff] }
   0x3   :  { %v7_v3 = vsub.f32 %v3_v0, %v4_v1  ;;  %v16_v7 = vsub.f32 %v40_v2, %v41_v4  ;;  %v26_v8 = vsub.f32 %v43_v5, %v44_v6  ;;  %v46_v9 = vld [vmem:[%s100_s0 + $0x18] sm:$0xff] }
   0x4   :  { %v47_v10 = vld [vmem:[%s101_s1 + $0x18] sm:$0xff] }
   0x5   :  { %9 = vst [vmem:[%s102_s2] sm:$0xff] %v7_v3  ;;  %v36_v11 = vsub.f32 %v46_v9, %v47_v10 }
   0x6   :  { %42 = vst [vmem:[%s102_s2 + $0x8] sm:$0xff] %v16_v7 }
   0x7   :  { %45 = vst [vmem:[%s102_s2 + $0x10] sm:$0xff] %v26_v8 }
   0x8   :  { %48 = vst [vmem:[%s102_s2 + $0x18] sm:$0xff] %v36_v11 }

// kernel: egnn_forward.6
= control target key start
LH: loop header
LB: loop body
LE: loop exit
PB: predicated region body
PF: predicated region fallthrough
CT: control target
= control target key end

     0   :  { %vm30_vm0 = vcmask 23552   ;;  %s1468_s3 = inlined_call_operand.vmem [shape: bf16[512,128], index: 3, kind: input, shape index: {}]   ;;  %s1469_s2 = inlined_call_operand.vmem [shape: f32[32,3], index: 2, kind: input, shape index: {}]   ;;  %s1470_s4 = inlined_call_operand.vmem [shape: f32[12,128], index: 4, kind: input, shape index: {}]   ;;  %s1471_s0 = inlined_call_operand.vmem [shape: bf16[32,128], index: 0, kind: input, shape index: {}]   ;;  %s1472_s1 = inlined_call_operand.vmem [shape: bf16[32,128], index: 1, kind: input, shape index: {}]   ;;  %s1473_s5 = inlined_call_operand.vmem [shape: bf16[32,128], index: 5, kind: output, shape index: {0}]   ;;  %s1474_s6 = inlined_call_operand.vmem [shape: f32[32,3], index: 6, kind: output, shape index: {1}]  }
   0x1   :  { %v1028_v0 = vld [vmem:[%s1468_s3 + $0x38] sm:$0xff]  ;;  %v22_v2 = vld [vmem:[%s1469_s2] sm:$0xff]  ;;  %v1027_v4 = vld [vmem:[%s1468_s3 + $0x30] sm:$0xff] }
   0x2   :  { %v1036_v1 = vld [vmem:[%s1468_s3 + $0x78] sm:$0xff]  ;;  %v26_v3 = vmul.f32 %v22_v2, %v22_v2  ;;  %257 = vmatpush.bf16.msra.mxu0 %v1028_v0  ;;  %v1035_v5 = vld [vmem:[%s1468_s3 + $0x70] sm:$0xff]  ;;  %v23_v6 = vld [vmem:[%s1469_s2 + $0x8] sm:$0xff] }
   0x3   :  { %276 = vmatpush.bf16.msra.mxu1 %v1036_v1  ;;  %v24_v8 = vld [vmem:[%s1469_s2 + $0x10] sm:$0xff]  ;;  %v27_v10 = vmul.f32 %v23_v6, %v23_v6  ;;  %v25_v11 = vld [vmem:[%s1469_s2 + $0x18] sm:$0xff]  ;;  %v1026_v12 = vld [vmem:[%s1468_s3 + $0x28] sm:$0xff] }
   0x4   :  { %v31_v7 = vsel %vm30_vm0, %v26_v3, 0.0  ;;  %v28_v9 = vmul.f32 %v24_v8, %v24_v8  ;;  %v1034_v13 = vld [vmem:[%s1468_s3 + $0x68] sm:$0xff]  ;;  %v29_v15 = vmul.f32 %v25_v11, %v25_v11  ;;  %v1025_v17 = vld [vmem:[%s1468_s3 + $0x20] sm:$0xff]  ;;  %v1024_v20 = vld [vmem:[%s1468_s3 + $0x18] sm:$0xff] }
   0x5   :  { %32 = vadd.xlane.f32.xlu0 %v31_v7  ;;  %v34_v16 = vsel %vm30_vm0, %v27_v10, 0.0  ;;  %v1033_v18 = vld [vmem:[%s1468_s3 + $0x60] sm:$0xff]  ;;  %v1032_v21 = vld [vmem:[%s1468_s3 + $0x58] sm:$0xff]  ;;  %v1023_v22 = vld [vmem:[%s1468_s3 + $0x10] sm:$0xff] }
   0x6   :  { %258 = vmatpush.bf16.msra.mxu0 %v1027_v4  ;;  %v37_v14 = vsel %vm30_vm0, %v28_v9, 0.0  ;;  %v40_v19 = vsel %vm30_vm0, %v29_v15, 0.0  ;;  %v1031_v23 = vld [vmem:[%s1468_s3 + $0x50] sm:$0xff]  ;;  %v1022_v24 = vld [vmem:[%s1468_s3 + $0x8] sm:$0xff]  ;;  %v1021_v26 = vld [vmem:[%s1468_s3] sm:$0xff] }
   0x7   :  { %277 = vmatpush.bf16.msra.mxu1 %v1035_v5  ;;  %38 = vadd.xlane.f32.xlu1 %v37_v14  ;;  %v1030_v25 = vld [vmem:[%s1468_s3 + $0x48] sm:$0xff]  ;;  %v1029_v27 = vld [vmem:[%s1468_s3 + $0x40] sm:$0xff] }
   0x8   :  { %v1017_v28 = vld [vmem:[%s1471_s0] sm:$0xff]  ;;  %v1018_v30 = vld [vmem:[%s1471_s0 + $0x8] sm:$0xff] }
   0x9   :  { %v1019_v29 = vld [vmem:[%s1472_s1] sm:$0xff]  ;;  %v1020_v31 = vld [vmem:[%s1472_s1 + $0x8] sm:$0xff] }
   0xa   :  { %259 = vmatpush.bf16.msra.mxu0 %v1026_v12  ;;  %v1068_v57 = vld [vmem:[%s1470_s4] ss:$0 sm:$0xff]  ;;  %v1069_v2 = vld [vmem:[%s1470_s4 + $0x1] ss:$0 sm:$0xff] }
   0xb   :  { %278 = vmatpush.bf16.msra.mxu1 %v1034_v13 }
   0xd   :  { %35 = vadd.xlane.f32.xlu0 %v34_v16 }
   0xe   :  { %260 = vmatpush.bf16.msra.mxu0 %v1025_v17 }
   0xf   :  { %279 = vmatpush.bf16.msra.mxu1 %v1033_v18  ;;  %41 = vadd.xlane.f32.xlu1 %v40_v19 }
  0x12   :  { %261 = vmatpush.bf16.msra.mxu0 %v1024_v20 }
  0x13   :  { %280 = vmatpush.bf16.msra.mxu1 %v1032_v21 }
  0x16   :  { %262 = vmatpush.bf16.msra.mxu0 %v1023_v22 }
  0x17   :  { %281 = vmatpush.bf16.msra.mxu1 %v1031_v23 }
  0x1a   :  { %263 = vmatpush.bf16.msra.mxu0 %v1022_v24 }
  0x1b   :  { %282 = vmatpush.bf16.msra.mxu1 %v1030_v25 }
  0x1e   :  { %264 = vmatpush.bf16.msra.mxu0 %v1021_v26 }
  0x1f   :  { %283 = vmatpush.bf16.msra.mxu1 %v1029_v27 }
  0x21   :  { %265 = vmatmul.bf16.vlgmr.msra.gmra.mxu0 %v1017_v28 }
  0x22   :  { %284 = vmatmul.bf16.vlgmr.msra.gmra.mxu1 %v1019_v29 }
  0x31   :  { %270 = vmatmul.bf16.gmra.mxu0 %v1018_v30 }
  0x32   :  { %289 = vmatmul.bf16.gmra.mxu1 %v1020_v31 }
  0x78   :  { %v33_v32 = vpop.xlane.xlu0 %32 }
  0x79   :  { %1080 = vrsqrt.f32 %v33_v32  ;;  %vm50_vm1 = vcmp.eq.f32.partialorder %v33_v32, inf  ;;  %v53_v56 = vand.u32 2147483648, %v33_v32  ;;  %vm52_vm2 = vcmp.eq.f32.partialorder %v33_v32, 0.0 }
  0x7a   :  { %v39_v36 = vpop.xlane.xlu1 %38 }
  0x7b   :  { %vm74_vm5 = vcmp.eq.f32.partialorder %v39_v36, inf  ;;  %v77_v16 = vand.u32 2147483648, %v39_v36  ;;  %vm76_vm6 = vcmp.eq.f32.partialorder %v39_v36, 0.0 }
  0x7f   :  { %v1081_v33 = vpop.eup %1080 }
  0x80   :  { %v44_v34 = vmul.f32 %v1081_v33, %v33_v32  ;;  %v36_v35 = vpop.xlane.xlu0 %35 }
  0x81   :  { %1082 = vrsqrt.f32 %v36_v35  ;;  %vm62_vm3 = vcmp.eq.f32.partialorder %v36_v35, inf  ;;  %v65_v6 = vand.u32 2147483648, %v36_v35  ;;  %vm64_vm4 = vcmp.eq.f32.partialorder %v36_v35, 0.0 }
  0x82   :  { %v45_v37 = vmul.f32 %v1081_v33, %v44_v34  ;;  %1084 = vrsqrt.f32 %v39_v36  ;;  %v1228_v41 = vpop.xlane.xlu1 %41 }
  0x83   :  { %1086 = vrsqrt.f32 %v1228_v41  ;;  %vm86_vm7 = vcmp.eq.f32.partialorder %v1228_v41, inf  ;;  %v89_v28 = vand.u32 2147483648, %v1228_v41  ;;  %vm88_vm8 = vcmp.eq.f32.partialorder %v1228_v41, 0.0 }
  0x84   :  { %v46_v40 = vmul.f32 0.5, %v45_v37 }
  0x86   :  { %v47_v42 = vsub.f32 1.5, %v46_v40 }
  0x87   :  { %v1083_v38 = vpop.eup %1082 }
  0x88   :  { %v56_v39 = vmul.f32 %v1083_v38, %v36_v35  ;;  %v1085_v44 = vpop.eup %1084  ;;  %v48_v46 = vmul.f32 %v1081_v33, %v47_v42  ;;  %v1044_v42 = vld [vmem:[%s1468_s3 + $0xb8] sm:$0xff] }
  0x89   :  { %v68_v45 = vmul.f32 %v1085_v44, %v39_v36  ;;  %v1087_v51 = vpop.eup %1086  ;;  %477 = vmatpush.bf16.msra.mxu2 %v1044_v42  ;;  %v1071_v42 = vld [vmem:[%s1470_s4 + $0x3] ss:$0 sm:$0xff] }
  0x8a   :  { %v57_v43 = vmul.f32 %v1083_v38, %v56_v39  ;;  %v49_v48 = vmul.f32 %v48_v46, %v33_v32  ;;  %v80_v52 = vmul.f32 %v1087_v51, %v1228_v41  ;;  %v1040_v46 = vld [vmem:[%s1468_s3 + $0x98] sm:$0xff] }
  0x8b   :  { %v69_v50 = vmul.f32 %v1085_v44, %v68_v45  ;;  %v1041_v45 = vld [vmem:[%s1468_s3 + $0xa0] sm:$0xff] }
  0x8c   :  { %v58_v47 = vmul.f32 0.5, %v57_v43  ;;  %v51_v53 = vsel %vm50_vm1, %v33_v32, %v49_v48  ;;  %v81_v61 = vmul.f32 %v1087_v51, %v80_v52  ;;  %v1043_v43 = vld [vmem:[%s1468_s3 + $0xb0] sm:$0xff] }
  0x8d   :  { %v70_v55 = vmul.f32 0.5, %v69_v50  ;;  %v54_v58 = vsel %vm52_vm2, %v53_v56, %v51_v53  ;;  %478 = vmatpush.bf16.msra.mxu2 %v1043_v43  ;;  %v1039_v52 = vld [vmem:[%s1468_s3 + $0x90] sm:$0xff] }
  0x8e   :  { %v59_v49 = vsub.f32 1.5, %v58_v47  ;;  %v157_v62 = vmul.f32 %v1068_v57, %v54_v58  ;;  %v82_v5 = vmul.f32 0.5, %v81_v61  ;;  %v1037_v61 = vld [vmem:[%s1468_s3 + $0x80] sm:$0xff] }
  0x8f   :  { %v71_v60 = vsub.f32 1.5, %v70_v55  ;;  %v1038_v55 = vld [vmem:[%s1468_s3 + $0x88] sm:$0xff] }
  0x90   :  { %v60_v54 = vmul.f32 %v1083_v38, %v59_v49  ;;  %v83_v11 = vsub.f32 1.5, %v82_v5 }
  0x91   :  { %v72_v4 = vmul.f32 %v1085_v44, %v71_v60  ;;  %v1042_v44 = vld [vmem:[%s1468_s3 + $0xa8] sm:$0xff] }
  0x92   :  { %v61_v59 = vmul.f32 %v60_v54, %v36_v35  ;;  %v84_v19 = vmul.f32 %v1087_v51, %v83_v11  ;;  %479 = vmatpush.bf16.msra.mxu2 %v1042_v44 }
  0x93   :  { %v73_v10 = vmul.f32 %v72_v4, %v39_v36 }
  0x94   :  { %v63_v3 = vsel %vm62_vm3, %v36_v35, %v61_v59  ;;  %v85_v23 = vmul.f32 %v84_v19, %v1228_v41 }
  0x95   :  { %v66_v8 = vsel %vm64_vm4, %v65_v6, %v63_v3  ;;  %v75_v18 = vsel %vm74_vm5, %v39_v36, %v73_v10 }
  0x96   :  { %v158_v12 = vmul.f32 %v1068_v57, %v66_v8  ;;  %v78_v21 = vsel %vm76_vm6, %v77_v16, %v75_v18  ;;  %v87_v30 = vsel %vm86_vm7, %v1228_v41, %v85_v23  ;;  %480 = vmatpush.bf16.msra.mxu2 %v1041_v45 }
  0x97   :  { %v159_v24 = vmul.f32 %v1068_v57, %v78_v21  ;;  %v90_v32 = vsel %vm88_vm8, %v89_v28, %v87_v30 }
  0x98   :  { %v160_v34 = vmul.f32 %v1068_v57, %v90_v32  ;;  %v1070_v32 = vld [vmem:[%s1470_s4 + $0x2] ss:$0 sm:$0xff] }
  0x9a   :  { %481 = vmatpush.bf16.msra.mxu2 %v1040_v46 }
  0x9e   :  { %v266_v63 = vpop.f32.mrf.mxu0  ;;  %482 = vmatpush.bf16.msra.mxu2 %v1039_v52 }
  0x9f   :  { %v285_v0 = vpop.f32.mrf.mxu1  ;;  %v267_v1 = vadd.f32 %v266_v63, %v157_v62 }
  0xa1   :  { %v286_v7 = vadd.f32 %v285_v0, %v267_v1 }
  0xa2   :  { %483 = vmatpush.bf16.msra.mxu2 %v1038_v55 }
  0xa3   :  { %v1238_v9 = vadd.f32 %v1069_v2, %v286_v7 }
  0xa5   :  { %303 = vadd.xlane.f32.xlu2 %v1238_v9  ;;  %v311_v13 = vmul.f32 %v1238_v9, %v1238_v9 }
  0xa6   :  { %v268_v14 = vpop.f32.mrf.mxu0  ;;  %484 = vmatpush.bf16.msra.mxu2 %v1037_v61 }
  0xa7   :  { %v287_v15 = vpop.f32.mrf.mxu1  ;;  %v269_v17 = vadd.f32 %v268_v14, %v158_v12  ;;  %315 = vadd.xlane.f32.xlu0 %v311_v13 }
  0xa9   :  { %v288_v20 = vadd.f32 %v287_v15, %v269_v17 }
  0xab   :  { %v1243_v22 = vadd.f32 %v1069_v2, %v288_v20 }
  0xad   :  { %305 = vadd.xlane.f32.xlu2 %v1243_v22  ;;  %v312_v25 = vmul.f32 %v1243_v22, %v1243_v22 }
  0xae   :  { %v271_v26 = vpop.f32.mrf.mxu0 }
  0xaf   :  { %v290_v27 = vpop.f32.mrf.mxu1  ;;  %v272_v29 = vadd.f32 %v271_v26, %v159_v24  ;;  %317 = vadd.xlane.f32.xlu1 %v312_v25 }
  0xb1   :  { %v291_v31 = vadd.f32 %v290_v27, %v272_v29 }
  0xb3   :  { %v1253_v33 = vadd.f32 %v1069_v2, %v291_v31 }
  0xb5   :  { %307 = vadd.xlane.f32.xlu2 %v1253_v33  ;;  %v313_v35 = vmul.f32 %v1253_v33, %v1253_v33 }
  0xb6   :  { %v273_v36 = vpop.f32.mrf.mxu0 }
  0xb7   :  { %v274_v37 = vadd.f32 %v273_v36, %v160_v34  ;;  %319 = vadd.xlane.f32.xlu1 %v313_v35  ;;  %v292_v38 = vpop.f32.mrf.mxu1 }
  0xb9   :  { %v293_v39 = vadd.f32 %v292_v38, %v274_v37 }
  0xbb   :  { %v1258_v40 = vadd.f32 %v1069_v2, %v293_v39 }
  0xbd   :  { %309 = vadd.xlane.f32.xlu0 %v1258_v40  ;;  %v314_v41 = vmul.f32 %v1258_v40, %v1258_v40 }
  0xbf   :  { %321 = vadd.xlane.f32.xlu2 %v314_v41 }
 0x118   :  { %v304_v47 = vpop.xlane.xlu2 %303 }
 0x119   :  { %v323_v48 = vmul.f32 0.0078125, %v304_v47 }
 0x11a   :  { %v316_v49 = vpop.xlane.xlu0 %315 }
 0x11b   :  { %v331_v50 = vmul.f32 %v323_v48, %v323_v48  ;;  %v327_v51 = vmul.f32 0.0078125, %v316_v49  ;;  %v343_v27 = vsub.f32 %v1238_v9, %v323_v48 }
 0x11d   :  { %v335_v53 = vsub.f32 %v327_v51, %v331_v50 }
 0x11f   :  { %v339_v54 = vmax.f32 %v335_v53, 0.0 }
 0x120   :  { %v306_v56 = vpop.xlane.xlu2 %305 }
 0x121   :  { %v347_v57 = vadd.f32 1e-05, %v339_v54  ;;  %v324_v58 = vmul.f32 0.0078125, %v306_v56 }
 0x122   :  { %v318_v59 = vpop.xlane.xlu1 %317 }
 0x123   :  { %1088 = vrsqrt.f32 %v347_v57  ;;  %v332_v60 = vmul.f32 %v324_v58, %v324_v58  ;;  %v328_v62 = vmul.f32 0.0078125, %v318_v59  ;;  %vm357_vm10 = vweird.f32 %v347_v57 }
 0x124   :  { %v344_v39 = vsub.f32 %v1243_v22, %v324_v58 }
 0x125   :  { %v336_v63 = vsub.f32 %v328_v62, %v332_v60 }
 0x127   :  { %v340_v0 = vmax.f32 %v336_v63, 0.0 }
 0x128   :  { %v308_v1 = vpop.xlane.xlu2 %307 }
 0x129   :  { %v1089_v2 = vpop.eup %1088  ;;  %v1287_v3 = vmul.f32 0.0078125, %v308_v1  ;;  %v348_v5 = vadd.f32 1e-05, %v340_v0 }
 0x12a   :  { %v352_v4 = vmul.f32 %v1089_v2, %v347_v57  ;;  %v320_v6 = vpop.xlane.xlu1 %319  ;;  %vm358_vm9 = vweird.f32 %v1089_v2 }
 0x12b   :  { %v333_v7 = vmul.f32 %v1287_v3, %v1287_v3  ;;  %v329_v8 = vmul.f32 0.0078125, %v320_v6  ;;  %1090 = vrsqrt.f32 %v348_v5  ;;  %vm359_vm11 = vmor %vm357_vm10, %vm358_vm9  ;;  %vm367_vm13 = vweird.f32 %v348_v5 }
 0x12c   :  { %v353_v10 = vmul.f32 %v1089_v2, %v352_v4  ;;  %v345_v56 = vsub.f32 %v1253_v33, %v1287_v3  ;;  %v1072_v3 = vld [vmem:[%s1470_s4 + $0x4] ss:$0 sm:$0xff] }
 0x12d   :  { %v337_v11 = vsub.f32 %v329_v8, %v333_v7 }
 0x12e   :  { %v354_v12 = vmul.f32 0.5, %v353_v10 }
 0x12f   :  { %v341_v13 = vmax.f32 %v337_v11, 0.0 }
 0x130   :  { %v355_v14 = vsub.f32 1.5, %v354_v12  ;;  %v310_v15 = vpop.xlane.xlu0 %309 }
 0x131   :  { %v349_v16 = vadd.f32 1e-05, %v341_v13  ;;  %v326_v17 = vmul.f32 0.0078125, %v310_v15  ;;  %v1091_v18 = vpop.eup %1090 }
 0x132   :  { %v356_v19 = vmul.f32 %v1089_v2, %v355_v14  ;;  %v322_v20 = vpop.xlane.xlu2 %321  ;;  %v362_v21 = vmul.f32 %v1091_v18, %v348_v5  ;;  %vm368_vm12 = vweird.f32 %v1091_v18 }
 0x133   :  { %1092 = vrsqrt.f32 %v349_v16  ;;  %v334_v23 = vmul.f32 %v326_v17, %v326_v17  ;;  %v330_v24 = vmul.f32 0.0078125, %v322_v20  ;;  %vm369_vm14 = vmor %vm367_vm13, %vm368_vm12  ;;  %vm377_vm1 = vweird.f32 %v349_v16  ;;  %v1052_v20 = vld [vmem:[%s1468_s3 + $0xf8] sm:$0xff] }
 0x134   :  { %v363_v25 = vmul.f32 %v1091_v18, %v362_v21  ;;  %v360_v26 = vsel %vm359_vm11, %v1089_v2, %v356_v19  ;;  %v346_v62 = vsub.f32 %v1258_v40, %v326_v17  ;;  %690 = vmatpush.bf16.msra.mxu3 %v1052_v20  ;;  %v1051_v21 = vld [vmem:[%s1468_s3 + $0xf0] sm:$0xff] }
 0x135   :  { %v338_v28 = vsub.f32 %v330_v24, %v334_v23  ;;  %v391_v31 = vmul.f32 %v360_v26, %v343_v27  ;;  %v1050_v23 = vld [vmem:[%s1468_s3 + $0xe8] sm:$0xff]  ;;  %v1049_v24 = vld [vmem:[%s1468_s3 + $0xe0] sm:$0xff] }
 0x136   :  { %v364_v29 = vmul.f32 0.5, %v363_v25 }
 0x137   :  { %v342_v30 = vmax.f32 %v338_v28, 0.0  ;;  %v396_v9 = vmul.f32 %v1070_v32, %v391_v31 }
 0x138   :  { %v365_v35 = vsub.f32 1.5, %v364_v29  ;;  %691 = vmatpush.bf16.msra.mxu3 %v1051_v21 }
 0x139   :  { %v1093_v34 = vpop.eup %1092  ;;  %v350_v37 = vadd.f32 1e-05, %v342_v30  ;;  %v401_v48 = vadd.f32 %v1071_v42, %v396_v9  ;;  %v1048_v30 = vld [vmem:[%s1468_s3 + $0xd8] sm:$0xff] }
 0x13a   :  { %v372_v36 = vmul.f32 %v1093_v34, %v349_v16  ;;  %v366_v38 = vmul.f32 %v1091_v18, %v365_v35  ;;  %vm378_vm15 = vweird.f32 %v1093_v34 }
 0x13b   :  { %1094 = vrsqrt.f32 %v350_v37  ;;  %vm379_vm2 = vmor %vm377_vm1, %vm378_vm15  ;;  %v405_v52 = vmax.f32 %v401_v48, 0.0  ;;  %vm387_vm4 = vweird.f32 %v350_v37 }
 0x13c   :  { %v373_v41 = vmul.f32 %v1093_v34, %v372_v36  ;;  %v370_v43 = vsel %vm369_vm14, %v1091_v18, %v366_v38  ;;  %692 = vmatpush.bf16.msra.mxu3 %v1050_v23 }
 0x13d   :  { %v392_v45 = vmul.f32 %v370_v43, %v344_v39  ;;  %v1045_v43 = vld [vmem:[%s1468_s3 + $0xc0] sm:$0xff] }
 0x13e   :  { %v374_v44 = vmul.f32 0.5, %v373_v41  ;;  %v1046_v41 = vld [vmem:[%s1468_s3 + $0xc8] sm:$0xff] }
 0x13f   :  { %v397_v47 = vmul.f32 %v1070_v32, %v392_v45 }
 0x140   :  { %v375_v46 = vsub.f32 1.5, %v374_v44  ;;  %693 = vmatpush.bf16.msra.mxu3 %v1049_v24 }
 0x141   :  { %v1095_v49 = vpop.eup %1094  ;;  %v402_v51 = vadd.f32 %v1071_v42, %v397_v47 }
 0x142   :  { %v376_v50 = vmul.f32 %v1093_v34, %v375_v46  ;;  %v382_v22 = vmul.f32 %v1095_v49, %v350_v37  ;;  %vm388_vm3 = vweird.f32 %v1095_v49 }
 0x143   :  { %v406_v53 = vmax.f32 %v402_v51, 0.0  ;;  %vm389_vm5 = vmor %vm387_vm4, %vm388_vm3 }
 0x144   :  { %v383_v54 = vmul.f32 %v1095_v49, %v382_v22  ;;  %v380_v55 = vsel %vm379_vm2, %v1093_v34, %v376_v50  ;;  %694 = vmatpush.bf16.msra.mxu3 %v1048_v30  ;;  %v1047_v34 = vld [vmem:[%s1468_s3 + $0xd0] sm:$0xff] }
 0x145   :  { %v409_v57 = vpack.c.bf16 %v406_v53, %v405_v52  ;;  %v393_v59 = vmul.f32 %v380_v55, %v345_v56 }
 0x146   :  { %v384_v58 = vmul.f32 0.5, %v383_v54 }
 0x147   :  { %485 = vmatmul.bf16.vlgmr.msra.gmra.mxu2 %v409_v57  ;;  %v398_v63 = vmul.f32 %v1070_v32, %v393_v59 }
 0x148   :  { %v385_v60 = vsub.f32 1.5, %v384_v58  ;;  %695 = vmatpush.bf16.msra.mxu3 %v1047_v34 }
 0x149   :  { %v403_v4 = vadd.f32 %v1071_v42, %v398_v63 }
 0x14a   :  { %v386_v61 = vmul.f32 %v1095_v49, %v385_v60 }
 0x14b   :  { %v407_v6 = vmax.f32 %v403_v4, 0.0 }
 0x14c   :  { %v390_v0 = vsel %vm389_vm5, %v1095_v49, %v386_v61  ;;  %696 = vmatpush.bf16.msra.mxu3 %v1046_v41 }
 0x14d   :  { %v394_v1 = vmul.f32 %v390_v0, %v346_v62 }
 0x14f   :  { %v399_v2 = vmul.f32 %v1070_v32, %v394_v1 }
 0x150   :  { %697 = vmatpush.bf16.msra.mxu3 %v1045_v43 }
 0x151   :  { %v404_v5 = vadd.f32 %v1071_v42, %v399_v2 }
 0x153   :  { %v408_v7 = vmax.f32 %v404_v5, 0.0  ;;  %v1073_v5 = vld [vmem:[%s1470_s4 + $0x5] ss:$0 sm:$0xff] }
 0x155   :  { %v410_v33 = vpack.c.bf16 %v408_v7, %v407_v6 }
 0x157   :  { %490 = vmatmul.bf16.gmra.mxu2 %v410_v33 }
 0x1ca   :  { %v486_v8 = vpop.f32.mrf.mxu2 }
 0x1cb   :  { %v1305_v10 = vadd.f32 %v1072_v3, %v486_v8 }
 0x1cd   :  { %498 = vadd.xlane.f32.xlu0 %v1305_v10  ;;  %v506_v40 = vmul.f32 %v1305_v10, %v1305_v10 }
 0x1cf   :  { %510 = vadd.xlane.f32.xlu2 %v506_v40 }
 0x1d2   :  { %v488_v11 = vpop.f32.mrf.mxu2 }
 0x1d3   :  { %v1310_v12 = vadd.f32 %v1072_v3, %v488_v11 }
 0x1d5   :  { %500 = vadd.xlane.f32.xlu1 %v1310_v12  ;;  %v507_v13 = vmul.f32 %v1310_v12, %v1310_v12 }
 0x1d7   :  { %512 = vadd.xlane.f32.xlu0 %v507_v13 }
 0x1da   :  { %v491_v14 = vpop.f32.mrf.mxu2 }
 0x1db   :  { %v1315_v15 = vadd.f32 %v1072_v3, %v491_v14 }
 0x1dd   :  { %502 = vadd.xlane.f32.xlu1 %v1315_v15  ;;  %v508_v16 = vmul.f32 %v1315_v15, %v1315_v15 }
 0x1df   :  { %514 = vadd.xlane.f32.xlu0 %v508_v16 }
 0x1e2   :  { %v493_v17 = vpop.f32.mrf.mxu2 }
 0x1e3   :  { %v1320_v18 = vadd.f32 %v1072_v3, %v493_v17 }
 0x1e5   :  { %504 = vadd.xlane.f32.xlu2 %v1320_v18  ;;  %v509_v19 = vmul.f32 %v1320_v18, %v1320_v18 }
 0x1e7   :  { %516 = vadd.xlane.f32.xlu1 %v509_v19 }
 0x240   :  { %v499_v25 = vpop.xlane.xlu0 %498 }
 0x241   :  { %v518_v26 = vmul.f32 0.0078125, %v499_v25 }
 0x242   :  { %v511_v27 = vpop.xlane.xlu2 %510 }
 0x243   :  { %v526_v28 = vmul.f32 %v518_v26, %v518_v26  ;;  %v522_v29 = vmul.f32 0.0078125, %v511_v27  ;;  %v538_v63 = vsub.f32 %v1305_v10, %v518_v26  ;;  %v1074_v10 = vld [vmem:[%s1470_s4 + $0x6] ss:$0 sm:$0xff] }
 0x245   :  { %v530_v31 = vsub.f32 %v522_v29, %v526_v28 }
 0x247   :  { %v534_v32 = vmax.f32 %v530_v31, 0.0 }
 0x248   :  { %v501_v35 = vpop.xlane.xlu1 %500 }
 0x249   :  { %v542_v36 = vadd.f32 1e-05, %v534_v32  ;;  %v1343_v37 = vmul.f32 0.0078125, %v501_v35 }
 0x24a   :  { %v513_v38 = vpop.xlane.xlu0 %512 }
 0x24b   :  { %1096 = vrsqrt.f32 %v542_v36  ;;  %v527_v39 = vmul.f32 %v1343_v37, %v1343_v37  ;;  %v523_v9 = vmul.f32 0.0078125, %v513_v38  ;;  %vm552_vm7 = vweird.f32 %v542_v36 }
 0x24c   :  { %v539_v19 = vsub.f32 %v1310_v12, %v1343_v37 }
 0x24d   :  { %v531_v42 = vsub.f32 %v523_v9, %v527_v39 }
 0x24f   :  { %v535_v44 = vmax.f32 %v531_v42, 0.0 }
 0x250   :  { %v503_v45 = vpop.xlane.xlu1 %502 }
 0x251   :  { %v1097_v46 = vpop.eup %1096  ;;  %v1353_v47 = vmul.f32 0.0078125, %v503_v45  ;;  %v543_v49 = vadd.f32 1e-05, %v535_v44 }
 0x252   :  { %v547_v48 = vmul.f32 %v1097_v46, %v542_v36  ;;  %v515_v50 = vpop.xlane.xlu0 %514  ;;  %vm553_vm6 = vweird.f32 %v1097_v46 }
 0x253   :  { %v528_v51 = vmul.f32 %v1353_v47, %v1353_v47  ;;  %v524_v22 = vmul.f32 0.0078125, %v515_v50  ;;  %1098 = vrsqrt.f32 %v543_v49  ;;  %vm554_vm8 = vmor %vm552_vm7, %vm553_vm6  ;;  %vm562_vm10 = vweird.f32 %v543_v49 }
 0x254   :  { %v548_v52 = vmul.f32 %v1097_v46, %v547_v48  ;;  %v540_v32 = vsub.f32 %v1315_v15, %v1353_v47 }
 0x255   :  { %v532_v53 = vsub.f32 %v524_v22, %v528_v51 }
 0x256   :  { %v549_v54 = vmul.f32 0.5, %v548_v52 }
 0x257   :  { %v536_v55 = vmax.f32 %v532_v53, 0.0 }
 0x258   :  { %v550_v56 = vsub.f32 1.5, %v549_v54  ;;  %v505_v57 = vpop.xlane.xlu2 %504 }
 0x259   :  { %v544_v58 = vadd.f32 1e-05, %v536_v55  ;;  %v1357_v59 = vmul.f32 0.0078125, %v505_v57  ;;  %v1099_v60 = vpop.eup %1098 }
 0x25a   :  { %v551_v61 = vmul.f32 %v1097_v46, %v550_v56  ;;  %v517_v62 = vpop.xlane.xlu1 %516  ;;  %v557_v0 = vmul.f32 %v1099_v60, %v543_v49  ;;  %vm563_vm9 = vweird.f32 %v1099_v60 }
 0x25b   :  { %1100 = vrsqrt.f32 %v544_v58  ;;  %v529_v2 = vmul.f32 %v1357_v59, %v1357_v59  ;;  %v525_v4 = vmul.f32 0.0078125, %v517_v62  ;;  %vm564_vm11 = vmor %vm562_vm10, %vm563_vm9  ;;  %vm572_vm13 = vweird.f32 %v544_v58 }
 0x25c   :  { %v555_v1 = vsel %vm554_vm8, %v1097_v46, %v551_v61  ;;  %v558_v6 = vmul.f32 %v1099_v60, %v557_v0  ;;  %v541_v47 = vsub.f32 %v1320_v18, %v1357_v59  ;;  %v1075_v18 = vld [vmem:[%s1470_s4 + $0x7] ss:$0 sm:$0xff] }
 0x25d   :  { %v586_v7 = vmul.f32 %v555_v1, %v538_v63  ;;  %v533_v33 = vsub.f32 %v525_v4, %v529_v2 }
 0x25e   :  { %v559_v3 = vmul.f32 0.5, %v558_v6 }
 0x25f   :  { %v537_v8 = vmax.f32 %v533_v33, 0.0  ;;  %v591_v40 = vmul.f32 %v1073_v5, %v586_v7 }
 0x260   :  { %v560_v13 = vsub.f32 1.5, %v559_v3 }
 0x261   :  { %v1101_v11 = vpop.eup %1100  ;;  %v545_v16 = vadd.f32 1e-05, %v537_v8  ;;  %v596_v21 = vadd.f32 %v1074_v10, %v591_v40 }
 0x262   :  { %v567_v14 = vmul.f32 %v1101_v11, %v544_v58  ;;  %v561_v17 = vmul.f32 %v1099_v60, %v560_v13  ;;  %vm573_vm12 = vweird.f32 %v1101_v11 }
 0x263   :  { %1102 = vrsqrt.f32 %v545_v16  ;;  %v600_v28 = vmax.f32 %v596_v21, 0.0  ;;  %vm574_vm14 = vmor %vm572_vm13, %vm573_vm12  ;;  %vm582_vm1 = vweird.f32 %v545_v16 }
 0x264   :  { %v568_v20 = vmul.f32 %v1101_v11, %v567_v14  ;;  %v565_v23 = vsel %vm564_vm11, %v1099_v60, %v561_v17 }
 0x265   :  { %v587_v25 = vmul.f32 %v565_v23, %v539_v19  ;;  %v604_v36 = vpack.c.bf16 %v600_v28, %v600_v28 }
 0x266   :  { %v569_v24 = vmul.f32 0.5, %v568_v20 }
 0x267   :  { %v592_v27 = vmul.f32 %v1073_v5, %v587_v25  ;;  %v634_v42 = vunpack.c.l.b16 %v604_v36 }
 0x268   :  { %v570_v26 = vsub.f32 1.5, %v569_v24 }
 0x269   :  { %v1103_v29 = vpop.eup %1102  ;;  %v597_v31 = vadd.f32 %v1074_v10, %v592_v27 }
 0x26a   :  { %v571_v30 = vmul.f32 %v1101_v11, %v570_v26  ;;  %v577_v12 = vmul.f32 %v1103_v29, %v545_v16  ;;  %vm583_vm15 = vweird.f32 %v1103_v29 }
 0x26b   :  { %v601_v35 = vmax.f32 %v597_v31, 0.0  ;;  %vm584_vm2 = vmor %vm582_vm1, %vm583_vm15 }
 0x26c   :  { %v575_v34 = vsel %vm574_vm14, %v1101_v11, %v571_v30  ;;  %v578_v37 = vmul.f32 %v1103_v29, %v577_v12 }
 0x26d   :  { %v588_v38 = vmul.f32 %v575_v34, %v540_v32  ;;  %v605_v39 = vpack.c.bf16 %v601_v35, %v601_v35  ;;  %v1056_v41 = vpack.c.bf16 %v601_v35, %v600_v28 }
 0x26e   :  { %v579_v9 = vmul.f32 0.5, %v578_v37 }
 0x26f   :  { %1057 = vst [vmem:[%s1473_s5] sm:$0xff] %v1056_v41   ;;  %v635_v43 = vunpack.c.l.b16 %v605_v39  ;;  %v593_v44 = vmul.f32 %v1073_v5, %v588_v38  ;;  %v1409_v38 = vld [vmem:[%s1470_s4 + $0x8] ss:$0 sm:$0xff] }
 0x270   :  { %v580_v45 = vsub.f32 1.5, %v579_v9 }
 0x271   :  { %v638_v15 = vpack.c.b16 %v635_v43, %v634_v42  ;;  %v598_v48 = vadd.f32 %v1074_v10, %v593_v44  ;;  %v1416_v44 = vld [vmem:[%s1470_s4 + $0x9] ss:$0 sm:$0xff] }
 0x272   :  { %v581_v46 = vmul.f32 %v1103_v29, %v580_v45 }
 0x273   :  { %698 = vmatmul.bf16.vlgmr.msra.gmra.mxu3 %v638_v15  ;;  %v602_v22 = vmax.f32 %v598_v48, 0.0 }
 0x274   :  { %v585_v49 = vsel %vm584_vm2, %v1103_v29, %v581_v46 }
 0x275   :  { %v589_v50 = vmul.f32 %v585_v49, %v541_v47  ;;  %v606_v54 = vpack.c.bf16 %v602_v22, %v602_v22 }
 0x277   :  { %v594_v51 = vmul.f32 %v1073_v5, %v589_v50  ;;  %v636_v57 = vunpack.c.l.b16 %v606_v54 }
 0x279   :  { %v599_v52 = vadd.f32 %v1074_v10, %v594_v51 }
 0x27b   :  { %v603_v53 = vmax.f32 %v599_v52, 0.0 }
 0x27d   :  { %v607_v55 = vpack.c.bf16 %v603_v53, %v603_v53  ;;  %v1061_v56 = vpack.c.bf16 %v603_v53, %v602_v22  ;;  %v1078_v22 = vld [vmem:[%s1470_s4 + $0xa] ss:$0 sm:$0xff] }
 0x27f   :  { %1063 = vst [vmem:[%s1473_s5 + $0x8] sm:$0xff] %v1061_v56   ;;  %v637_v58 = vunpack.c.l.b16 %v607_v55 }
 0x281   :  { %v639_v60 = vpack.c.b16 %v637_v58, %v636_v57 }
 0x283   :  { %703 = vmatmul.bf16.gmra.mxu3 %v639_v60 }
 0x2f6   :  { %v699_v59 = vpop.f32.mrf.mxu3 }
 0x2f7   :  { %v700_v61 = vadd.f32 %v1075_v18, %v699_v59 }
 0x2f9   :  { %711 = vadd.xlane.f32.xlu2 %v700_v61  ;;  %v719_v62 = vmul.f32 %v700_v61, %v700_v61 }
 0x2fb   :  { %723 = vadd.xlane.f32.xlu0 %v719_v62 }
 0x2fe   :  { %v701_v63 = vpop.f32.mrf.mxu3 }
 0x2ff   :  { %v1383_v0 = vadd.f32 %v1075_v18, %v701_v63 }
 0x301   :  { %v720_v6 = vmul.f32 %v1383_v0, %v1383_v0 }
 0x303   :  { %713 = vadd.xlane.f32.xlu0 %v1383_v0 }
 0x306   :  { %v704_v1 = vpop.f32.mrf.mxu3 }
 0x307   :  { %v1386_v2 = vadd.f32 %v1075_v18, %v704_v1 }
 0x309   :  { %715 = vadd.xlane.f32.xlu1 %v1386_v2  ;;  %v721_v33 = vmul.f32 %v1386_v2, %v1386_v2 }
 0x30e   :  { %v706_v4 = vpop.f32.mrf.mxu3 }
 0x30f   :  { %v1389_v5 = vadd.f32 %v1075_v18, %v706_v4 }
 0x311   :  { %717 = vadd.xlane.f32.xlu2 %v1389_v5  ;;  %725 = vadd.xlane.f32.xlu1 %v720_v6  ;;  %v722_v7 = vmul.f32 %v1389_v5, %v1389_v5 }
 0x313   :  { %729 = vadd.xlane.f32.xlu0 %v722_v7 }
 0x319   :  { %727 = vadd.xlane.f32.xlu2 %v721_v33 }
 0x36c   :  { %v712_v3 = vpop.xlane.xlu2 %711 }
 0x36d   :  { %v731_v8 = vmul.f32 0.0078125, %v712_v3 }
 0x36e   :  { %v724_v40 = vpop.xlane.xlu0 %723 }
 0x36f   :  { %v739_v10 = vmul.f32 %v731_v8, %v731_v8  ;;  %v735_v11 = vmul.f32 0.0078125, %v724_v40  ;;  %v751_v34 = vsub.f32 %v700_v61, %v731_v8 }
 0x371   :  { %v743_v13 = vsub.f32 %v735_v11, %v739_v10 }
 0x373   :  { %v747_v14 = vmax.f32 %v743_v13, 0.0 }
 0x375   :  { %v755_v16 = vadd.f32 1e-05, %v747_v14 }
 0x376   :  { %v714_v21 = vpop.xlane.xlu0 %713 }
 0x377   :  { %1104 = vrsqrt.f32 %v755_v16  ;;  %v1398_v24 = vmul.f32 0.0078125, %v714_v21  ;;  %vm765_vm4 = vweird.f32 %v755_v16 }
 0x379   :  { %v740_v29 = vmul.f32 %v1398_v24, %v1398_v24  ;;  %v752_v3 = vsub.f32 %v1383_v0, %v1398_v24 }
 0x37c   :  { %v716_v17 = vpop.xlane.xlu1 %715 }
 0x37d   :  { %v1105_v19 = vpop.eup %1104  ;;  %v1411_v41 = vmul.f32 0.0078125, %v716_v17 }
 0x37e   :  { %v760_v20 = vmul.f32 %v1105_v19, %v755_v16  ;;  %vm766_vm3 = vweird.f32 %v1105_v19 }
 0x37f   :  { %vm767_vm5 = vmor %vm765_vm4, %vm766_vm3  ;;  %v741_v48 = vmul.f32 %v1411_v41, %v1411_v41  ;;  %v753_v24 = vsub.f32 %v1386_v2, %v1411_v41  ;;  %v1079_v2 = vld [vmem:[%s1470_s4 + $0xb] ss:$0 sm:$0xff] }
 0x380   :  { %v761_v23 = vmul.f32 %v1105_v19, %v760_v20 }
 0x382   :  { %v762_v25 = vmul.f32 0.5, %v761_v23 }
 0x384   :  { %v763_v26 = vsub.f32 1.5, %v762_v25  ;;  %v718_v27 = vpop.xlane.xlu2 %717  ;;  %v726_v28 = vpop.xlane.xlu1 %725 }
 0x385   :  { %v1402_v30 = vmul.f32 0.0078125, %v718_v27  ;;  %v736_v31 = vmul.f32 0.0078125, %v726_v28 }
 0x386   :  { %v764_v32 = vmul.f32 %v1105_v19, %v763_v26  ;;  %v730_v12 = vpop.xlane.xlu0 %729 }
 0x387   :  { %v742_v35 = vmul.f32 %v1402_v30, %v1402_v30  ;;  %v744_v36 = vsub.f32 %v736_v31, %v740_v29  ;;  %v738_v37 = vmul.f32 0.0078125, %v730_v12  ;;  %v754_v11 = vsub.f32 %v1389_v5, %v1402_v30 }
 0x388   :  { %v768_v39 = vsel %vm767_vm5, %v1105_v19, %v764_v32 }
 0x389   :  { %v748_v9 = vmax.f32 %v744_v36, 0.0  ;;  %v746_v42 = vsub.f32 %v738_v37, %v742_v35  ;;  %v799_v43 = vmul.f32 %v768_v39, %v751_v34  ;;  %v1116_v35 = vmov 0  }
 0x38a   :  { %1065 = vset.pattern.permute.xlu2 %v1116_v35  ;;  %1066 = vset.pattern.permute.xlu0 %v1116_v35 }
 0x38b   :  { %v756_v45 = vadd.f32 1e-05, %v748_v9  ;;  %v750_v15 = vmax.f32 %v746_v42, 0.0  ;;  %v804_v46 = vmul.f32 %v1409_v38, %v799_v43  ;;  %1067 = vset.pattern.permute.xlu1 %v1116_v35 }
 0x38c   :  { %v728_v47 = vpop.xlane.xlu2 %727 }
 0x38d   :  { %1106 = vrsqrt.f32 %v756_v45  ;;  %v758_v49 = vadd.f32 1e-05, %v750_v15  ;;  %v737_v50 = vmul.f32 0.0078125, %v728_v47  ;;  %v809_v51 = vadd.f32 %v1416_v44, %v804_v46  ;;  %v1113_v47 = vld [vmem:[%s1469_s2 + $0x18] sm:$0xff] }
 0x38e   :  { %vm775_vm7 = vweird.f32 %v756_v45 }
 0x38f   :  { %1108 = vrsqrt.f32 %v758_v49  ;;  %v745_v52 = vsub.f32 %v737_v50, %v741_v48  ;;  %v813_v53 = vmax.f32 %v809_v51, 0.0  ;;  %vm795_vm10 = vweird.f32 %v758_v49  ;;  %v1114_v50 = vld [vmem:[%s1469_s2 + $0x8] sm:$0xff] }
 0x391   :  { %v749_v54 = vmax.f32 %v745_v52, 0.0  ;;  %v819_v55 = vmul.f32 %v1078_v22, %v813_v53  ;;  %v1115_v52 = vld [vmem:[%s1469_s2 + $0x10] sm:$0xff] }
 0x393   :  { %v1107_v56 = vpop.eup %1106  ;;  %v757_v57 = vadd.f32 1e-05, %v749_v54  ;;  %823 = vadd.xlane.f32.xlu1 %v819_v55 }
 0x394   :  { %v770_v58 = vmul.f32 %v1107_v56, %v756_v45  ;;  %vm776_vm6 = vweird.f32 %v1107_v56  ;;  %v1112_v45 = vld [vmem:[%s1469_s2] sm:$0xff] }
 0x395   :  { %v1109_v60 = vpop.eup %1108  ;;  %1110 = vrsqrt.f32 %v757_v57  ;;  %vm777_vm9 = vmor %vm775_vm7, %vm776_vm6  ;;  %vm785_vm13 = vweird.f32 %v757_v57 }
 0x396   :  { %v771_v18 = vmul.f32 %v1107_v56, %v770_v58  ;;  %v790_v59 = vmul.f32 %v1109_v60, %v758_v49  ;;  %vm796_vm8 = vweird.f32 %v1109_v60 }
 0x397   :  { %vm797_vm11 = vmor %vm795_vm10, %vm796_vm8 }
 0x398   :  { %v772_v61 = vmul.f32 0.5, %v771_v18  ;;  %v791_v62 = vmul.f32 %v1109_v60, %v790_v59 }
 0x39a   :  { %v773_v63 = vsub.f32 1.5, %v772_v61  ;;  %v792_v1 = vmul.f32 0.5, %v791_v62 }
 0x39b   :  { %v1111_v4 = vpop.eup %1110 }
 0x39c   :  { %v774_v6 = vmul.f32 %v1107_v56, %v773_v63  ;;  %v793_v7 = vsub.f32 1.5, %v792_v1  ;;  %v780_v33 = vmul.f32 %v1111_v4, %v757_v57  ;;  %vm786_vm12 = vweird.f32 %v1111_v4 }
 0x39d   :  { %vm787_vm14 = vmor %vm785_vm13, %vm786_vm12 }
 0x39e   :  { %v794_v8 = vmul.f32 %v1109_v60, %v793_v7  ;;  %v781_v40 = vmul.f32 %v1111_v4, %v780_v33  ;;  %v778_v10 = vsel %vm777_vm9, %v1107_v56, %v774_v6 }
 0x39f   :  { %v800_v13 = vmul.f32 %v778_v10, %v752_v3 }
 0x3a0   :  { %v782_v14 = vmul.f32 0.5, %v781_v40  ;;  %v798_v16 = vsel %vm797_vm11, %v1109_v60, %v794_v8 }
 0x3a1   :  { %v805_v17 = vmul.f32 %v1409_v38, %v800_v13  ;;  %v802_v19 = vmul.f32 %v798_v16, %v754_v11 }
 0x3a2   :  { %v783_v20 = vsub.f32 1.5, %v782_v14 }
 0x3a3   :  { %v810_v21 = vadd.f32 %v1416_v44, %v805_v17  ;;  %v807_v0 = vmul.f32 %v1409_v38, %v802_v19 }
 0x3a4   :  { %v784_v23 = vmul.f32 %v1111_v4, %v783_v20 }
 0x3a5   :  { %v814_v5 = vmax.f32 %v810_v21, 0.0  ;;  %v812_v25 = vadd.f32 %v1416_v44, %v807_v0 }
 0x3a6   :  { %v788_v26 = vsel %vm787_vm14, %v1111_v4, %v784_v23 }
 0x3a7   :  { %v820_v27 = vmul.f32 %v1078_v22, %v814_v5  ;;  %v816_v28 = vmax.f32 %v812_v25, 0.0  ;;  %v801_v29 = vmul.f32 %v788_v26, %v753_v24 }
 0x3a9   :  { %825 = vadd.xlane.f32.xlu2 %v820_v27  ;;  %v822_v30 = vmul.f32 %v1078_v22, %v816_v28  ;;  %v806_v31 = vmul.f32 %v1409_v38, %v801_v29 }
 0x3ab   :  { %829 = vadd.xlane.f32.xlu1 %v822_v30  ;;  %v811_v32 = vadd.f32 %v1416_v44, %v806_v31 }
 0x3ad   :  { %v815_v12 = vmax.f32 %v811_v32, 0.0 }
 0x3af   :  { %v821_v34 = vmul.f32 %v1078_v22, %v815_v12 }
 0x3b1   :  { %827 = vadd.xlane.f32.xlu0 %v821_v34 }
 0x406   :  { %v824_v36 = vpop.xlane.xlu1 %823 }
 0x407   :  { %v833_v37 = vadd.f32 %v1079_v2, %v824_v36 }
 0x409   :  { %839 = vperm.xlu2 %1065, %v833_v37  }
 0x41c   :  { %v826_v39 = vpop.xlane.xlu2 %825 }
 0x41d   :  { %v834_v41 = vadd.f32 %v1079_v2, %v826_v39 }
 0x41e   :  { %v830_v38 = vpop.xlane.xlu1 %829 }
 0x41f   :  { %v836_v9 = vadd.f32 %v1079_v2, %v830_v38  ;;  %844 = vperm.xlu0 %1066, %v834_v41  }
 0x421   :  { %854 = vperm.xlu2 %1065, %v836_v9  }
 0x424   :  { %v828_v42 = vpop.xlane.xlu0 %827 }
 0x425   :  { %v835_v43 = vadd.f32 %v1079_v2, %v828_v42 }
 0x427   :  { %849 = vperm.xlu1 %1067, %v835_v43  }
 0x463   :  { %v840_v44 = vpop.permute.xlu2 %839 }
 0x464   :  { %v857_v15 = vmul.f32 %v1112_v45, %v840_v44 }
 0x466   :  { %861 = vst.msk [vmem:[%s1474_s6] sm:$0xff] %vm30_vm0, %v857_v15 }
 0x47b   :  { %v855_v46 = vpop.permute.xlu2 %854 }
 0x47c   :  { %v860_v48 = vmul.f32 %v1113_v47, %v855_v46 }
 0x47e   :  { %864 = vst.msk [vmem:[%s1474_s6 + $0x18] sm:$0xff] %vm30_vm0, %v860_v48 }
 0x491   :  { %v845_v49 = vpop.permute.xlu0 %844 }
 0x492   :  { %v858_v51 = vmul.f32 %v1114_v50, %v845_v49 }
 0x494   :  { %862 = vst.msk [vmem:[%s1474_s6 + $0x8] sm:$0xff] %vm30_vm0, %v858_v51 }
 0x499   :  { %v850_v22 = vpop.permute.xlu1 %849 }
 0x49a   :  { %v859_v53 = vmul.f32 %v1115_v52, %v850_v22 }
 0x49c   :  { %863 = vst.msk [vmem:[%s1474_s6 + $0x10] sm:$0xff] %vm30_vm0, %v859_v53 }

// kernel: egnn_forward.7
= control target key start
LH: loop header
LB: loop body
LE: loop exit
PB: predicated region body
PF: predicated region fallthrough
CT: control target
= control target key end

     0   :  { %s931_s2 = inlined_call_operand.vmem [shape: bf16[384,128], index: 2, kind: input, shape index: {}]   ;;  %s932_s3 = inlined_call_operand.vmem [shape: f32[6,128], index: 3, kind: input, shape index: {}]   ;;  %s933_s1 = inlined_call_operand.vmem [shape: f32[32,128], index: 1, kind: input, shape index: {}]   ;;  %s934_s0 = inlined_call_operand.vmem [shape: bf16[32,128], index: 0, kind: input, shape index: {}]   ;;  %s935_s4 = inlined_call_operand.vmem [shape: bf16[32,128], index: 4, kind: output, shape index: {}]  }
   0x1   :  { %v657_v0 = vld [vmem:[%s931_s2 + $0x38] sm:$0xff]  ;;  %v656_v2 = vld [vmem:[%s931_s2 + $0x30] sm:$0xff]  ;;  %v655_v4 = vld [vmem:[%s931_s2 + $0x28] sm:$0xff] }
   0x2   :  { %v665_v1 = vld [vmem:[%s931_s2 + $0x78] sm:$0xff]  ;;  %183 = vmatpush.bf16.msra.mxu0 %v657_v0  ;;  %v664_v3 = vld [vmem:[%s931_s2 + $0x70] sm:$0xff]  ;;  %685 = vmatpush.bf16.msra.mxu3 %v657_v0  ;;  %v663_v5 = vld [vmem:[%s931_s2 + $0x68] sm:$0xff] }
   0x3   :  { %202 = vmatpush.bf16.msra.mxu1 %v665_v1  ;;  %v654_v6 = vld [vmem:[%s931_s2 + $0x20] sm:$0xff]  ;;  %v653_v8 = vld [vmem:[%s931_s2 + $0x18] sm:$0xff]  ;;  %v652_v10 = vld [vmem:[%s931_s2 + $0x10] sm:$0xff] }
   0x4   :  { %v662_v7 = vld [vmem:[%s931_s2 + $0x60] sm:$0xff]  ;;  %v661_v9 = vld [vmem:[%s931_s2 + $0x58] sm:$0xff]  ;;  %v660_v11 = vld [vmem:[%s931_s2 + $0x50] sm:$0xff] }
   0x5   :  { %v21_v12 = vld [vmem:[%s933_s1] sm:$0xff]  ;;  %v22_v13 = vld [vmem:[%s933_s1 + $0x8] sm:$0xff]  ;;  %v23_v25 = vld [vmem:[%s933_s1 + $0x10] sm:$0xff] }
   0x6   :  { %184 = vmatpush.bf16.msra.mxu0 %v656_v2  ;;  %686 = vmatpush.bf16.msra.mxu3 %v656_v2  ;;  %v25_v14 = vpack.c.bf16 %v21_v12, %v21_v12  ;;  %v26_v15 = vpack.c.bf16 %v22_v13, %v22_v13  ;;  %v651_v16 = vld [vmem:[%s931_s2 + $0x8] sm:$0xff]  ;;  %v650_v20 = vld [vmem:[%s931_s2] sm:$0xff]  ;;  %v24_v26 = vld [vmem:[%s933_s1 + $0x18] sm:$0xff]  ;;  %v27_v27 = vpack.c.bf16 %v23_v25, %v23_v25 }
   0x7   :  { %203 = vmatpush.bf16.msra.mxu1 %v664_v3  ;;  %v659_v17 = vld [vmem:[%s931_s2 + $0x48] sm:$0xff]  ;;  %v658_v21 = vld [vmem:[%s931_s2 + $0x40] sm:$0xff]  ;;  %v28_v28 = vpack.c.bf16 %v24_v26, %v24_v26  ;;  %v673_v53 = vld [vmem:[%s931_s2 + $0xb8] sm:$0xff] }
   0x8   :  { %v45_v18 = vunpack.c.l.b16 %v25_v14  ;;  %v46_v19 = vunpack.c.l.b16 %v26_v15  ;;  %v648_v22 = vld [vmem:[%s934_s0] sm:$0xff]  ;;  %v649_v24 = vld [vmem:[%s934_s0 + $0x8] sm:$0xff]  ;;  %v47_v29 = vunpack.c.l.b16 %v27_v27  ;;  %397 = vmatpush.bf16.msra.mxu2 %v673_v53  ;;  %v672_v54 = vld [vmem:[%s931_s2 + $0xb0] sm:$0xff] }
   0x9   :  { %v48_v30 = vunpack.c.l.b16 %v28_v28  ;;  %v693_v32 = vld [vmem:[%s932_s3] ss:$0 sm:$0xff]  ;;  %v671_v55 = vld [vmem:[%s931_s2 + $0xa8] sm:$0xff]  ;;  %v669_v57 = vld [vmem:[%s931_s2 + $0x98] sm:$0xff] }
   0xa   :  { %185 = vmatpush.bf16.msra.mxu0 %v655_v4  ;;  %687 = vmatpush.bf16.msra.mxu3 %v655_v4  ;;  %v49_v23 = vpack.c.b16 %v46_v19, %v45_v18  ;;  %v670_v56 = vld [vmem:[%s931_s2 + $0xa0] sm:$0xff]  ;;  %v668_v63 = vld [vmem:[%s931_s2 + $0x90] sm:$0xff]  ;;  %v667_v2 = vld [vmem:[%s931_s2 + $0x88] sm:$0xff] }
   0xb   :  { %204 = vmatpush.bf16.msra.mxu1 %v663_v5  ;;  %v50_v31 = vpack.c.b16 %v48_v30, %v47_v29 }
   0xc   :  { %398 = vmatpush.bf16.msra.mxu2 %v672_v54  ;;  %v695_v54 = vld [vmem:[%s932_s3 + $0x2] ss:$0 sm:$0xff] }
   0xe   :  { %186 = vmatpush.bf16.msra.mxu0 %v654_v6  ;;  %688 = vmatpush.bf16.msra.mxu3 %v654_v6 }
   0xf   :  { %205 = vmatpush.bf16.msra.mxu1 %v662_v7 }
  0x10   :  { %399 = vmatpush.bf16.msra.mxu2 %v671_v55 }
  0x12   :  { %187 = vmatpush.bf16.msra.mxu0 %v653_v8  ;;  %689 = vmatpush.bf16.msra.mxu3 %v653_v8  ;;  %v666_v8 = vld [vmem:[%s931_s2 + $0x80] sm:$0xff] }
  0x13   :  { %206 = vmatpush.bf16.msra.mxu1 %v661_v9 }
  0x14   :  { %400 = vmatpush.bf16.msra.mxu2 %v670_v56 }
  0x16   :  { %188 = vmatpush.bf16.msra.mxu0 %v652_v10  ;;  %690 = vmatpush.bf16.msra.mxu3 %v652_v10 }
  0x17   :  { %207 = vmatpush.bf16.msra.mxu1 %v660_v11 }
  0x18   :  { %401 = vmatpush.bf16.msra.mxu2 %v669_v57 }
  0x1a   :  { %189 = vmatpush.bf16.msra.mxu0 %v651_v16  ;;  %691 = vmatpush.bf16.msra.mxu3 %v651_v16 }
  0x1b   :  { %208 = vmatpush.bf16.msra.mxu1 %v659_v17 }
  0x1c   :  { %402 = vmatpush.bf16.msra.mxu2 %v668_v63 }
  0x1e   :  { %190 = vmatpush.bf16.msra.mxu0 %v650_v20  ;;  %692 = vmatpush.bf16.msra.mxu3 %v650_v20 }
  0x1f   :  { %209 = vmatpush.bf16.msra.mxu1 %v658_v21 }
  0x20   :  { %403 = vmatpush.bf16.msra.mxu2 %v667_v2 }
  0x21   :  { %191 = vmatmul.bf16.vlgmr.msra.gmra.mxu0 %v648_v22  ;;  %196 = vmatmul.bf16.vlgmr.msra.gmra.mxu3 %v649_v24 }
  0x22   :  { %210 = vmatmul.bf16.vlgmr.msra.gmra.mxu1 %v49_v23 }
  0x24   :  { %404 = vmatpush.bf16.msra.mxu2 %v666_v8 }
  0x32   :  { %215 = vmatmul.bf16.gmra.mxu1 %v50_v31 }
  0x9e   :  { %v192_v33 = vpop.f32.mrf.mxu0 }
  0x9f   :  { %v211_v34 = vpop.f32.mrf.mxu1  ;;  %v193_v35 = vadd.f32 %v693_v32, %v192_v33 }
  0xa1   :  { %v809_v36 = vadd.f32 %v211_v34, %v193_v35 }
  0xa3   :  { %223 = vadd.xlane.f32.xlu0 %v809_v36  ;;  %v231_v37 = vmul.f32 %v809_v36, %v809_v36 }
  0xa4   :  { %v197_v41 = vpop.f32.mrf.mxu3 }
  0xa5   :  { %235 = vadd.xlane.f32.xlu1 %v231_v37  ;;  %v198_v43 = vadd.f32 %v693_v32, %v197_v41 }
  0xa6   :  { %v194_v38 = vpop.f32.mrf.mxu0 }
  0xa7   :  { %v213_v39 = vpop.f32.mrf.mxu1  ;;  %v195_v40 = vadd.f32 %v693_v32, %v194_v38 }
  0xa9   :  { %v814_v42 = vadd.f32 %v213_v39, %v195_v40 }
  0xab   :  { %225 = vadd.xlane.f32.xlu0 %v814_v42  ;;  %v232_v44 = vmul.f32 %v814_v42, %v814_v42 }
  0xac   :  { %v199_v48 = vpop.f32.mrf.mxu3 }
  0xad   :  { %237 = vadd.xlane.f32.xlu1 %v232_v44  ;;  %v200_v49 = vadd.f32 %v693_v32, %v199_v48 }
  0xaf   :  { %v216_v45 = vpop.f32.mrf.mxu1 }
  0xb0   :  { %v819_v46 = vadd.f32 %v216_v45, %v198_v43 }
  0xb2   :  { %227 = vadd.xlane.f32.xlu2 %v819_v46  ;;  %v233_v47 = vmul.f32 %v819_v46, %v819_v46 }
  0xb4   :  { %239 = vadd.xlane.f32.xlu0 %v233_v47  ;;  %v694_v47 = vld [vmem:[%s932_s3 + $0x1] ss:$0 sm:$0xff] }
  0xb7   :  { %v218_v50 = vpop.f32.mrf.mxu1 }
  0xb8   :  { %v824_v51 = vadd.f32 %v218_v50, %v200_v49 }
  0xba   :  { %229 = vadd.xlane.f32.xlu2 %v824_v51  ;;  %v234_v52 = vmul.f32 %v824_v51, %v824_v51 }
  0xbc   :  { %241 = vadd.xlane.f32.xlu1 %v234_v52 }
 0x116   :  { %v224_v58 = vpop.xlane.xlu0 %223 }
 0x117   :  { %v243_v59 = vmul.f32 0.0078125, %v224_v58 }
 0x118   :  { %v236_v60 = vpop.xlane.xlu1 %235 }
 0x119   :  { %v251_v61 = vmul.f32 %v243_v59, %v243_v59  ;;  %v247_v62 = vmul.f32 0.0078125, %v236_v60  ;;  %v263_v38 = vsub.f32 %v809_v36, %v243_v59 }
 0x11b   :  { %v255_v0 = vsub.f32 %v247_v62, %v251_v61 }
 0x11d   :  { %v259_v1 = vmax.f32 %v255_v0, 0.0 }
 0x11e   :  { %v226_v3 = vpop.xlane.xlu0 %225 }
 0x11f   :  { %v267_v4 = vadd.f32 1e-05, %v259_v1  ;;  %v244_v5 = vmul.f32 0.0078125, %v226_v3 }
 0x120   :  { %v238_v6 = vpop.xlane.xlu1 %237 }
 0x121   :  { %699 = vrsqrt.f32 %v267_v4  ;;  %v252_v7 = vmul.f32 %v244_v5, %v244_v5  ;;  %v248_v9 = vmul.f32 0.0078125, %v238_v6  ;;  %vm277_vm1 = vweird.f32 %v267_v4 }
 0x122   :  { %v264_v52 = vsub.f32 %v814_v42, %v244_v5 }
 0x123   :  { %v256_v10 = vsub.f32 %v248_v9, %v252_v7 }
 0x125   :  { %v228_v11 = vpop.xlane.xlu2 %227  ;;  %v260_v13 = vmax.f32 %v256_v10, 0.0 }
 0x126   :  { %v853_v12 = vmul.f32 0.0078125, %v228_v11 }
 0x127   :  { %v240_v14 = vpop.xlane.xlu0 %239  ;;  %v700_v15 = vpop.eup %699  ;;  %v268_v19 = vadd.f32 1e-05, %v260_v13 }
 0x128   :  { %v253_v16 = vmul.f32 %v853_v12, %v853_v12  ;;  %v249_v17 = vmul.f32 0.0078125, %v240_v14  ;;  %v272_v18 = vmul.f32 %v700_v15, %v267_v4  ;;  %vm278_vm0 = vweird.f32 %v700_v15 }
 0x129   :  { %701 = vrsqrt.f32 %v268_v19  ;;  %vm279_vm2 = vmor %vm277_vm1, %vm278_vm0  ;;  %vm287_vm4 = vweird.f32 %v268_v19  ;;  %v265_v4 = vsub.f32 %v819_v46, %v853_v12  ;;  %v696_v12 = vld [vmem:[%s932_s3 + $0x3] ss:$0 sm:$0xff] }
 0x12a   :  { %v257_v20 = vsub.f32 %v249_v17, %v253_v16  ;;  %v273_v21 = vmul.f32 %v700_v15, %v272_v18 }
 0x12c   :  { %v261_v22 = vmax.f32 %v257_v20, 0.0  ;;  %v274_v23 = vmul.f32 0.5, %v273_v21 }
 0x12d   :  { %v230_v24 = vpop.xlane.xlu2 %229 }
 0x12e   :  { %v269_v25 = vadd.f32 1e-05, %v261_v22  ;;  %v857_v26 = vmul.f32 0.0078125, %v230_v24  ;;  %v275_v27 = vsub.f32 1.5, %v274_v23 }
 0x12f   :  { %v242_v28 = vpop.xlane.xlu1 %241  ;;  %v702_v30 = vpop.eup %701 }
 0x130   :  { %703 = vrsqrt.f32 %v269_v25  ;;  %v254_v29 = vmul.f32 %v857_v26, %v857_v26  ;;  %v276_v31 = vmul.f32 %v700_v15, %v275_v27  ;;  %v250_v32 = vmul.f32 0.0078125, %v242_v28 }
 0x131   :  { %v282_v33 = vmul.f32 %v702_v30, %v268_v19  ;;  %vm288_vm3 = vweird.f32 %v702_v30  ;;  %vm297_vm7 = vweird.f32 %v269_v25  ;;  %v266_v9 = vsub.f32 %v824_v51, %v857_v26 }
 0x132   :  { %v258_v34 = vsub.f32 %v250_v32, %v254_v29  ;;  %v280_v37 = vsel %vm279_vm2, %v700_v15, %v276_v31  ;;  %vm289_vm5 = vmor %vm287_vm4, %vm288_vm3 }
 0x133   :  { %v283_v35 = vmul.f32 %v702_v30, %v282_v33  ;;  %v311_v45 = vmul.f32 %v280_v37, %v263_v38 }
 0x134   :  { %v262_v39 = vmax.f32 %v258_v34, 0.0 }
 0x135   :  { %v284_v41 = vmul.f32 0.5, %v283_v35  ;;  %v316_v53 = vmul.f32 %v694_v47, %v311_v45 }
 0x136   :  { %v704_v40 = vpop.eup %703  ;;  %v270_v44 = vadd.f32 1e-05, %v262_v39 }
 0x137   :  { %v292_v43 = vmul.f32 %v704_v40, %v269_v25  ;;  %v285_v48 = vsub.f32 1.5, %v284_v41  ;;  %v321_v60 = vadd.f32 %v695_v54, %v316_v53  ;;  %vm298_vm6 = vweird.f32 %v704_v40 }
 0x138   :  { %705 = vrsqrt.f32 %v270_v44  ;;  %vm299_vm8 = vmor %vm297_vm7, %vm298_vm6  ;;  %vm307_vm10 = vweird.f32 %v270_v44 }
 0x139   :  { %v293_v49 = vmul.f32 %v704_v40, %v292_v43  ;;  %v286_v50 = vmul.f32 %v702_v30, %v285_v48  ;;  %v325_v42 = vmax.f32 %v321_v60, 0.0 }
 0x13b   :  { %v294_v36 = vmul.f32 0.5, %v293_v49  ;;  %v290_v55 = vsel %vm289_vm5, %v702_v30, %v286_v50 }
 0x13c   :  { %v312_v57 = vmul.f32 %v290_v55, %v264_v52 }
 0x13d   :  { %v295_v56 = vsub.f32 1.5, %v294_v36 }
 0x13e   :  { %v706_v58 = vpop.eup %705  ;;  %v317_v59 = vmul.f32 %v694_v47, %v312_v57 }
 0x13f   :  { %v296_v61 = vmul.f32 %v704_v40, %v295_v56  ;;  %v302_v62 = vmul.f32 %v706_v58, %v270_v44  ;;  %vm308_vm9 = vweird.f32 %v706_v58 }
 0x140   :  { %v322_v63 = vadd.f32 %v695_v54, %v317_v59  ;;  %vm309_vm11 = vmor %vm307_vm10, %vm308_vm9 }
 0x141   :  { %v303_v0 = vmul.f32 %v706_v58, %v302_v62  ;;  %v300_v3 = vsel %vm299_vm8, %v704_v40, %v296_v61 }
 0x142   :  { %v326_v1 = vmax.f32 %v322_v63, 0.0  ;;  %v313_v7 = vmul.f32 %v300_v3, %v265_v4 }
 0x143   :  { %v304_v2 = vmul.f32 0.5, %v303_v0 }
 0x144   :  { %v329_v5 = vpack.c.bf16 %v326_v1, %v325_v42  ;;  %v318_v13 = vmul.f32 %v694_v47, %v313_v7 }
 0x145   :  { %v305_v6 = vsub.f32 1.5, %v304_v2 }
 0x146   :  { %405 = vmatmul.bf16.vlgmr.msra.gmra.mxu2 %v329_v5  ;;  %v323_v15 = vadd.f32 %v695_v54, %v318_v13  ;;  %v697_v13 = vld [vmem:[%s932_s3 + $0x4] ss:$0 sm:$0xff] }
 0x147   :  { %v306_v8 = vmul.f32 %v706_v58, %v305_v6 }
 0x148   :  { %v327_v18 = vmax.f32 %v323_v15, 0.0 }
 0x149   :  { %v310_v10 = vsel %vm309_vm11, %v706_v58, %v306_v8 }
 0x14a   :  { %v314_v11 = vmul.f32 %v310_v10, %v266_v9 }
 0x14c   :  { %v319_v14 = vmul.f32 %v694_v47, %v314_v11 }
 0x14e   :  { %v324_v16 = vadd.f32 %v695_v54, %v319_v14 }
 0x150   :  { %v328_v17 = vmax.f32 %v324_v16, 0.0 }
 0x152   :  { %v330_v46 = vpack.c.bf16 %v328_v17, %v327_v18 }
 0x156   :  { %410 = vmatmul.bf16.gmra.mxu2 %v330_v46 }
 0x1c9   :  { %v406_v19 = vpop.f32.mrf.mxu2 }
 0x1ca   :  { %v876_v20 = vadd.f32 %v696_v12, %v406_v19 }
 0x1cc   :  { %418 = vadd.xlane.f32.xlu2 %v876_v20  ;;  %v426_v51 = vmul.f32 %v876_v20, %v876_v20 }
 0x1ce   :  { %430 = vadd.xlane.f32.xlu0 %v426_v51 }
 0x1d1   :  { %v408_v21 = vpop.f32.mrf.mxu2 }
 0x1d2   :  { %v881_v22 = vadd.f32 %v696_v12, %v408_v21 }
 0x1d4   :  { %v427_v27 = vmul.f32 %v881_v22, %v881_v22 }
 0x1d6   :  { %420 = vadd.xlane.f32.xlu0 %v881_v22 }
 0x1d9   :  { %v411_v23 = vpop.f32.mrf.mxu2 }
 0x1da   :  { %v884_v24 = vadd.f32 %v696_v12, %v411_v23 }
 0x1dc   :  { %422 = vadd.xlane.f32.xlu1 %v884_v24  ;;  %v428_v29 = vmul.f32 %v884_v24, %v884_v24 }
 0x1e1   :  { %v413_v25 = vpop.f32.mrf.mxu2 }
 0x1e2   :  { %v887_v26 = vadd.f32 %v696_v12, %v413_v25  ;;  %v698_v12 = vld [vmem:[%s932_s3 + $0x5] ss:$0 sm:$0xff] }
 0x1e4   :  { %424 = vadd.xlane.f32.xlu2 %v887_v26  ;;  %432 = vadd.xlane.f32.xlu1 %v427_v27  ;;  %v429_v28 = vmul.f32 %v887_v26, %v887_v26 }
 0x1e6   :  { %436 = vadd.xlane.f32.xlu0 %v429_v28 }
 0x1ec   :  { %434 = vadd.xlane.f32.xlu2 %v428_v29 }
 0x23f   :  { %v419_v30 = vpop.xlane.xlu2 %418 }
 0x240   :  { %v438_v31 = vmul.f32 0.0078125, %v419_v30 }
 0x241   :  { %v431_v32 = vpop.xlane.xlu0 %430 }
 0x242   :  { %v446_v33 = vmul.f32 %v438_v31, %v438_v31  ;;  %v442_v34 = vmul.f32 0.0078125, %v431_v32  ;;  %v458_v9 = vsub.f32 %v876_v20, %v438_v31  ;;  %v17_v32 = vld [vmem:[%s934_s0] sm:$0xf] }
 0x244   :  { %v450_v35 = vsub.f32 %v442_v34, %v446_v33 }
 0x246   :  { %v454_v37 = vmax.f32 %v450_v35, 0.0 }
 0x248   :  { %v462_v38 = vadd.f32 1e-05, %v454_v37 }
 0x249   :  { %v421_v41 = vpop.xlane.xlu0 %420 }
 0x24a   :  { %707 = vrsqrt.f32 %v462_v38  ;;  %v439_v44 = vmul.f32 0.0078125, %v421_v41  ;;  %vm472_vm13 = vweird.f32 %v462_v38  ;;  %v524_v41 = vunpack.c.l.bf16 %v17_v32 }
 0x24c   :  { %v447_v49 = vmul.f32 %v439_v44, %v439_v44  ;;  %v459_v23 = vsub.f32 %v881_v22, %v439_v44  ;;  %v18_v22 = vld [vmem:[%s934_s0 + $0x4] sm:$0xff]  }
 0x24f   :  { %v423_v39 = vpop.xlane.xlu1 %422 }
 0x250   :  { %v708_v40 = vpop.eup %707  ;;  %v900_v57 = vmul.f32 0.0078125, %v423_v39 }
 0x251   :  { %v467_v43 = vmul.f32 %v708_v40, %v462_v38  ;;  %vm473_vm12 = vweird.f32 %v708_v40 }
 0x252   :  { %v448_v0 = vmul.f32 %v900_v57, %v900_v57  ;;  %vm474_vm14 = vmor %vm472_vm13, %vm473_vm12 }
 0x253   :  { %v468_v45 = vmul.f32 %v708_v40, %v467_v43  ;;  %v525_v43 = vunpack.c.l.bf16 %v18_v22 }
 0x255   :  { %v469_v55 = vmul.f32 0.5, %v468_v45 }
 0x257   :  { %v425_v47 = vpop.xlane.xlu2 %424  ;;  %v433_v48 = vpop.xlane.xlu1 %432  ;;  %v470_v61 = vsub.f32 1.5, %v469_v55 }
 0x258   :  { %v896_v50 = vmul.f32 0.0078125, %v425_v47  ;;  %v443_v52 = vmul.f32 0.0078125, %v433_v48 }
 0x259   :  { %v437_v36 = vpop.xlane.xlu0 %436  ;;  %v471_v3 = vmul.f32 %v708_v40, %v470_v61 }
 0x25a   :  { %v449_v53 = vmul.f32 %v896_v50, %v896_v50  ;;  %v451_v54 = vsub.f32 %v443_v52, %v447_v49  ;;  %v445_v56 = vmul.f32 0.0078125, %v437_v36  ;;  %v461_v33 = vsub.f32 %v887_v26, %v896_v50 }
 0x25b   :  { %v475_v7 = vsel %vm474_vm14, %v708_v40, %v471_v3  ;;  %v460_v26 = vsub.f32 %v884_v24, %v900_v57  ;;  %v526_v24 = vunpack.c.h.bf16 %v18_v22 }
 0x25c   :  { %v455_v58 = vmax.f32 %v451_v54, 0.0  ;;  %v453_v59 = vsub.f32 %v445_v56, %v449_v53  ;;  %v506_v14 = vmul.f32 %v475_v7, %v458_v9  ;;  %v20_v54 = vld [vmem:[%s934_s0 + $0xc] sm:$0xf] }
 0x25e   :  { %v463_v60 = vadd.f32 1e-05, %v455_v58  ;;  %v457_v62 = vmax.f32 %v453_v59, 0.0  ;;  %v511_v19 = vmul.f32 %v697_v13, %v506_v14  ;;  %v527_v58 = vunpack.c.l.bf16 %v20_v54 }
 0x25f   :  { %v435_v63 = vpop.xlane.xlu2 %434 }
 0x260   :  { %709 = vrsqrt.f32 %v463_v60  ;;  %v444_v42 = vmul.f32 0.0078125, %v435_v63  ;;  %v465_v1 = vadd.f32 1e-05, %v457_v62  ;;  %vm482_vm0 = vweird.f32 %v463_v60 }
 0x261   :  { %v516_v29 = vadd.f32 %v698_v12, %v511_v19 }
 0x262   :  { %v452_v2 = vsub.f32 %v444_v42, %v448_v0  ;;  %711 = vrsqrt.f32 %v465_v1  ;;  %vm502_vm3 = vweird.f32 %v465_v1 }
 0x263   :  { %v520_v40 = vmax.f32 %v516_v29, 0.0 }
 0x264   :  { %v456_v4 = vmax.f32 %v452_v2, 0.0 }
 0x265   :  { %v528_v50 = vadd.f32 %v524_v41, %v520_v40 }
 0x266   :  { %v710_v5 = vpop.eup %709  ;;  %v464_v6 = vadd.f32 1e-05, %v456_v4 }
 0x267   :  { %v477_v8 = vmul.f32 %v710_v5, %v463_v60  ;;  %vm483_vm15 = vweird.f32 %v710_v5 }
 0x268   :  { %713 = vrsqrt.f32 %v464_v6  ;;  %v712_v10 = vpop.eup %711  ;;  %vm484_vm1 = vmor %vm482_vm0, %vm483_vm15  ;;  %vm492_vm6 = vweird.f32 %v464_v6 }
 0x269   :  { %v478_v11 = vmul.f32 %v710_v5, %v477_v8  ;;  %v497_v15 = vmul.f32 %v712_v10, %v465_v1  ;;  %vm503_vm2 = vweird.f32 %v712_v10 }
 0x26a   :  { %vm504_vm4 = vmor %vm502_vm3, %vm503_vm2 }
 0x26b   :  { %v479_v16 = vmul.f32 0.5, %v478_v11  ;;  %v498_v17 = vmul.f32 %v712_v10, %v497_v15 }
 0x26d   :  { %v480_v18 = vsub.f32 1.5, %v479_v16  ;;  %v499_v20 = vmul.f32 0.5, %v498_v17 }
 0x26e   :  { %v714_v46 = vpop.eup %713 }
 0x26f   :  { %v481_v51 = vmul.f32 %v710_v5, %v480_v18  ;;  %v487_v21 = vmul.f32 %v714_v46, %v464_v6  ;;  %v500_v25 = vsub.f32 1.5, %v499_v20  ;;  %vm493_vm5 = vweird.f32 %v714_v46 }
 0x270   :  { %vm494_vm7 = vmor %vm492_vm6, %vm493_vm5 }
 0x271   :  { %v485_v27 = vsel %vm484_vm1, %v710_v5, %v481_v51  ;;  %v488_v28 = vmul.f32 %v714_v46, %v487_v21  ;;  %v501_v31 = vmul.f32 %v712_v10, %v500_v25 }
 0x272   :  { %v507_v30 = vmul.f32 %v485_v27, %v459_v23 }
 0x273   :  { %v489_v34 = vmul.f32 0.5, %v488_v28  ;;  %v505_v37 = vsel %vm504_vm4, %v712_v10, %v501_v31 }
 0x274   :  { %v512_v35 = vmul.f32 %v697_v13, %v507_v30  ;;  %v509_v38 = vmul.f32 %v505_v37, %v461_v33 }
 0x275   :  { %v490_v39 = vsub.f32 1.5, %v489_v34 }
 0x276   :  { %v517_v44 = vadd.f32 %v698_v12, %v512_v35  ;;  %v514_v45 = vmul.f32 %v697_v13, %v509_v38 }
 0x277   :  { %v491_v47 = vmul.f32 %v714_v46, %v490_v39 }
 0x278   :  { %v521_v48 = vmax.f32 %v517_v44, 0.0  ;;  %v519_v36 = vadd.f32 %v698_v12, %v514_v45 }
 0x279   :  { %v495_v49 = vsel %vm494_vm7, %v714_v46, %v491_v47 }
 0x27a   :  { %v529_v52 = vadd.f32 %v525_v43, %v521_v48  ;;  %v508_v53 = vmul.f32 %v495_v49, %v460_v26  ;;  %v523_v59 = vmax.f32 %v519_v36, 0.0 }
 0x27c   :  { %v677_v55 = vpack.c.bf16 %v529_v52, %v528_v50  ;;  %v513_v56 = vmul.f32 %v697_v13, %v508_v53  ;;  %v531_v61 = vadd.f32 %v527_v58, %v523_v59 }
 0x27e   :  { %678 = vst [vmem:[%s935_s4] sm:$0xff] %v677_v55   ;;  %v518_v57 = vadd.f32 %v698_v12, %v513_v56 }
 0x280   :  { %v522_v60 = vmax.f32 %v518_v57, 0.0 }
 0x282   :  { %v530_v62 = vadd.f32 %v526_v24, %v522_v60 }
 0x284   :  { %v682_v63 = vpack.c.bf16 %v531_v61, %v530_v62 }
 0x286   :  { %684 = vst [vmem:[%s935_s4 + $0x8] sm:$0xff] %v682_v63  }

// kernel: egnn_forward.10
= control target key start
LH: loop header
LB: loop body
LE: loop exit
PB: predicated region body
PF: predicated region fallthrough
CT: control target
= control target key end

     0   :  { %vm31_vm0 = vcmask 23552   ;;  %s1506_s0 = inlined_call_operand.vmem [shape: bf16[32,128], index: 0, kind: input, shape index: {}]   ;;  %s1507_s1 = inlined_call_operand.vmem [shape: bf16[32,128], index: 1, kind: input, shape index: {}]   ;;  %s1508_s2 = inlined_call_operand.vmem [shape: f32[32,3], index: 2, kind: input, shape index: {}]   ;;  %s1509_s3 = inlined_call_operand.vmem [shape: bf16[512,128], index: 3, kind: input, shape index: {}]   ;;  %s1510_s4 = inlined_call_operand.vmem [shape: f32[12,128], index: 4, kind: input, shape index: {}]   ;;  %s1511_s5 = inlined_call_operand.vmem [shape: bf16[32,128], index: 5, kind: output, shape index: {0}]   ;;  %s1512_s6 = inlined_call_operand.hbm [shape: f32[32,3], index: 6, kind: output, shape index: {1}]  }
   0x1   :  { %v1043_v0 = vld [vmem:[%s1509_s3 + $0x38] sm:$0xff]  ;;  %v23_v2 = vld [vmem:[%s1508_s2] sm:$0xff]  ;;  %v1042_v4 = vld [vmem:[%s1509_s3 + $0x30] sm:$0xff] }
   0x2   :  { %v1051_v1 = vld [vmem:[%s1509_s3 + $0x78] sm:$0xff]  ;;  %v27_v3 = vmul.f32 %v23_v2, %v23_v2  ;;  %258 = vmatpush.bf16.msra.mxu0 %v1043_v0  ;;  %v1050_v5 = vld [vmem:[%s1509_s3 + $0x70] sm:$0xff]  ;;  %v24_v6 = vld [vmem:[%s1508_s2 + $0x8] sm:$0xff] }
   0x3   :  { %277 = vmatpush.bf16.msra.mxu1 %v1051_v1  ;;  %v25_v8 = vld [vmem:[%s1508_s2 + $0x10] sm:$0xff]  ;;  %v28_v9 = vmul.f32 %v24_v6, %v24_v6  ;;  %v26_v11 = vld [vmem:[%s1508_s2 + $0x18] sm:$0xff]  ;;  %v1041_v12 = vld [vmem:[%s1509_s3 + $0x28] sm:$0xff] }
   0x4   :  { %v32_v7 = vsel %vm31_vm0, %v27_v3, 0.0  ;;  %v29_v10 = vmul.f32 %v25_v8, %v25_v8  ;;  %v1049_v13 = vld [vmem:[%s1509_s3 + $0x68] sm:$0xff]  ;;  %v1040_v16 = vld [vmem:[%s1509_s3 + $0x20] sm:$0xff]  ;;  %v30_v18 = vmul.f32 %v26_v11, %v26_v11 }
   0x5   :  { %33 = vadd.xlane.f32.xlu0 %v32_v7  ;;  %v35_v15 = vsel %vm31_vm0, %v28_v9, 0.0  ;;  %v1048_v17 = vld [vmem:[%s1509_s3 + $0x60] sm:$0xff] }
   0x6   :  { %259 = vmatpush.bf16.msra.mxu0 %v1042_v4  ;;  %v38_v14 = vsel %vm31_vm0, %v29_v10, 0.0  ;;  %v41_v19 = vsel %vm31_vm0, %v30_v18, 0.0 }
   0x7   :  { %278 = vmatpush.bf16.msra.mxu1 %v1050_v5  ;;  %39 = vadd.xlane.f32.xlu1 %v38_v14 }
   0xa   :  { %260 = vmatpush.bf16.msra.mxu0 %v1041_v12 }
   0xb   :  { %279 = vmatpush.bf16.msra.mxu1 %v1049_v13 }
   0xd   :  { %36 = vadd.xlane.f32.xlu0 %v35_v15 }
   0xe   :  { %12 = vsyncpa [#allocation3], 0  ;;  %261 = vmatpush.bf16.msra.mxu0 %v1040_v16  ;;  %v1039_v20 = vld [vmem:[%s1509_s3 + $0x18] sm:$0xff]  ;;  %v1038_v22 = vld [vmem:[%s1509_s3 + $0x10] sm:$0xff]  ;;  %s1161_s30 = smov [#allocation2]   ;;  %s874_s10 = sshll.u32 %s1512_s6, 4  ;;  %s875_s10 = int_to_ptr.hbm [resolvable:$true] %s874_s10 }
   0xf   :  { %280 = vmatpush.bf16.msra.mxu1 %v1048_v17  ;;  %v1047_v21 = vld [vmem:[%s1509_s3 + $0x58] sm:$0xff]  ;;  %42 = vadd.xlane.f32.xlu1 %v41_v19  ;;  %v1046_v23 = vld [vmem:[%s1509_s3 + $0x50] sm:$0xff]  ;;  %v1037_v24 = vld [vmem:[%s1509_s3 + $0x8] sm:$0xff]  ;;  %s872_s7 = sshll.u32 %s1161_s30, 4  ;;  %s1162_s12 = smov 128   ;;  %s873_s7 = int_to_ptr.vmem [resolvable:$true] %s872_s7 }
  0x10   :  { %v1045_v25 = vld [vmem:[%s1509_s3 + $0x48] sm:$0xff]  ;;  %v1036_v26 = vld [vmem:[%s1509_s3] sm:$0xff]  ;;  %s1163_s13 = smov 8  }
  0x11   :  { %v1044_v27 = vld [vmem:[%s1509_s3 + $0x40] sm:$0xff]  ;;  %v1033_v30 = vld [vmem:[%s1506_s0 + $0x8] sm:$0xff] }
  0x12   :  { %262 = vmatpush.bf16.msra.mxu0 %v1039_v20  ;;  %v1032_v28 = vld [vmem:[%s1506_s0] sm:$0xff]  ;;  %v1035_v31 = vld [vmem:[%s1507_s1 + $0x8] sm:$0xff] }
  0x13   :  { %281 = vmatpush.bf16.msra.mxu1 %v1047_v21  ;;  %v1034_v29 = vld [vmem:[%s1507_s1] sm:$0xff] }
  0x14   :  { %v1086_v57 = vld [vmem:[%s1510_s4] ss:$0 sm:$0xff]  ;;  %v1087_v2 = vld [vmem:[%s1510_s4 + $0x1] ss:$0 sm:$0xff] }
  0x16   :  { %263 = vmatpush.bf16.msra.mxu0 %v1038_v22 }
  0x17   :  { %282 = vmatpush.bf16.msra.mxu1 %v1046_v23 }
  0x1a   :  { %264 = vmatpush.bf16.msra.mxu0 %v1037_v24 }
  0x1b   :  { %283 = vmatpush.bf16.msra.mxu1 %v1045_v25 }
  0x1e   :  { %265 = vmatpush.bf16.msra.mxu0 %v1036_v26 }
  0x1f   :  { %284 = vmatpush.bf16.msra.mxu1 %v1044_v27 }
  0x21   :  { %266 = vmatmul.bf16.vlgmr.msra.gmra.mxu0 %v1032_v28 }
  0x22   :  { %285 = vmatmul.bf16.vlgmr.msra.gmra.mxu1 %v1034_v29 }
  0x31   :  { %271 = vmatmul.bf16.gmra.mxu0 %v1033_v30 }
  0x32   :  { %290 = vmatmul.bf16.gmra.mxu1 %v1035_v31 }
  0x78   :  { %v34_v32 = vpop.xlane.xlu0 %33 }
  0x79   :  { %1098 = vrsqrt.f32 %v34_v32  ;;  %vm51_vm1 = vcmp.eq.f32.partialorder %v34_v32, inf  ;;  %v54_v56 = vand.u32 2147483648, %v34_v32  ;;  %vm53_vm2 = vcmp.eq.f32.partialorder %v34_v32, 0.0 }
  0x7a   :  { %v40_v36 = vpop.xlane.xlu1 %39 }
  0x7b   :  { %vm75_vm5 = vcmp.eq.f32.partialorder %v40_v36, inf  ;;  %v78_v16 = vand.u32 2147483648, %v40_v36  ;;  %vm77_vm6 = vcmp.eq.f32.partialorder %v40_v36, 0.0 }
  0x7f   :  { %v1099_v33 = vpop.eup %1098 }
  0x80   :  { %v45_v34 = vmul.f32 %v1099_v33, %v34_v32  ;;  %v37_v35 = vpop.xlane.xlu0 %36 }
  0x81   :  { %1100 = vrsqrt.f32 %v37_v35  ;;  %vm63_vm3 = vcmp.eq.f32.partialorder %v37_v35, inf  ;;  %v66_v6 = vand.u32 2147483648, %v37_v35  ;;  %vm65_vm4 = vcmp.eq.f32.partialorder %v37_v35, 0.0 }
  0x82   :  { %v46_v37 = vmul.f32 %v1099_v33, %v45_v34  ;;  %1102 = vrsqrt.f32 %v40_v36  ;;  %v1275_v41 = vpop.xlane.xlu1 %42 }
  0x83   :  { %1104 = vrsqrt.f32 %v1275_v41  ;;  %vm87_vm7 = vcmp.eq.f32.partialorder %v1275_v41, inf  ;;  %v90_v28 = vand.u32 2147483648, %v1275_v41  ;;  %vm89_vm8 = vcmp.eq.f32.partialorder %v1275_v41, 0.0 }
  0x84   :  { %v47_v40 = vmul.f32 0.5, %v46_v37 }
  0x86   :  { %v48_v42 = vsub.f32 1.5, %v47_v40 }
  0x87   :  { %v1101_v38 = vpop.eup %1100 }
  0x88   :  { %v57_v39 = vmul.f32 %v1101_v38, %v37_v35  ;;  %v1103_v44 = vpop.eup %1102  ;;  %v49_v46 = vmul.f32 %v1099_v33, %v48_v42  ;;  %v1059_v42 = vld [vmem:[%s1509_s3 + $0xb8] sm:$0xff] }
  0x89   :  { %v69_v45 = vmul.f32 %v1103_v44, %v40_v36  ;;  %v1105_v51 = vpop.eup %1104  ;;  %478 = vmatpush.bf16.msra.mxu2 %v1059_v42  ;;  %v1089_v42 = vld [vmem:[%s1510_s4 + $0x3] ss:$0 sm:$0xff] }
  0x8a   :  { %v58_v43 = vmul.f32 %v1101_v38, %v57_v39  ;;  %v50_v48 = vmul.f32 %v49_v46, %v34_v32  ;;  %v81_v52 = vmul.f32 %v1105_v51, %v1275_v41  ;;  %v1055_v46 = vld [vmem:[%s1509_s3 + $0x98] sm:$0xff] }
  0x8b   :  { %v70_v50 = vmul.f32 %v1103_v44, %v69_v45  ;;  %v1056_v45 = vld [vmem:[%s1509_s3 + $0xa0] sm:$0xff] }
  0x8c   :  { %v59_v47 = vmul.f32 0.5, %v58_v43  ;;  %v52_v53 = vsel %vm51_vm1, %v34_v32, %v50_v48  ;;  %v82_v61 = vmul.f32 %v1105_v51, %v81_v52  ;;  %v1058_v43 = vld [vmem:[%s1509_s3 + $0xb0] sm:$0xff] }
  0x8d   :  { %v71_v55 = vmul.f32 0.5, %v70_v50  ;;  %v55_v58 = vsel %vm53_vm2, %v54_v56, %v52_v53  ;;  %479 = vmatpush.bf16.msra.mxu2 %v1058_v43  ;;  %v1054_v52 = vld [vmem:[%s1509_s3 + $0x90] sm:$0xff] }
  0x8e   :  { %v60_v49 = vsub.f32 1.5, %v59_v47  ;;  %v158_v62 = vmul.f32 %v1086_v57, %v55_v58  ;;  %v83_v5 = vmul.f32 0.5, %v82_v61  ;;  %v1052_v61 = vld [vmem:[%s1509_s3 + $0x80] sm:$0xff] }
  0x8f   :  { %v72_v60 = vsub.f32 1.5, %v71_v55  ;;  %v1053_v55 = vld [vmem:[%s1509_s3 + $0x88] sm:$0xff] }
  0x90   :  { %v61_v54 = vmul.f32 %v1101_v38, %v60_v49  ;;  %v84_v11 = vsub.f32 1.5, %v83_v5 }
  0x91   :  { %v73_v4 = vmul.f32 %v1103_v44, %v72_v60  ;;  %v1057_v44 = vld [vmem:[%s1509_s3 + $0xa8] sm:$0xff] }
  0x92   :  { %v62_v59 = vmul.f32 %v61_v54, %v37_v35  ;;  %v85_v19 = vmul.f32 %v1105_v51, %v84_v11  ;;  %480 = vmatpush.bf16.msra.mxu2 %v1057_v44 }
  0x93   :  { %v74_v10 = vmul.f32 %v73_v4, %v40_v36 }
  0x94   :  { %v64_v3 = vsel %vm63_vm3, %v37_v35, %v62_v59  ;;  %v86_v23 = vmul.f32 %v85_v19, %v1275_v41 }
  0x95   :  { %v67_v8 = vsel %vm65_vm4, %v66_v6, %v64_v3  ;;  %v76_v18 = vsel %vm75_vm5, %v40_v36, %v74_v10 }
  0x96   :  { %v159_v12 = vmul.f32 %v1086_v57, %v67_v8  ;;  %v79_v21 = vsel %vm77_vm6, %v78_v16, %v76_v18  ;;  %v88_v30 = vsel %vm87_vm7, %v1275_v41, %v86_v23  ;;  %481 = vmatpush.bf16.msra.mxu2 %v1056_v45 }
  0x97   :  { %v160_v24 = vmul.f32 %v1086_v57, %v79_v21  ;;  %v91_v32 = vsel %vm89_vm8, %v90_v28, %v88_v30 }
  0x98   :  { %v161_v34 = vmul.f32 %v1086_v57, %v91_v32  ;;  %v1088_v32 = vld [vmem:[%s1510_s4 + $0x2] ss:$0 sm:$0xff] }
  0x9a   :  { %482 = vmatpush.bf16.msra.mxu2 %v1055_v46 }
  0x9e   :  { %v267_v63 = vpop.f32.mrf.mxu0  ;;  %483 = vmatpush.bf16.msra.mxu2 %v1054_v52 }
  0x9f   :  { %v286_v0 = vpop.f32.mrf.mxu1  ;;  %v268_v1 = vadd.f32 %v267_v63, %v158_v62 }
  0xa1   :  { %v287_v7 = vadd.f32 %v286_v0, %v268_v1 }
  0xa2   :  { %484 = vmatpush.bf16.msra.mxu2 %v1053_v55 }
  0xa3   :  { %v1285_v9 = vadd.f32 %v1087_v2, %v287_v7 }
  0xa5   :  { %304 = vadd.xlane.f32.xlu2 %v1285_v9  ;;  %v312_v13 = vmul.f32 %v1285_v9, %v1285_v9 }
  0xa6   :  { %v269_v14 = vpop.f32.mrf.mxu0  ;;  %485 = vmatpush.bf16.msra.mxu2 %v1052_v61 }
  0xa7   :  { %v288_v15 = vpop.f32.mrf.mxu1  ;;  %v270_v17 = vadd.f32 %v269_v14, %v159_v12  ;;  %316 = vadd.xlane.f32.xlu0 %v312_v13 }
  0xa9   :  { %v289_v20 = vadd.f32 %v288_v15, %v270_v17 }
  0xab   :  { %v1290_v22 = vadd.f32 %v1087_v2, %v289_v20 }
  0xad   :  { %306 = vadd.xlane.f32.xlu2 %v1290_v22  ;;  %v313_v25 = vmul.f32 %v1290_v22, %v1290_v22 }
  0xae   :  { %v272_v26 = vpop.f32.mrf.mxu0 }
  0xaf   :  { %v291_v27 = vpop.f32.mrf.mxu1  ;;  %v273_v29 = vadd.f32 %v272_v26, %v160_v24  ;;  %318 = vadd.xlane.f32.xlu1 %v313_v25 }
  0xb1   :  { %v292_v31 = vadd.f32 %v291_v27, %v273_v29 }
  0xb3   :  { %v1300_v33 = vadd.f32 %v1087_v2, %v292_v31 }
  0xb5   :  { %308 = vadd.xlane.f32.xlu2 %v1300_v33  ;;  %v314_v35 = vmul.f32 %v1300_v33, %v1300_v33 }
  0xb6   :  { %v274_v36 = vpop.f32.mrf.mxu0 }
  0xb7   :  { %v275_v37 = vadd.f32 %v274_v36, %v161_v34  ;;  %320 = vadd.xlane.f32.xlu1 %v314_v35  ;;  %v293_v38 = vpop.f32.mrf.mxu1 }
  0xb9   :  { %v294_v39 = vadd.f32 %v293_v38, %v275_v37 }
  0xbb   :  { %v1305_v40 = vadd.f32 %v1087_v2, %v294_v39 }
  0xbd   :  { %310 = vadd.xlane.f32.xlu0 %v1305_v40  ;;  %v315_v41 = vmul.f32 %v1305_v40, %v1305_v40 }
  0xbf   :  { %322 = vadd.xlane.f32.xlu2 %v315_v41 }
 0x118   :  { %v305_v47 = vpop.xlane.xlu2 %304 }
 0x119   :  { %v324_v48 = vmul.f32 0.0078125, %v305_v47 }
 0x11a   :  { %v317_v49 = vpop.xlane.xlu0 %316 }
 0x11b   :  { %v332_v50 = vmul.f32 %v324_v48, %v324_v48  ;;  %v328_v51 = vmul.f32 0.0078125, %v317_v49  ;;  %v344_v27 = vsub.f32 %v1285_v9, %v324_v48 }
 0x11d   :  { %v336_v53 = vsub.f32 %v328_v51, %v332_v50 }
 0x11f   :  { %v340_v54 = vmax.f32 %v336_v53, 0.0 }
 0x120   :  { %v307_v56 = vpop.xlane.xlu2 %306 }
 0x121   :  { %v348_v57 = vadd.f32 1e-05, %v340_v54  ;;  %v325_v58 = vmul.f32 0.0078125, %v307_v56 }
 0x122   :  { %v319_v59 = vpop.xlane.xlu1 %318 }
 0x123   :  { %1106 = vrsqrt.f32 %v348_v57  ;;  %v333_v60 = vmul.f32 %v325_v58, %v325_v58  ;;  %v329_v62 = vmul.f32 0.0078125, %v319_v59  ;;  %vm358_vm10 = vweird.f32 %v348_v57 }
 0x124   :  { %v345_v39 = vsub.f32 %v1290_v22, %v325_v58 }
 0x125   :  { %v337_v63 = vsub.f32 %v329_v62, %v333_v60 }
 0x127   :  { %v341_v0 = vmax.f32 %v337_v63, 0.0 }
 0x128   :  { %v309_v1 = vpop.xlane.xlu2 %308 }
 0x129   :  { %v1107_v2 = vpop.eup %1106  ;;  %v1334_v3 = vmul.f32 0.0078125, %v309_v1  ;;  %v349_v5 = vadd.f32 1e-05, %v341_v0 }
 0x12a   :  { %v353_v4 = vmul.f32 %v1107_v2, %v348_v57  ;;  %v321_v6 = vpop.xlane.xlu1 %320  ;;  %vm359_vm9 = vweird.f32 %v1107_v2 }
 0x12b   :  { %v334_v7 = vmul.f32 %v1334_v3, %v1334_v3  ;;  %v330_v8 = vmul.f32 0.0078125, %v321_v6  ;;  %1108 = vrsqrt.f32 %v349_v5  ;;  %vm360_vm11 = vmor %vm358_vm10, %vm359_vm9  ;;  %vm368_vm13 = vweird.f32 %v349_v5 }
 0x12c   :  { %v354_v10 = vmul.f32 %v1107_v2, %v353_v4  ;;  %v346_v56 = vsub.f32 %v1300_v33, %v1334_v3  ;;  %v1090_v3 = vld [vmem:[%s1510_s4 + $0x4] ss:$0 sm:$0xff] }
 0x12d   :  { %v338_v11 = vsub.f32 %v330_v8, %v334_v7 }
 0x12e   :  { %v355_v12 = vmul.f32 0.5, %v354_v10 }
 0x12f   :  { %v342_v13 = vmax.f32 %v338_v11, 0.0 }
 0x130   :  { %v356_v14 = vsub.f32 1.5, %v355_v12  ;;  %v311_v15 = vpop.xlane.xlu0 %310 }
 0x131   :  { %v350_v16 = vadd.f32 1e-05, %v342_v13  ;;  %v327_v17 = vmul.f32 0.0078125, %v311_v15  ;;  %v1109_v18 = vpop.eup %1108 }
 0x132   :  { %v357_v19 = vmul.f32 %v1107_v2, %v356_v14  ;;  %v323_v20 = vpop.xlane.xlu2 %322  ;;  %v363_v21 = vmul.f32 %v1109_v18, %v349_v5  ;;  %vm369_vm12 = vweird.f32 %v1109_v18 }
 0x133   :  { %1110 = vrsqrt.f32 %v350_v16  ;;  %v335_v23 = vmul.f32 %v327_v17, %v327_v17  ;;  %v331_v24 = vmul.f32 0.0078125, %v323_v20  ;;  %vm370_vm14 = vmor %vm368_vm13, %vm369_vm12  ;;  %vm378_vm1 = vweird.f32 %v350_v16  ;;  %v1067_v20 = vld [vmem:[%s1509_s3 + $0xf8] sm:$0xff] }
 0x134   :  { %v364_v25 = vmul.f32 %v1109_v18, %v363_v21  ;;  %v361_v26 = vsel %vm360_vm11, %v1107_v2, %v357_v19  ;;  %v347_v62 = vsub.f32 %v1305_v40, %v327_v17  ;;  %691 = vmatpush.bf16.msra.mxu3 %v1067_v20  ;;  %v1066_v21 = vld [vmem:[%s1509_s3 + $0xf0] sm:$0xff] }
 0x135   :  { %v339_v28 = vsub.f32 %v331_v24, %v335_v23  ;;  %v392_v31 = vmul.f32 %v361_v26, %v344_v27  ;;  %v1065_v23 = vld [vmem:[%s1509_s3 + $0xe8] sm:$0xff]  ;;  %v1064_v24 = vld [vmem:[%s1509_s3 + $0xe0] sm:$0xff] }
 0x136   :  { %v365_v29 = vmul.f32 0.5, %v364_v25 }
 0x137   :  { %v343_v30 = vmax.f32 %v339_v28, 0.0  ;;  %v397_v9 = vmul.f32 %v1088_v32, %v392_v31 }
 0x138   :  { %v366_v35 = vsub.f32 1.5, %v365_v29  ;;  %692 = vmatpush.bf16.msra.mxu3 %v1066_v21 }
 0x139   :  { %v1111_v34 = vpop.eup %1110  ;;  %v351_v37 = vadd.f32 1e-05, %v343_v30  ;;  %v402_v48 = vadd.f32 %v1089_v42, %v397_v9  ;;  %v1063_v30 = vld [vmem:[%s1509_s3 + $0xd8] sm:$0xff] }
 0x13a   :  { %v373_v36 = vmul.f32 %v1111_v34, %v350_v16  ;;  %v367_v38 = vmul.f32 %v1109_v18, %v366_v35  ;;  %vm379_vm15 = vweird.f32 %v1111_v34 }
 0x13b   :  { %1112 = vrsqrt.f32 %v351_v37  ;;  %vm380_vm2 = vmor %vm378_vm1, %vm379_vm15  ;;  %v406_v52 = vmax.f32 %v402_v48, 0.0  ;;  %vm388_vm4 = vweird.f32 %v351_v37 }
 0x13c   :  { %v374_v41 = vmul.f32 %v1111_v34, %v373_v36  ;;  %v371_v43 = vsel %vm370_vm14, %v1109_v18, %v367_v38  ;;  %693 = vmatpush.bf16.msra.mxu3 %v1065_v23 }
 0x13d   :  { %v393_v45 = vmul.f32 %v371_v43, %v345_v39  ;;  %v1060_v43 = vld [vmem:[%s1509_s3 + $0xc0] sm:$0xff] }
 0x13e   :  { %v375_v44 = vmul.f32 0.5, %v374_v41  ;;  %v1061_v41 = vld [vmem:[%s1509_s3 + $0xc8] sm:$0xff] }
 0x13f   :  { %v398_v47 = vmul.f32 %v1088_v32, %v393_v45 }
 0x140   :  { %v376_v46 = vsub.f32 1.5, %v375_v44  ;;  %694 = vmatpush.bf16.msra.mxu3 %v1064_v24 }
 0x141   :  { %v1113_v49 = vpop.eup %1112  ;;  %v403_v51 = vadd.f32 %v1089_v42, %v398_v47 }
 0x142   :  { %v377_v50 = vmul.f32 %v1111_v34, %v376_v46  ;;  %v383_v22 = vmul.f32 %v1113_v49, %v351_v37  ;;  %vm389_vm3 = vweird.f32 %v1113_v49 }
 0x143   :  { %v407_v53 = vmax.f32 %v403_v51, 0.0  ;;  %vm390_vm5 = vmor %vm388_vm4, %vm389_vm3 }
 0x144   :  { %v384_v54 = vmul.f32 %v1113_v49, %v383_v22  ;;  %v381_v55 = vsel %vm380_vm2, %v1111_v34, %v377_v50  ;;  %695 = vmatpush.bf16.msra.mxu3 %v1063_v30  ;;  %v1062_v34 = vld [vmem:[%s1509_s3 + $0xd0] sm:$0xff] }
 0x145   :  { %v410_v57 = vpack.c.bf16 %v407_v53, %v406_v52  ;;  %v394_v59 = vmul.f32 %v381_v55, %v346_v56 }
 0x146   :  { %v385_v58 = vmul.f32 0.5, %v384_v54 }
 0x147   :  { %486 = vmatmul.bf16.vlgmr.msra.gmra.mxu2 %v410_v57  ;;  %v399_v63 = vmul.f32 %v1088_v32, %v394_v59 }
 0x148   :  { %v386_v60 = vsub.f32 1.5, %v385_v58  ;;  %696 = vmatpush.bf16.msra.mxu3 %v1062_v34 }
 0x149   :  { %v404_v4 = vadd.f32 %v1089_v42, %v399_v63 }
 0x14a   :  { %v387_v61 = vmul.f32 %v1113_v49, %v386_v60 }
 0x14b   :  { %v408_v6 = vmax.f32 %v404_v4, 0.0 }
 0x14c   :  { %v391_v0 = vsel %vm390_vm5, %v1113_v49, %v387_v61  ;;  %697 = vmatpush.bf16.msra.mxu3 %v1061_v41 }
 0x14d   :  { %v395_v1 = vmul.f32 %v391_v0, %v347_v62 }
 0x14f   :  { %v400_v2 = vmul.f32 %v1088_v32, %v395_v1 }
 0x150   :  { %698 = vmatpush.bf16.msra.mxu3 %v1060_v43 }
 0x151   :  { %v405_v5 = vadd.f32 %v1089_v42, %v400_v2 }
 0x153   :  { %v409_v7 = vmax.f32 %v405_v5, 0.0  ;;  %v1091_v5 = vld [vmem:[%s1510_s4 + $0x5] ss:$0 sm:$0xff] }
 0x155   :  { %v411_v33 = vpack.c.bf16 %v409_v7, %v408_v6 }
 0x157   :  { %491 = vmatmul.bf16.gmra.mxu2 %v411_v33 }
 0x1ca   :  { %v487_v8 = vpop.f32.mrf.mxu2 }
 0x1cb   :  { %v1352_v10 = vadd.f32 %v1090_v3, %v487_v8 }
 0x1cd   :  { %499 = vadd.xlane.f32.xlu0 %v1352_v10  ;;  %v507_v40 = vmul.f32 %v1352_v10, %v1352_v10 }
 0x1cf   :  { %511 = vadd.xlane.f32.xlu2 %v507_v40 }
 0x1d2   :  { %v489_v11 = vpop.f32.mrf.mxu2 }
 0x1d3   :  { %v1357_v12 = vadd.f32 %v1090_v3, %v489_v11 }
 0x1d5   :  { %501 = vadd.xlane.f32.xlu1 %v1357_v12  ;;  %v508_v13 = vmul.f32 %v1357_v12, %v1357_v12 }
 0x1d7   :  { %513 = vadd.xlane.f32.xlu0 %v508_v13 }
 0x1da   :  { %v492_v14 = vpop.f32.mrf.mxu2 }
 0x1db   :  { %v1362_v15 = vadd.f32 %v1090_v3, %v492_v14 }
 0x1dd   :  { %503 = vadd.xlane.f32.xlu1 %v1362_v15  ;;  %v509_v16 = vmul.f32 %v1362_v15, %v1362_v15 }
 0x1df   :  { %515 = vadd.xlane.f32.xlu0 %v509_v16 }
 0x1e2   :  { %v494_v17 = vpop.f32.mrf.mxu2 }
 0x1e3   :  { %v1367_v18 = vadd.f32 %v1090_v3, %v494_v17 }
 0x1e5   :  { %505 = vadd.xlane.f32.xlu2 %v1367_v18  ;;  %v510_v19 = vmul.f32 %v1367_v18, %v1367_v18 }
 0x1e7   :  { %517 = vadd.xlane.f32.xlu1 %v510_v19 }
 0x240   :  { %v500_v25 = vpop.xlane.xlu0 %499 }
 0x241   :  { %v519_v26 = vmul.f32 0.0078125, %v500_v25 }
 0x242   :  { %v512_v27 = vpop.xlane.xlu2 %511 }
 0x243   :  { %v527_v28 = vmul.f32 %v519_v26, %v519_v26  ;;  %v523_v29 = vmul.f32 0.0078125, %v512_v27  ;;  %v539_v63 = vsub.f32 %v1352_v10, %v519_v26  ;;  %v1092_v10 = vld [vmem:[%s1510_s4 + $0x6] ss:$0 sm:$0xff] }
 0x245   :  { %v531_v31 = vsub.f32 %v523_v29, %v527_v28 }
 0x247   :  { %v535_v32 = vmax.f32 %v531_v31, 0.0 }
 0x248   :  { %v502_v35 = vpop.xlane.xlu1 %501 }
 0x249   :  { %v543_v36 = vadd.f32 1e-05, %v535_v32  ;;  %v1390_v37 = vmul.f32 0.0078125, %v502_v35 }
 0x24a   :  { %v514_v38 = vpop.xlane.xlu0 %513 }
 0x24b   :  { %1114 = vrsqrt.f32 %v543_v36  ;;  %v528_v39 = vmul.f32 %v1390_v37, %v1390_v37  ;;  %v524_v9 = vmul.f32 0.0078125, %v514_v38  ;;  %vm553_vm7 = vweird.f32 %v543_v36 }
 0x24c   :  { %v540_v19 = vsub.f32 %v1357_v12, %v1390_v37 }
 0x24d   :  { %v532_v42 = vsub.f32 %v524_v9, %v528_v39 }
 0x24f   :  { %v536_v44 = vmax.f32 %v532_v42, 0.0 }
 0x250   :  { %v504_v45 = vpop.xlane.xlu1 %503 }
 0x251   :  { %v1115_v46 = vpop.eup %1114  ;;  %v1400_v47 = vmul.f32 0.0078125, %v504_v45  ;;  %v544_v49 = vadd.f32 1e-05, %v536_v44 }
 0x252   :  { %v548_v48 = vmul.f32 %v1115_v46, %v543_v36  ;;  %v516_v50 = vpop.xlane.xlu0 %515  ;;  %vm554_vm6 = vweird.f32 %v1115_v46 }
 0x253   :  { %v529_v51 = vmul.f32 %v1400_v47, %v1400_v47  ;;  %v525_v22 = vmul.f32 0.0078125, %v516_v50  ;;  %1116 = vrsqrt.f32 %v544_v49  ;;  %vm555_vm8 = vmor %vm553_vm7, %vm554_vm6  ;;  %vm563_vm10 = vweird.f32 %v544_v49 }
 0x254   :  { %v549_v52 = vmul.f32 %v1115_v46, %v548_v48  ;;  %v541_v32 = vsub.f32 %v1362_v15, %v1400_v47 }
 0x255   :  { %v533_v53 = vsub.f32 %v525_v22, %v529_v51 }
 0x256   :  { %v550_v54 = vmul.f32 0.5, %v549_v52 }
 0x257   :  { %v537_v55 = vmax.f32 %v533_v53, 0.0 }
 0x258   :  { %v551_v56 = vsub.f32 1.5, %v550_v54  ;;  %v506_v57 = vpop.xlane.xlu2 %505 }
 0x259   :  { %v545_v58 = vadd.f32 1e-05, %v537_v55  ;;  %v1404_v59 = vmul.f32 0.0078125, %v506_v57  ;;  %v1117_v60 = vpop.eup %1116 }
 0x25a   :  { %v552_v61 = vmul.f32 %v1115_v46, %v551_v56  ;;  %v518_v62 = vpop.xlane.xlu1 %517  ;;  %v558_v0 = vmul.f32 %v1117_v60, %v544_v49  ;;  %vm564_vm9 = vweird.f32 %v1117_v60 }
 0x25b   :  { %1118 = vrsqrt.f32 %v545_v58  ;;  %v530_v2 = vmul.f32 %v1404_v59, %v1404_v59  ;;  %v526_v4 = vmul.f32 0.0078125, %v518_v62  ;;  %vm565_vm11 = vmor %vm563_vm10, %vm564_vm9  ;;  %vm573_vm13 = vweird.f32 %v545_v58 }
 0x25c   :  { %v556_v1 = vsel %vm555_vm8, %v1115_v46, %v552_v61  ;;  %v559_v6 = vmul.f32 %v1117_v60, %v558_v0  ;;  %v542_v47 = vsub.f32 %v1367_v18, %v1404_v59  ;;  %v1093_v18 = vld [vmem:[%s1510_s4 + $0x7] ss:$0 sm:$0xff] }
 0x25d   :  { %v587_v7 = vmul.f32 %v556_v1, %v539_v63  ;;  %v534_v33 = vsub.f32 %v526_v4, %v530_v2 }
 0x25e   :  { %v560_v3 = vmul.f32 0.5, %v559_v6 }
 0x25f   :  { %v538_v8 = vmax.f32 %v534_v33, 0.0  ;;  %v592_v40 = vmul.f32 %v1091_v5, %v587_v7 }
 0x260   :  { %v561_v13 = vsub.f32 1.5, %v560_v3 }
 0x261   :  { %v1119_v11 = vpop.eup %1118  ;;  %v546_v16 = vadd.f32 1e-05, %v538_v8  ;;  %v597_v21 = vadd.f32 %v1092_v10, %v592_v40 }
 0x262   :  { %v568_v14 = vmul.f32 %v1119_v11, %v545_v58  ;;  %v562_v17 = vmul.f32 %v1117_v60, %v561_v13  ;;  %vm574_vm12 = vweird.f32 %v1119_v11 }
 0x263   :  { %1120 = vrsqrt.f32 %v546_v16  ;;  %v601_v28 = vmax.f32 %v597_v21, 0.0  ;;  %vm575_vm14 = vmor %vm573_vm13, %vm574_vm12  ;;  %vm583_vm1 = vweird.f32 %v546_v16 }
 0x264   :  { %v569_v20 = vmul.f32 %v1119_v11, %v568_v14  ;;  %v566_v23 = vsel %vm565_vm11, %v1117_v60, %v562_v17 }
 0x265   :  { %v588_v25 = vmul.f32 %v566_v23, %v540_v19  ;;  %v605_v36 = vpack.c.bf16 %v601_v28, %v601_v28 }
 0x266   :  { %v570_v24 = vmul.f32 0.5, %v569_v20 }
 0x267   :  { %v593_v27 = vmul.f32 %v1091_v5, %v588_v25  ;;  %v635_v42 = vunpack.c.l.b16 %v605_v36 }
 0x268   :  { %v571_v26 = vsub.f32 1.5, %v570_v24 }
 0x269   :  { %v1121_v29 = vpop.eup %1120  ;;  %v598_v31 = vadd.f32 %v1092_v10, %v593_v27 }
 0x26a   :  { %v572_v30 = vmul.f32 %v1119_v11, %v571_v26  ;;  %v578_v12 = vmul.f32 %v1121_v29, %v546_v16  ;;  %vm584_vm15 = vweird.f32 %v1121_v29 }
 0x26b   :  { %v602_v35 = vmax.f32 %v598_v31, 0.0  ;;  %vm585_vm2 = vmor %vm583_vm1, %vm584_vm15 }
 0x26c   :  { %v576_v34 = vsel %vm575_vm14, %v1119_v11, %v572_v30  ;;  %v579_v37 = vmul.f32 %v1121_v29, %v578_v12 }
 0x26d   :  { %v589_v38 = vmul.f32 %v576_v34, %v541_v32  ;;  %v606_v39 = vpack.c.bf16 %v602_v35, %v602_v35  ;;  %v1071_v41 = vpack.c.bf16 %v602_v35, %v601_v28 }
 0x26e   :  { %v580_v9 = vmul.f32 0.5, %v579_v37 }
 0x26f   :  { %1072 = vst [vmem:[%s1511_s5] sm:$0xff] %v1071_v41   ;;  %v636_v43 = vunpack.c.l.b16 %v606_v39  ;;  %v594_v44 = vmul.f32 %v1091_v5, %v589_v38  ;;  %v1456_v38 = vld [vmem:[%s1510_s4 + $0x8] ss:$0 sm:$0xff] }
 0x270   :  { %v581_v45 = vsub.f32 1.5, %v580_v9 }
 0x271   :  { %v639_v15 = vpack.c.b16 %v636_v43, %v635_v42  ;;  %v599_v48 = vadd.f32 %v1092_v10, %v594_v44  ;;  %v1463_v44 = vld [vmem:[%s1510_s4 + $0x9] ss:$0 sm:$0xff] }
 0x272   :  { %v582_v46 = vmul.f32 %v1121_v29, %v581_v45 }
 0x273   :  { %699 = vmatmul.bf16.vlgmr.msra.gmra.mxu3 %v639_v15  ;;  %v603_v22 = vmax.f32 %v599_v48, 0.0 }
 0x274   :  { %v586_v49 = vsel %vm585_vm2, %v1121_v29, %v582_v46 }
 0x275   :  { %v590_v50 = vmul.f32 %v586_v49, %v542_v47  ;;  %v607_v54 = vpack.c.bf16 %v603_v22, %v603_v22 }
 0x277   :  { %v595_v51 = vmul.f32 %v1091_v5, %v590_v50  ;;  %v637_v57 = vunpack.c.l.b16 %v607_v54 }
 0x279   :  { %v600_v52 = vadd.f32 %v1092_v10, %v595_v51 }
 0x27b   :  { %v604_v53 = vmax.f32 %v600_v52, 0.0 }
 0x27d   :  { %v608_v55 = vpack.c.bf16 %v604_v53, %v604_v53  ;;  %v1076_v56 = vpack.c.bf16 %v604_v53, %v603_v22  ;;  %v1096_v22 = vld [vmem:[%s1510_s4 + $0xa] ss:$0 sm:$0xff] }
 0x27f   :  { %1078 = vst [vmem:[%s1511_s5 + $0x8] sm:$0xff] %v1076_v56   ;;  %v638_v58 = vunpack.c.l.b16 %v608_v55 }
 0x281   :  { %v640_v60 = vpack.c.b16 %v638_v58, %v637_v57 }
 0x283   :  { %704 = vmatmul.bf16.gmra.mxu3 %v640_v60 }
 0x2f6   :  { %v700_v59 = vpop.f32.mrf.mxu3 }
 0x2f7   :  { %v701_v61 = vadd.f32 %v1093_v18, %v700_v59 }
 0x2f9   :  { %712 = vadd.xlane.f32.xlu2 %v701_v61  ;;  %v720_v62 = vmul.f32 %v701_v61, %v701_v61 }
 0x2fb   :  { %724 = vadd.xlane.f32.xlu0 %v720_v62 }
 0x2fe   :  { %v702_v63 = vpop.f32.mrf.mxu3 }
 0x2ff   :  { %v1430_v0 = vadd.f32 %v1093_v18, %v702_v63 }
 0x301   :  { %v721_v6 = vmul.f32 %v1430_v0, %v1430_v0 }
 0x303   :  { %714 = vadd.xlane.f32.xlu0 %v1430_v0 }
 0x306   :  { %v705_v1 = vpop.f32.mrf.mxu3 }
 0x307   :  { %v1433_v2 = vadd.f32 %v1093_v18, %v705_v1 }
 0x309   :  { %716 = vadd.xlane.f32.xlu1 %v1433_v2  ;;  %v722_v33 = vmul.f32 %v1433_v2, %v1433_v2 }
 0x30e   :  { %v707_v4 = vpop.f32.mrf.mxu3 }
 0x30f   :  { %v1436_v5 = vadd.f32 %v1093_v18, %v707_v4 }
 0x311   :  { %718 = vadd.xlane.f32.xlu2 %v1436_v5  ;;  %726 = vadd.xlane.f32.xlu1 %v721_v6  ;;  %v723_v7 = vmul.f32 %v1436_v5, %v1436_v5 }
 0x313   :  { %730 = vadd.xlane.f32.xlu0 %v723_v7 }
 0x319   :  { %728 = vadd.xlane.f32.xlu2 %v722_v33 }
 0x36c   :  { %v713_v3 = vpop.xlane.xlu2 %712 }
 0x36d   :  { %v732_v8 = vmul.f32 0.0078125, %v713_v3 }
 0x36e   :  { %v725_v40 = vpop.xlane.xlu0 %724 }
 0x36f   :  { %v740_v10 = vmul.f32 %v732_v8, %v732_v8  ;;  %v736_v11 = vmul.f32 0.0078125, %v725_v40  ;;  %v752_v34 = vsub.f32 %v701_v61, %v732_v8 }
 0x371   :  { %v744_v13 = vsub.f32 %v736_v11, %v740_v10 }
 0x373   :  { %v748_v14 = vmax.f32 %v744_v13, 0.0 }
 0x375   :  { %v756_v16 = vadd.f32 1e-05, %v748_v14 }
 0x376   :  { %v715_v21 = vpop.xlane.xlu0 %714 }
 0x377   :  { %1122 = vrsqrt.f32 %v756_v16  ;;  %v1445_v24 = vmul.f32 0.0078125, %v715_v21  ;;  %vm766_vm4 = vweird.f32 %v756_v16 }
 0x379   :  { %v741_v29 = vmul.f32 %v1445_v24, %v1445_v24  ;;  %v753_v3 = vsub.f32 %v1430_v0, %v1445_v24 }
 0x37c   :  { %v717_v17 = vpop.xlane.xlu1 %716 }
 0x37d   :  { %v1123_v19 = vpop.eup %1122  ;;  %v1458_v41 = vmul.f32 0.0078125, %v717_v17 }
 0x37e   :  { %v761_v20 = vmul.f32 %v1123_v19, %v756_v16  ;;  %vm767_vm3 = vweird.f32 %v1123_v19 }
 0x37f   :  { %vm768_vm5 = vmor %vm766_vm4, %vm767_vm3  ;;  %v742_v48 = vmul.f32 %v1458_v41, %v1458_v41  ;;  %v754_v24 = vsub.f32 %v1433_v2, %v1458_v41  ;;  %v1097_v2 = vld [vmem:[%s1510_s4 + $0xb] ss:$0 sm:$0xff] }
 0x380   :  { %v762_v23 = vmul.f32 %v1123_v19, %v761_v20 }
 0x382   :  { %v763_v25 = vmul.f32 0.5, %v762_v23 }
 0x384   :  { %v764_v26 = vsub.f32 1.5, %v763_v25  ;;  %v719_v27 = vpop.xlane.xlu2 %718  ;;  %v727_v28 = vpop.xlane.xlu1 %726 }
 0x385   :  { %v1449_v30 = vmul.f32 0.0078125, %v719_v27  ;;  %v737_v31 = vmul.f32 0.0078125, %v727_v28 }
 0x386   :  { %v765_v32 = vmul.f32 %v1123_v19, %v764_v26  ;;  %v731_v12 = vpop.xlane.xlu0 %730 }
 0x387   :  { %v743_v35 = vmul.f32 %v1449_v30, %v1449_v30  ;;  %v745_v36 = vsub.f32 %v737_v31, %v741_v29  ;;  %v739_v37 = vmul.f32 0.0078125, %v731_v12  ;;  %v755_v11 = vsub.f32 %v1436_v5, %v1449_v30 }
 0x388   :  { %v769_v39 = vsel %vm768_vm5, %v1123_v19, %v765_v32 }
 0x389   :  { %v749_v9 = vmax.f32 %v745_v36, 0.0  ;;  %v747_v42 = vsub.f32 %v739_v37, %v743_v35  ;;  %v800_v43 = vmul.f32 %v769_v39, %v752_v34  ;;  %v1160_v35 = vmov 0  }
 0x38a   :  { %1083 = vset.pattern.permute.xlu2 %v1160_v35  ;;  %1084 = vset.pattern.permute.xlu0 %v1160_v35 }
 0x38b   :  { %v757_v45 = vadd.f32 1e-05, %v749_v9  ;;  %v751_v15 = vmax.f32 %v747_v42, 0.0  ;;  %v805_v46 = vmul.f32 %v1456_v38, %v800_v43  ;;  %1085 = vset.pattern.permute.xlu1 %v1160_v35 }
 0x38c   :  { %v729_v47 = vpop.xlane.xlu2 %728 }
 0x38d   :  { %1124 = vrsqrt.f32 %v757_v45  ;;  %v759_v49 = vadd.f32 1e-05, %v751_v15  ;;  %v738_v50 = vmul.f32 0.0078125, %v729_v47  ;;  %v810_v51 = vadd.f32 %v1463_v44, %v805_v46  ;;  %v1131_v47 = vld [vmem:[%s1508_s2 + $0x18] sm:$0xff] }
 0x38e   :  { %vm776_vm7 = vweird.f32 %v757_v45 }
 0x38f   :  { %1126 = vrsqrt.f32 %v759_v49  ;;  %v746_v52 = vsub.f32 %v738_v50, %v742_v48  ;;  %v814_v53 = vmax.f32 %v810_v51, 0.0  ;;  %vm796_vm10 = vweird.f32 %v759_v49  ;;  %v1132_v50 = vld [vmem:[%s1508_s2 + $0x8] sm:$0xff] }
 0x391   :  { %v750_v54 = vmax.f32 %v746_v52, 0.0  ;;  %v820_v55 = vmul.f32 %v1096_v22, %v814_v53  ;;  %v1133_v52 = vld [vmem:[%s1508_s2 + $0x10] sm:$0xff] }
 0x393   :  { %v1125_v56 = vpop.eup %1124  ;;  %v758_v57 = vadd.f32 1e-05, %v750_v54  ;;  %824 = vadd.xlane.f32.xlu1 %v820_v55 }
 0x394   :  { %v771_v58 = vmul.f32 %v1125_v56, %v757_v45  ;;  %vm777_vm6 = vweird.f32 %v1125_v56  ;;  %v1130_v45 = vld [vmem:[%s1508_s2] sm:$0xff] }
 0x395   :  { %v1127_v60 = vpop.eup %1126  ;;  %1128 = vrsqrt.f32 %v758_v57  ;;  %vm778_vm9 = vmor %vm776_vm7, %vm777_vm6  ;;  %vm786_vm13 = vweird.f32 %v758_v57 }
 0x396   :  { %v772_v18 = vmul.f32 %v1125_v56, %v771_v58  ;;  %v791_v59 = vmul.f32 %v1127_v60, %v759_v49  ;;  %vm797_vm8 = vweird.f32 %v1127_v60 }
 0x397   :  { %vm798_vm11 = vmor %vm796_vm10, %vm797_vm8 }
 0x398   :  { %v773_v61 = vmul.f32 0.5, %v772_v18  ;;  %v792_v62 = vmul.f32 %v1127_v60, %v791_v59 }
 0x39a   :  { %v774_v63 = vsub.f32 1.5, %v773_v61  ;;  %v793_v1 = vmul.f32 0.5, %v792_v62 }
 0x39b   :  { %v1129_v4 = vpop.eup %1128 }
 0x39c   :  { %v775_v6 = vmul.f32 %v1125_v56, %v774_v63  ;;  %v794_v7 = vsub.f32 1.5, %v793_v1  ;;  %v781_v33 = vmul.f32 %v1129_v4, %v758_v57  ;;  %vm787_vm12 = vweird.f32 %v1129_v4 }
 0x39d   :  { %vm788_vm14 = vmor %vm786_vm13, %vm787_vm12 }
 0x39e   :  { %v795_v8 = vmul.f32 %v1127_v60, %v794_v7  ;;  %v782_v40 = vmul.f32 %v1129_v4, %v781_v33  ;;  %v779_v10 = vsel %vm778_vm9, %v1125_v56, %v775_v6 }
 0x39f   :  { %v801_v13 = vmul.f32 %v779_v10, %v753_v3 }
 0x3a0   :  { %v783_v14 = vmul.f32 0.5, %v782_v40  ;;  %v799_v16 = vsel %vm798_vm11, %v1127_v60, %v795_v8 }
 0x3a1   :  { %v806_v17 = vmul.f32 %v1456_v38, %v801_v13  ;;  %v803_v19 = vmul.f32 %v799_v16, %v755_v11 }
 0x3a2   :  { %v784_v20 = vsub.f32 1.5, %v783_v14 }
 0x3a3   :  { %v811_v21 = vadd.f32 %v1463_v44, %v806_v17  ;;  %v808_v0 = vmul.f32 %v1456_v38, %v803_v19 }
 0x3a4   :  { %v785_v23 = vmul.f32 %v1129_v4, %v784_v20 }
 0x3a5   :  { %v815_v5 = vmax.f32 %v811_v21, 0.0  ;;  %v813_v25 = vadd.f32 %v1463_v44, %v808_v0 }
 0x3a6   :  { %v789_v26 = vsel %vm788_vm14, %v1129_v4, %v785_v23 }
 0x3a7   :  { %v821_v27 = vmul.f32 %v1096_v22, %v815_v5  ;;  %v817_v28 = vmax.f32 %v813_v25, 0.0  ;;  %v802_v29 = vmul.f32 %v789_v26, %v754_v24 }
 0x3a9   :  { %826 = vadd.xlane.f32.xlu2 %v821_v27  ;;  %v823_v30 = vmul.f32 %v1096_v22, %v817_v28  ;;  %v807_v31 = vmul.f32 %v1456_v38, %v802_v29 }
 0x3ab   :  { %830 = vadd.xlane.f32.xlu1 %v823_v30  ;;  %v812_v32 = vadd.f32 %v1463_v44, %v807_v31 }
 0x3ad   :  { %v816_v12 = vmax.f32 %v812_v32, 0.0 }
 0x3af   :  { %v822_v34 = vmul.f32 %v1096_v22, %v816_v12 }
 0x3b1   :  { %828 = vadd.xlane.f32.xlu0 %v822_v34 }
 0x406   :  { %v825_v36 = vpop.xlane.xlu1 %824 }
 0x407   :  { %v834_v37 = vadd.f32 %v1097_v2, %v825_v36 }
 0x409   :  { %840 = vperm.xlu2 %1083, %v834_v37  }
 0x41c   :  { %v827_v39 = vpop.xlane.xlu2 %826 }
 0x41d   :  { %v835_v41 = vadd.f32 %v1097_v2, %v827_v39 }
 0x41e   :  { %v831_v38 = vpop.xlane.xlu1 %830 }
 0x41f   :  { %v837_v9 = vadd.f32 %v1097_v2, %v831_v38  ;;  %845 = vperm.xlu0 %1084, %v835_v41  }
 0x421   :  { %855 = vperm.xlu2 %1083, %v837_v9  }
 0x424   :  { %v829_v42 = vpop.xlane.xlu0 %828 }
 0x425   :  { %v836_v43 = vadd.f32 %v1097_v2, %v829_v42 }
 0x427   :  { %850 = vperm.xlu1 %1085, %v836_v43  }
 0x463   :  { %v841_v44 = vpop.permute.xlu2 %840 }
 0x464   :  { %v858_v15 = vmul.f32 %v1130_v45, %v841_v44 }
 0x466   :  { %862 = vst.msk [vmem:[#allocation2] sm:$0xff] %vm31_vm0, %v858_v15 }
 0x47b   :  { %v856_v46 = vpop.permute.xlu2 %855 }
 0x47c   :  { %v861_v48 = vmul.f32 %v1131_v47, %v856_v46 }
 0x47e   :  { %865 = vst.msk [vmem:[#allocation2 + $0x18] sm:$0xff] %vm31_vm0, %v861_v48 }
 0x491   :  { %v846_v49 = vpop.permute.xlu0 %845 }
 0x492   :  { %v859_v51 = vmul.f32 %v1132_v50, %v846_v49 }
 0x494   :  { %863 = vst.msk [vmem:[#allocation2 + $0x8] sm:$0xff] %vm31_vm0, %v859_v51 }
 0x499   :  { %v851_v22 = vpop.permute.xlu1 %850 }
 0x49a   :  { %v860_v53 = vmul.f32 %v1133_v52, %v851_v22 }
 0x49c   :  { %864 = vst.msk [vmem:[#allocation2 + $0x10] sm:$0xff] %vm31_vm0, %v860_v53 }
 0x49d   :  { %880 = dma.vmem_to_hbm [thread:$0]  %s873_s7, 512, %s875_s10, [#allocation3], %s1162_s12, %s1162_s12, %s1163_s13  }
 0x49e   :  { %1158 = dma.done.wait [#allocation3], 512  }
 0x49f   :  { %1159 = vsyncadd [#allocation3], 4294966784 }
 0x4a0   :  { %887 = vsyncpa [#allocation3], 1 }

</bundles_post_ra>
